<compile_context>
chip_gen: v5e
topology: v5e:2x2
jax: 0.10.0
libtpu: 0.0.40
codegen_flags: <defaults>
</compile_context>

<pallas_src>
import functools
import math

import jax
import jax.numpy as jnp
from jax import lax
from jax.experimental import pallas as pl
from jax.experimental.pallas import tpu as pltpu

LOG2 = math.log(2.0)
NEG_INF = -1e10
BIG = 1.0e3            # "push padded nodes out of cutoff range" offset

# ----- model hyper-parameters (synthetic, consistent with the module ctor) -----
TARGET_DIM = 16          # target_dim
HID_DIM = 64             # hid_dim (conhidadj maps 28 -> 64 into attention)
N_HEADS = 4              # n_heads
HEAD_DIM = HID_DIM // N_HEADS
COND_CH = 28             # SchNetEncoder hidden_channels=28
CUTOFF = 5.0             # condition_cutoff=5
N_GAUSS = 16             # assumed SchNet gaussian expansion size
N_FILTERS = 32           # assumed SchNet num_filters
N_LAYERS = 2             # assumed SchNet num_interactions
NODE_LANES = COND_CH + 4 + 1          # x(28) | xyz(3) | (1-mask)*BIG | mask
TW_LANES = TARGET_DIM + 1             # [noitarget, t]
SLAB_LANES = 128                      # packed weight/constant slab lane width
OUT_LANES = SLAB_LANES                # lane-dense output block width


# ----------------------------- weight / constant packing ----------------------
def _pad8(r):
    return ((r + 7) // 8) * 8


def pack_weights_and_consts(params, n_graphs, nmax):
    """Pack weights + folded linear chains + small structural constants into one
    (R, 128) f32 slab with static row offsets (1 resident DMA stream)."""
    N, M = nmax, n_graphs * nmax
    f32 = lambda a: jnp.asarray(a, jnp.float32)
    hi = lambda a, b: jnp.dot(f32(a), f32(b), precision=lax.Precision.HIGHEST)

    # ---- fold purely-linear chains host-side (review item) ----
    # k = (h@adjw+adjb)@wk+bk  ->  h@(adjw@wk) + (adjb@wk+bk); same for v; fuse k|v.
    kvw = jnp.concatenate([hi(params["adjw"], params["wk"]),
                           hi(params["adjw"], params["wv"])], axis=1)      # (28,128)
    kvb = jnp.concatenate([hi(params["adjb"], params["wk"]) + f32(params["bk"]),
                           hi(params["adjb"], params["wv"]) + f32(params["bv"])],
                          axis=1)                                          # (1,128)
    # q = (twt@mlpw+mlpb)@wq+bq
    qw = hi(params["mlpw"], params["wq"])                                  # (17,64)
    qb = hi(params["mlpb"], params["wq"]) + f32(params["bq"])              # (1,64)
    # out = (ctx@wo+bo)@outw+outb, lane-padded to 128 for a lane-dense store
    ow = hi(params["wo"], params["outw"])                                  # (64,16)
    ob = hi(params["bo"], params["outw"]) + f32(params["outb"])            # (1,16)
    ow = jnp.zeros((HID_DIM, OUT_LANES), jnp.float32).at[:, :TARGET_DIM].set(ow)
    ob = jnp.zeros((1, OUT_LANES), jnp.float32).at[:, :TARGET_DIM].set(ob)

    # ---- small grid-invariant structural constants (hoisted out of kernel) ----
    r64 = jnp.arange(HID_DIM)
    hb = (r64[:, None] // HEAD_DIM == r64[None, :] // HEAD_DIM).astype(jnp.float32)
    g2n = (jnp.arange(n_graphs)[:, None] ==
           jnp.arange(M)[None, :] // N).astype(jnp.float32)                # (Bt, M)
    n2g = g2n.T                                                            # (M, Bt)

    entries = [("gauss_off", params["gauss_off"])]
    for l in range(N_LAYERS):
        for k in ["f1w", "f1b", "f2w", "f2b", "l1w", "l2w", "l2b", "lw", "lb"]:
            entries.append((f"{k}{l}", params[k][l]))
    entries += [("kvw", kvw), ("kvb", kvb), ("qw", qw), ("qb", qb),
                ("ow", ow), ("ob", ob), ("hb", hb), ("g2n", g2n), ("n2g", n2g)]

    offsets, blocks, row = {}, [], 0
    for name, arr in entries:
        arr = f32(arr)
        r, c = arr.shape
        assert c <= SLAB_LANES, f"{name} needs {c} lanes > {SLAB_LANES}"
        rp = _pad8(r)
        blk = jnp.zeros((rp, SLAB_LANES), jnp.float32).at[:r, :c].set(arr)
        offsets[name] = (row, r, c)
        blocks.append(blk)
        row += rp
    slab = jnp.concatenate(blocks, axis=0)
    return slab, offsets


def build_edge_constants(n_graphs, nmax):
    """Grid-invariant edge one-hots, built once on the host, shipped in bf16
    (one-hots / {-1,0,1} are exact in bf16)."""
    N, E, M = nmax, nmax * nmax, n_graphs * nmax
    EE = n_graphs * E
    e = jnp.arange(EE)[:, None]
    m = jnp.arange(M)[None, :]
    same_g = (e // E) == (m // N)
    send = (same_g & ((e % N) == (m % N))).astype(jnp.float32)             # sender j
    recv = (same_g & (((e % E) // N) == (m % N))).astype(jnp.float32)      # receiver i
    # self-edges (radius_graph loop=False): zero the sender rows -> their messages
    # are exactly zero, no separate not_self mask needed in-kernel.
    not_self = ((jnp.arange(EE) % E) // N != jnp.arange(EE) % N
                ).astype(jnp.float32)[:, None]
    edge_ab = jnp.stack([send * not_self, recv - send]).astype(jnp.bfloat16)  # (2,EE,M)
    recv_t = recv.T.astype(jnp.bfloat16)                                      # (M,EE)
    return edge_ab, recv_t


# ----------------------------- Pallas kernel ----------------------------------
def make_kernel(offsets, n_layers, hid, cutoff, gauss_coeff, inv_scale):

    def kernel(node_ref, twt_ref, edge_ref, recvT_ref, slab_ref, o_ref):
        def W(name):                # static slice into the packed weight slab
            off, r, c = offsets[name]
            return slab_ref[off:off + r, 0:c]

        def mm(a, b):
            return jnp.dot(a, b, preferred_element_type=jnp.float32)

        bf = lambda a: a.astype(jnp.bfloat16)

        def ssp(v):                 # ShiftedSoftplus (f32 elementwise, v5e-safe)
            return jax.nn.softplus(v) - LOG2

        node = node_ref[0]                          # (M, 33)
        h = node[:, 0:COND_CH]                      # (M, 28)
        geom = node[:, COND_CH:COND_CH + 4]         # (M, 4): xyz, (1-mask)*BIG
        mask = node[:, COND_CH + 4:COND_CH + 5]     # (M, 1)
        twt = twt_ref[0]                            # (Bt, 17) per-graph [noitarget, t]

        send = edge_ref[0]                          # (EE, M) bf16, self rows zeroed
        rms = edge_ref[1]                           # (EE, M) bf16, recv - send
        recvT = recvT_ref[...]                      # (M, EE) bf16 scatter-add one-hot

        # ----- edge geometry (f32 so the d<cutoff decision matches reference) ----
        diff = mm(rms.astype(jnp.float32), geom)    # fused gi - gj gather  (EE, 4)
        d2 = jnp.sum(diff * diff, axis=-1, keepdims=True)
        d = jnp.sqrt(d2)
        # padded nodes carry (1-mask)*BIG, so real<->padded pairs exceed the cutoff;
        # padded<->padded pairs only touch padded h rows, removed by the attention
        # mask later (fragile-but-validated invariant, keep BIG-lane trick intact).
        emask = (d2 < cutoff * cutoff).astype(jnp.float32)                 # (EE, 1)
        ea = jnp.exp(gauss_coeff * (d - W("gauss_off")) ** 2)              # (EE, G)
        ea_bf = bf(ea)

        # ----- SchNet interaction blocks (graphs stacked along sublanes) --------
        for l in range(n_layers):
            w = ssp(mm(ea_bf, bf(W(f"f1w{l}"))) + W(f"f1b{l}"))   # filter net (EE,F)
            w = mm(bf(w), bf(W(f"f2w{l}"))) + W(f"f2b{l}")
            w = w * emask                                         # CFConv cutoff mask
            x1 = mm(h, W(f"l1w{l}"))                              # lin1 (no bias) (M,F)
            xj = mm(send, bf(x1))                                 # gather x_j (MXU, bf16)
            msg = w * xj
            agg = mm(recvT, bf(msg))                              # scatter-add (MXU, bf16)
            x2 = mm(agg, W(f"l2w{l}")) + W(f"l2b{l}")             # lin2          (M, 28)
            h = h + mm(ssp(x2), W(f"lw{l}")) + W(f"lb{l}")        # act+lin+residual

        # ----- attention: K|V in one wide matmul from folded (adj->wk/wv) weights --
        kv = mm(h, W("kvw")) + W("kvb")                           # (M, 128)
        k = kv[:, 0:hid]
        v = kv[:, hid:2 * hid]

        # query at graph granularity (folded mlp->wq), expanded to nodes via one-hot
        qg = mm(twt, W("qw")) + W("qb")                           # (Bt, 64)
        qn = mm(W("n2g"), qg)                                     # (M, 64) exact expand

        # per-head scores replicated across each head's lanes via block-diag one-hot
        scores = mm(qn * k, W("hb")) * inv_scale                  # (M, 64)
        scores = jnp.where(mask > 0.0, scores, NEG_INF)           # masked_fill
        m_stab = jnp.max(scores, axis=0, keepdims=True)           # shared stabilizer
        p = jnp.exp(scores - m_stab)                              # masked rows -> 0
        pv = jnp.concatenate([p, p * v], axis=-1)                 # (M, 128)
        ag = mm(W("g2n"), pv)                                     # fused denom|ctx (Bt,128)
        denom = jnp.maximum(ag[:, 0:hid], 1e-20)                  # guard empty graphs
        ctx = ag[:, hid:2 * hid] * pl.reciprocal(denom, approx=True)

        # folded (wo -> out) projection, lane-padded to 128 -> lane-dense store
        o_ref[0] = mm(ctx, W("ow")) + W("ob")                     # (Bt, 128)

    return kernel


# ----------------------------- host glue --------------------------------------
def to_dense(x_flat, batch, bs, nmax):
    """to_dense_batch equivalent: (Ntot, F), batch -> (bs, nmax, F), mask (bs, nmax)."""
    n_total = x_flat.shape[0]
    counts = jnp.bincount(batch, length=bs)
    starts = jnp.concatenate(
        [jnp.zeros((1,), jnp.int32), jnp.cumsum(counts)[:-1].astype(jnp.int32)])
    pos_in = jnp.arange(n_total, dtype=jnp.int32) - starts[batch]
    dense = jnp.zeros((bs, nmax) + x_flat.shape[1:], x_flat.dtype)
    dense = dense.at[batch, pos_in].set(x_flat)
    mask = jnp.zeros((bs, nmax), jnp.float32).at[batch, pos_in].set(1.0)
    return dense, mask


def dynamics_noi_forward(params, noitarget, t, condition_x, condition_pos, batch,
                         bs, nmax, graphs_per_step=None, vmem_limit_bytes=None):
    if graphs_per_step is None:
        # S=1 is best on single-TensorCore v5e/v6e (per-step overhead dominates);
        # on v7x pass bs//2 so both cores get grid steps and the Bt^2*N^3-scaling
        # edge intermediates fit the smaller 64 MiB VMEM.
        graphs_per_step = bs
    Bt = graphs_per_step
    assert bs % Bt == 0
    S = bs // Bt
    N = nmax
    M = Bt * N
    EE = Bt * N * N
    assert M <= SLAB_LANES, "widen SLAB_LANES for M > 128 per-step nodes"

    # ---- densify per graph (replaces radius_graph batching + to_dense_batch) ----
    x_d, mask = to_dense(condition_x.astype(jnp.float32), batch, bs, nmax)   # (bs,N,28)
    pos_d, _ = to_dense(condition_pos.astype(jnp.float32), batch, bs, nmax)  # (bs,N,3)

    # ---- ONE lane-packed per-node stream: x | xyz | (1-mask)*BIG | mask ----
    node = jnp.concatenate(
        [x_d, pos_d, (1.0 - mask)[..., None] * BIG, mask[..., None]], axis=-1)
    node_s = node.reshape(S, M, NODE_LANES)

    # ---- time conditioning: cat([noitarget, t], dim=1), ONE row per graph ----
    h_time = jnp.broadcast_to(jnp.asarray(t, jnp.float32).reshape(-1, 1), (bs, 1))
    twt = jnp.concatenate([noitarget.astype(jnp.float32), h_time], axis=1)   # (bs, 17)
    twt_s = twt.reshape(S, Bt, TW_LANES)

    slab, offsets = pack_weights_and_consts(params, Bt, nmax)
    edge_ab, recv_t = build_edge_constants(Bt, nmax)

    gauss_delta = CUTOFF / (N_GAUSS - 1)
    gauss_coeff = -0.5 / (gauss_delta ** 2)
    kern = make_kernel(offsets, N_LAYERS, HID_DIM, CUTOFF, gauss_coeff,
                       1.0 / math.sqrt(HEAD_DIM))

    cp_kwargs = dict(dimension_semantics=("parallel",))
    if vmem_limit_bytes is not None:      # raise for large Bt on v5e/v6e (16/32 MiB default)
        cp_kwargs["vmem_limit_bytes"] = vmem_limit_bytes

    out = pl.pallas_call(
        kern,
        out_shape=jax.ShapeDtypeStruct((S, Bt, OUT_LANES), jnp.float32),
        grid=(S,),
        in_specs=[
            pl.BlockSpec((1, M, NODE_LANES), lambda s: (s, 0, 0)),
            pl.BlockSpec((1, Bt, TW_LANES), lambda s: (s, 0, 0)),
            # grid-invariant constants: constant index_map -> fetched once, resident
            pl.BlockSpec((2, EE, M), lambda s: (0, 0, 0)),
            pl.BlockSpec((M, EE), lambda s: (0, 0)),
            pl.BlockSpec(slab.shape, lambda s: (0, 0)),
        ],
        out_specs=pl.BlockSpec((1, Bt, OUT_LANES), lambda s: (s, 0, 0)),
        compiler_params=pltpu.CompilerParams(**cp_kwargs),
    )(node_s, twt_s, edge_ab, recv_t, slab)
    return out[:, :, :TARGET_DIM].reshape(bs, TARGET_DIM)


# ----------------------------- params & reference ------------------------------
def init_params(key):
    keys = iter(jax.random.split(key, 80))

    def lin_w(fi, fo):
        b = 1.0 / math.sqrt(fi)
        return jax.random.uniform(next(keys), (fi, fo), jnp.float32, -b, b)

    def lin_b(fi, fo):
        b = 1.0 / math.sqrt(fi)
        return jax.random.uniform(next(keys), (1, fo), jnp.float32, -b, b)

    p = {"gauss_off": jnp.linspace(0.0, CUTOFF, N_GAUSS, dtype=jnp.float32)[None, :]}
    st = {k: [] for k in ["f1w", "f1b", "f2w", "f2b", "l1w", "l2w", "l2b", "lw", "lb"]}
    for _ in range(N_LAYERS):
        st["f1w"].append(lin_w(N_GAUSS, N_FILTERS)); st["f1b"].append(lin_b(N_GAUSS, N_FILTERS))
        st["f2w"].append(lin_w(N_FILTERS, N_FILTERS)); st["f2b"].append(lin_b(N_FILTERS, N_FILTERS))
        st["l1w"].append(lin_w(COND_CH, N_FILTERS))
        st["l2w"].append(lin_w(N_FILTERS, COND_CH)); st["l2b"].append(lin_b(N_FILTERS, COND_CH))
        st["lw"].append(lin_w(COND_CH, COND_CH)); st["lb"].append(lin_b(COND_CH, COND_CH))
    for k_, v in st.items():
        p[k_] = jnp.stack(v)
    p["adjw"], p["adjb"] = lin_w(COND_CH, HID_DIM), lin_b(COND_CH, HID_DIM)
    p["mlpw"], p["mlpb"] = lin_w(TARGET_DIM + 1, HID_DIM), lin_b(TARGET_DIM + 1, HID_DIM)
    p["wq"], p["bq"] = lin_w(HID_DIM, HID_DIM), lin_b(HID_DIM, HID_DIM)
    p["wk"], p["bk"] = lin_w(HID_DIM, HID_DIM), lin_b(HID_DIM, HID_DIM)
    p["wv"], p["bv"] = lin_w(HID_DIM, HID_DIM), lin_b(HID_DIM, HID_DIM)
    p["wo"], p["bo"] = lin_w(HID_DIM, HID_DIM), lin_b(HID_DIM, HID_DIM)
    p["outw"], p["outb"] = lin_w(HID_DIM, TARGET_DIM), lin_b(HID_DIM, TARGET_DIM)
    return p


def reference_forward(params, noitarget, t, condition_x, condition_pos, batch, bs, nmax):
    """Plain-JAX (f32, HIGHEST precision) mirror of the same math."""
    dd = functools.partial(jnp.dot, precision=lax.Precision.HIGHEST)
    ssp = lambda v: jax.nn.softplus(v) - LOG2
    x_d, mask = to_dense(condition_x, batch, bs, nmax)
    pos_d, _ = to_dense(condition_pos, batch, bs, nmax)
    h_time = jnp.broadcast_to(jnp.asarray(t, jnp.float32).reshape(-1, 1), (bs, 1))
    twt = jnp.concatenate([noitarget, h_time], axis=1)
    gauss_coeff = -0.5 / ((CUTOFF / (N_GAUSS - 1)) ** 2)
    scale = math.sqrt(HEAD_DIM)
    outs = []
    for b in range(bs):
        h, pos, m = x_d[b], pos_d[b], mask[b]
        d = jnp.sqrt(jnp.sum((pos[:, None, :] - pos[None, :, :]) ** 2, axis=-1))
        emask = ((d < CUTOFF).astype(jnp.float32) * (1.0 - jnp.eye(nmax))
                 * m[:, None] * m[None, :])
        ea = jnp.exp(gauss_coeff * (d[:, :, None] - params["gauss_off"][0][None, None, :]) ** 2)
        for l in range(N_LAYERS):
            w = ssp(jnp.einsum("ijg,gf->ijf", ea, params["f1w"][l],
                               precision=lax.Precision.HIGHEST) + params["f1b"][l])
            w = jnp.einsum("ijf,fk->ijk", w, params["f2w"][l],
                           precision=lax.Precision.HIGHEST) + params["f2b"][l]
            w = w * emask[:, :, None]
            x1 = dd(h, params["l1w"][l])
            agg = jnp.sum(w * x1[None, :, :], axis=1)
            x2 = dd(agg, params["l2w"][l]) + params["l2b"][l]
            h = h + (dd(ssp(x2), params["lw"][l]) + params["lb"][l])
        ch = dd(h, params["adjw"]) + params["adjb"]
        th = dd(twt[b:b + 1], params["mlpw"]) + params["mlpb"]
        q = dd(th, params["wq"]) + params["bq"]
        k = dd(ch, params["wk"]) + params["bk"]
        v = dd(ch, params["wv"]) + params["bv"]
        heads = []
        for hh in range(N_HEADS):
            sl = slice(hh * HEAD_DIM, (hh + 1) * HEAD_DIM)
            sc = jnp.sum(q[:, sl] * k[:, sl], axis=-1, keepdims=True) / scale
            sc = jnp.where(m[:, None] > 0, sc, NEG_INF)
            a = jax.nn.softmax(sc, axis=0)
            heads.append(jnp.sum(a * v[:, sl], axis=0, keepdims=True))
        merged = dd(jnp.concatenate(heads, axis=-1), params["wo"]) + params["bo"]
        outs.append(dd(merged, params["outw"]) + params["outb"])
    return jnp.concatenate(outs, axis=0)


# ----------------------------------- main ---------------------------------------
if __name__ == "__main__":
    key = jax.random.PRNGKey(0)
    kp, kx, kpos, ktgt = jax.random.split(key, 4)
    params = init_params(kp)

    bs, nmax = 4, 8                                               # nmax already pow2
    sizes = [8, 6, 7, 5]                                          # nodes per graph
    batch = jnp.concatenate(
        [jnp.full((s,), i, jnp.int32) for i, s in enumerate(sizes)])
    n_total = int(batch.shape[0])
    condition_x = jax.random.normal(kx, (n_total, COND_CH), jnp.float32)
    condition_pos = 3.0 * jax.random.normal(kpos, (n_total, 3), jnp.float32)
    noitarget = jax.random.normal(ktgt, (bs, TARGET_DIM), jnp.float32)
    t = 0.5                                                       # scalar diffusion time

    # graphs_per_step=2 -> S=2 grid steps: exercises constant-block reuse and keeps
    # both v7x TensorCores fed under dimension_semantics=("parallel",).
    out = dynamics_noi_forward(params, noitarget, t, condition_x, condition_pos,
                               batch, bs, nmax, graphs_per_step=2)
    out = jax.block_until_ready(out)

    ref = reference_forward(params, noitarget, t, condition_x, condition_pos,
                            batch=batch, bs=bs, nmax=nmax)
    err = float(jnp.max(jnp.abs(out - ref)))
    assert out.shape == (bs, TARGET_DIM), out.shape
    # tolerance accounts for the deliberate bf16 MXU operands on the SchNet edge path
    assert err < 2e-2, f"max abs err {err}"
    print("KERNEL_OK")
</pallas_src>

<mosaic_0001>
module attributes {stable_mosaic.version = 11 : i64} {
  func.func @kernel(%arg0: i32, %arg1: memref<1x16x33xf32, #tpu.memory_space<vmem>>, %arg2: memref<1x2x17xf32, #tpu.memory_space<vmem>>, %arg3: memref<2x128x16xbf16, #tpu.memory_space<vmem>>, %arg4: memref<16x128xbf16, #tpu.memory_space<vmem>>, %arg5: memref<592x128xf32, #tpu.memory_space<vmem>>, %arg6: memref<1x2x128xf32, #tpu.memory_space<vmem>>) attributes {dimension_semantics = [#tpu.dimension_semantics<parallel>], iteration_bounds = array<i64: 2>, scalar_prefetch = 0 : i64, scratch_operands = 0 : i64, tpu.core_type = #tpu.core_type<tc>, window_params = [{transform_indices = @transform_0, window_bounds = array<i64: 1, 16, 33>}, {transform_indices = @transform_1, window_bounds = array<i64: 1, 2, 17>}, {pipeline_mode = #tpu.pipeline_mode<synchronous>, transform_indices = @transform_2, window_bounds = array<i64: 2, 128, 16>}, {pipeline_mode = #tpu.pipeline_mode<synchronous>, transform_indices = @transform_3, window_bounds = array<i64: 16, 128>}, {pipeline_mode = #tpu.pipeline_mode<synchronous>, transform_indices = @transform_4, window_bounds = array<i64: 592, 128>}, {transform_indices = @transform_5, window_bounds = array<i64: 1, 2, 128>}]} {
    %c0 = arith.constant 0 : index
    %c0_0 = arith.constant 0 : index
    %c0_1 = arith.constant 0 : index
    %0 = vector.load %arg1[%c0, %c0_0, %c0_1] : memref<1x16x33xf32, #tpu.memory_space<vmem>>, vector<1x16x33xf32>
    %1 = vector.shape_cast %0 : vector<1x16x33xf32> to vector<16x33xf32>
    %2 = vector.extract_strided_slice %1 {offsets = [0, 0], sizes = [16, 28], strides = [1, 1]} : vector<16x33xf32> to vector<16x28xf32>
    %3 = vector.extract_strided_slice %1 {offsets = [0, 28], sizes = [16, 4], strides = [1, 1]} : vector<16x33xf32> to vector<16x4xf32>
    %4 = vector.extract_strided_slice %1 {offsets = [0, 32], sizes = [16, 1], strides = [1, 1]} : vector<16x33xf32> to vector<16x1xf32>
    %c0_2 = arith.constant 0 : index
    %c0_3 = arith.constant 0 : index
    %c0_4 = arith.constant 0 : index
    %5 = vector.load %arg2[%c0_2, %c0_3, %c0_4] : memref<1x2x17xf32, #tpu.memory_space<vmem>>, vector<1x2x17xf32>
    %6 = vector.shape_cast %5 : vector<1x2x17xf32> to vector<2x17xf32>
    %c0_5 = arith.constant 0 : index
    %c0_6 = arith.constant 0 : index
    %c0_7 = arith.constant 0 : index
    %7 = vector.load %arg3[%c0_5, %c0_6, %c0_7] : memref<2x128x16xbf16, #tpu.memory_space<vmem>>, vector<1x128x16xbf16>
    %8 = vector.shape_cast %7 : vector<1x128x16xbf16> to vector<128x16xbf16>
    %c1 = arith.constant 1 : index
    %c0_8 = arith.constant 0 : index
    %c0_9 = arith.constant 0 : index
    %9 = vector.load %arg3[%c1, %c0_8, %c0_9] : memref<2x128x16xbf16, #tpu.memory_space<vmem>>, vector<1x128x16xbf16>
    %10 = vector.shape_cast %9 : vector<1x128x16xbf16> to vector<128x16xbf16>
    %c0_10 = arith.constant 0 : index
    %c0_11 = arith.constant 0 : index
    %11 = vector.load %arg4[%c0_10, %c0_11] : memref<16x128xbf16, #tpu.memory_space<vmem>>, vector<16x128xbf16>
    %12 = arith.extf %10 : vector<128x16xbf16> to vector<128x16xf32>
    %cst = arith.constant dense<0.000000e+00> : vector<128x4xf32>
    %13 = tpu.matmul %12, %3, %cst {dimension_numbers = #tpu.dot_dimension_numbers<[1], [0], [0], [1], [0, 0, 1, 1], [], []>} : vector<128x16xf32>, vector<16x4xf32>, vector<128x4xf32> -> vector<128x4xf32>
    %14 = arith.mulf %13, %13 : vector<128x4xf32>
    %cst_12 = arith.constant dense<0.000000e+00> : vector<128xf32>
    %15 = vector.multi_reduction <add>, %14, %cst_12 [1] : vector<128x4xf32> to vector<128xf32>
    %16 = vector.shape_cast %15 : vector<128xf32> to vector<128x1xf32>
    %17 = math.sqrt %16 : vector<128x1xf32>
    %cst_13 = arith.constant 2.500000e+01 : f32
    %18 = vector.broadcast %cst_13 : f32 to vector<128x1xf32>
    %19 = arith.cmpf olt, %16, %18 : vector<128x1xf32>
    %20 = arith.extui %19 : vector<128x1xi1> to vector<128x1xi32>
    %21 = arith.sitofp %20 : vector<128x1xi32> to vector<128x1xf32>
    %c0_14 = arith.constant 0 : index
    %c0_15 = arith.constant 0 : index
    %22 = vector.load %arg5[%c0_14, %c0_15] : memref<592x128xf32, #tpu.memory_space<vmem>>, vector<1x16xf32>
    %23 = vector.broadcast %17 : vector<128x1xf32> to vector<128x16xf32>
    %24 = vector.broadcast %22 : vector<1x16xf32> to vector<128x16xf32>
    %25 = arith.subf %23, %24 : vector<128x16xf32>
    %26 = arith.mulf %25, %25 : vector<128x16xf32>
    %cst_16 = arith.constant -4.500000e+00 : f32
    %27 = vector.broadcast %cst_16 : f32 to vector<128x16xf32>
    %28 = arith.mulf %27, %26 : vector<128x16xf32>
    %29 = math.exp %28 : vector<128x16xf32>
    %30 = arith.truncf %29 : vector<128x16xf32> to vector<128x16xbf16>
    %c8 = arith.constant 8 : index
    %c0_17 = arith.constant 0 : index
    %31 = vector.load %arg5[%c8, %c0_17] : memref<592x128xf32, #tpu.memory_space<vmem>>, vector<16x32xf32>
    %32 = arith.truncf %31 : vector<16x32xf32> to vector<16x32xbf16>
    %cst_18 = arith.constant dense<0.000000e+00> : vector<128x32xf32>
    %33 = tpu.matmul %30, %32, %cst_18 {dimension_numbers = #tpu.dot_dimension_numbers<[1], [0], [0], [1], [0, 0, 1, 1], [], []>} : vector<128x16xbf16>, vector<16x32xbf16>, vector<128x32xf32> -> vector<128x32xf32>
    %c24 = arith.constant 24 : index
    %c0_19 = arith.constant 0 : index
    %34 = vector.load %arg5[%c24, %c0_19] : memref<592x128xf32, #tpu.memory_space<vmem>>, vector<1x32xf32>
    %35 = vector.broadcast %34 : vector<1x32xf32> to vector<128x32xf32>
    %36 = arith.addf %33, %35 : vector<128x32xf32>
    %cst_20 = arith.constant 0.000000e+00 : f32
    %37 = vector.broadcast %cst_20 : f32 to vector<128x32xf32>
    %38 = arith.maximumf %36, %37 : vector<128x32xf32>
    %39 = vector.broadcast %cst_20 : f32 to vector<128x32xf32>
    %40 = arith.subf %36, %39 : vector<128x32xf32>
    %41 = arith.cmpf one, %40, %40 : vector<128x32xf32>
    %42 = vector.broadcast %cst_20 : f32 to vector<128x32xf32>
    %43 = arith.addf %36, %42 : vector<128x32xf32>
    %44 = math.absf %40 : vector<128x32xf32>
    %cst_21 = arith.constant 0.000000e+00 : f32
    %45 = vector.broadcast %cst_21 : f32 to vector<128x32xf32>
    %46 = arith.subf %45, %44 : vector<128x32xf32>
    %47 = math.exp %46 : vector<128x32xf32>
    %48 = math.log1p %47 : vector<128x32xf32>
    %49 = arith.addf %38, %48 : vector<128x32xf32>
    %50 = arith.select %41, %43, %49 : vector<128x32xi1>, vector<128x32xf32>
    %cst_22 = arith.constant 0.693147182 : f32
    %51 = vector.broadcast %cst_22 : f32 to vector<128x32xf32>
    %52 = arith.subf %50, %51 : vector<128x32xf32>
    %53 = arith.truncf %52 : vector<128x32xf32> to vector<128x32xbf16>
    %c32 = arith.constant 32 : index
    %c0_23 = arith.constant 0 : index
    %54 = vector.load %arg5[%c32, %c0_23] : memref<592x128xf32, #tpu.memory_space<vmem>>, vector<32x32xf32>
    %55 = arith.truncf %54 : vector<32x32xf32> to vector<32x32xbf16>
    %cst_24 = arith.constant dense<0.000000e+00> : vector<128x32xf32>
    %56 = tpu.matmul %53, %55, %cst_24 {dimension_numbers = #tpu.dot_dimension_numbers<[1], [0], [0], [1], [0, 0, 1, 1], [], []>} : vector<128x32xbf16>, vector<32x32xbf16>, vector<128x32xf32> -> vector<128x32xf32>
    %c64 = arith.constant 64 : index
    %c0_25 = arith.constant 0 : index
    %57 = vector.load %arg5[%c64, %c0_25] : memref<592x128xf32, #tpu.memory_space<vmem>>, vector<1x32xf32>
    %58 = vector.broadcast %57 : vector<1x32xf32> to vector<128x32xf32>
    %59 = arith.addf %56, %58 : vector<128x32xf32>
    %60 = vector.broadcast %21 : vector<128x1xf32> to vector<128x32xf32>
    %61 = arith.mulf %59, %60 : vector<128x32xf32>
    %c72 = arith.constant 72 : index
    %c0_26 = arith.constant 0 : index
    %62 = vector.load %arg5[%c72, %c0_26] : memref<592x128xf32, #tpu.memory_space<vmem>>, vector<28x32xf32>
    %cst_27 = arith.constant dense<0.000000e+00> : vector<16x32xf32>
    %63 = tpu.matmul %2, %62, %cst_27 {dimension_numbers = #tpu.dot_dimension_numbers<[1], [0], [0], [1], [0, 0, 1, 1], [], []>} : vector<16x28xf32>, vector<28x32xf32>, vector<16x32xf32> -> vector<16x32xf32>
    %64 = arith.truncf %63 : vector<16x32xf32> to vector<16x32xbf16>
    %cst_28 = arith.constant dense<0.000000e+00> : vector<128x32xf32>
    %65 = tpu.matmul %8, %64, %cst_28 {dimension_numbers = #tpu.dot_dimension_numbers<[1], [0], [0], [1], [0, 0, 1, 1], [], []>} : vector<128x16xbf16>, vector<16x32xbf16>, vector<128x32xf32> -> vector<128x32xf32>
    %66 = arith.mulf %61, %65 : vector<128x32xf32>
    %67 = arith.truncf %66 : vector<128x32xf32> to vector<128x32xbf16>
    %cst_29 = arith.constant dense<0.000000e+00> : vector<16x32xf32>
    %68 = tpu.matmul %11, %67, %cst_29 {dimension_numbers = #tpu.dot_dimension_numbers<[1], [0], [0], [1], [0, 0, 1, 1], [], []>} : vector<16x128xbf16>, vector<128x32xbf16>, vector<16x32xf32> -> vector<16x32xf32>
    %c104 = arith.constant 104 : index
    %c0_30 = arith.constant 0 : index
    %69 = vector.load %arg5[%c104, %c0_30] : memref<592x128xf32, #tpu.memory_space<vmem>>, vector<32x28xf32>
    %cst_31 = arith.constant dense<0.000000e+00> : vector<16x28xf32>
    %70 = tpu.matmul %68, %69, %cst_31 {dimension_numbers = #tpu.dot_dimension_numbers<[1], [0], [0], [1], [0, 0, 1, 1], [], []>} : vector<16x32xf32>, vector<32x28xf32>, vector<16x28xf32> -> vector<16x28xf32>
    %c136 = arith.constant 136 : index
    %c0_32 = arith.constant 0 : index
    %71 = vector.load %arg5[%c136, %c0_32] : memref<592x128xf32, #tpu.memory_space<vmem>>, vector<1x28xf32>
    %72 = vector.broadcast %71 : vector<1x28xf32> to vector<16x28xf32>
    %73 = arith.addf %70, %72 : vector<16x28xf32>
    %cst_33 = arith.constant 0.000000e+00 : f32
    %74 = vector.broadcast %cst_33 : f32 to vector<16x28xf32>
    %75 = arith.maximumf %73, %74 : vector<16x28xf32>
    %76 = vector.broadcast %cst_33 : f32 to vector<16x28xf32>
    %77 = arith.subf %73, %76 : vector<16x28xf32>
    %78 = arith.cmpf one, %77, %77 : vector<16x28xf32>
    %79 = vector.broadcast %cst_33 : f32 to vector<16x28xf32>
    %80 = arith.addf %73, %79 : vector<16x28xf32>
    %81 = math.absf %77 : vector<16x28xf32>
    %cst_34 = arith.constant 0.000000e+00 : f32
    %82 = vector.broadcast %cst_34 : f32 to vector<16x28xf32>
    %83 = arith.subf %82, %81 : vector<16x28xf32>
    %84 = math.exp %83 : vector<16x28xf32>
    %85 = math.log1p %84 : vector<16x28xf32>
    %86 = arith.addf %75, %85 : vector<16x28xf32>
    %87 = arith.select %78, %80, %86 : vector<16x28xi1>, vector<16x28xf32>
    %cst_35 = arith.constant 0.693147182 : f32
    %88 = vector.broadcast %cst_35 : f32 to vector<16x28xf32>
    %89 = arith.subf %87, %88 : vector<16x28xf32>
    %c144 = arith.constant 144 : index
    %c0_36 = arith.constant 0 : index
    %90 = vector.load %arg5[%c144, %c0_36] : memref<592x128xf32, #tpu.memory_space<vmem>>, vector<28x28xf32>
    %cst_37 = arith.constant dense<0.000000e+00> : vector<16x28xf32>
    %91 = tpu.matmul %89, %90, %cst_37 {dimension_numbers = #tpu.dot_dimension_numbers<[1], [0], [0], [1], [0, 0, 1, 1], [], []>} : vector<16x28xf32>, vector<28x28xf32>, vector<16x28xf32> -> vector<16x28xf32>
    %92 = arith.addf %2, %91 : vector<16x28xf32>
    %c176 = arith.constant 176 : index
    %c0_38 = arith.constant 0 : index
    %93 = vector.load %arg5[%c176, %c0_38] : memref<592x128xf32, #tpu.memory_space<vmem>>, vector<1x28xf32>
    %94 = vector.broadcast %93 : vector<1x28xf32> to vector<16x28xf32>
    %95 = arith.addf %92, %94 : vector<16x28xf32>
    %c184 = arith.constant 184 : index
    %c0_39 = arith.constant 0 : index
    %96 = vector.load %arg5[%c184, %c0_39] : memref<592x128xf32, #tpu.memory_space<vmem>>, vector<16x32xf32>
    %97 = arith.truncf %96 : vector<16x32xf32> to vector<16x32xbf16>
    %cst_40 = arith.constant dense<0.000000e+00> : vector<128x32xf32>
    %98 = tpu.matmul %30, %97, %cst_40 {dimension_numbers = #tpu.dot_dimension_numbers<[1], [0], [0], [1], [0, 0, 1, 1], [], []>} : vector<128x16xbf16>, vector<16x32xbf16>, vector<128x32xf32> -> vector<128x32xf32>
    %c200 = arith.constant 200 : index
    %c0_41 = arith.constant 0 : index
    %99 = vector.load %arg5[%c200, %c0_41] : memref<592x128xf32, #tpu.memory_space<vmem>>, vector<1x32xf32>
    %100 = vector.broadcast %99 : vector<1x32xf32> to vector<128x32xf32>
    %101 = arith.addf %98, %100 : vector<128x32xf32>
    %cst_42 = arith.constant 0.000000e+00 : f32
    %102 = vector.broadcast %cst_42 : f32 to vector<128x32xf32>
    %103 = arith.maximumf %101, %102 : vector<128x32xf32>
    %104 = vector.broadcast %cst_42 : f32 to vector<128x32xf32>
    %105 = arith.subf %101, %104 : vector<128x32xf32>
    %106 = arith.cmpf one, %105, %105 : vector<128x32xf32>
    %107 = vector.broadcast %cst_42 : f32 to vector<128x32xf32>
    %108 = arith.addf %101, %107 : vector<128x32xf32>
    %109 = math.absf %105 : vector<128x32xf32>
    %cst_43 = arith.constant 0.000000e+00 : f32
    %110 = vector.broadcast %cst_43 : f32 to vector<128x32xf32>
    %111 = arith.subf %110, %109 : vector<128x32xf32>
    %112 = math.exp %111 : vector<128x32xf32>
    %113 = math.log1p %112 : vector<128x32xf32>
    %114 = arith.addf %103, %113 : vector<128x32xf32>
    %115 = arith.select %106, %108, %114 : vector<128x32xi1>, vector<128x32xf32>
    %cst_44 = arith.constant 0.693147182 : f32
    %116 = vector.broadcast %cst_44 : f32 to vector<128x32xf32>
    %117 = arith.subf %115, %116 : vector<128x32xf32>
    %118 = arith.truncf %117 : vector<128x32xf32> to vector<128x32xbf16>
    %c208 = arith.constant 208 : index
    %c0_45 = arith.constant 0 : index
    %119 = vector.load %arg5[%c208, %c0_45] : memref<592x128xf32, #tpu.memory_space<vmem>>, vector<32x32xf32>
    %120 = arith.truncf %119 : vector<32x32xf32> to vector<32x32xbf16>
    %cst_46 = arith.constant dense<0.000000e+00> : vector<128x32xf32>
    %121 = tpu.matmul %118, %120, %cst_46 {dimension_numbers = #tpu.dot_dimension_numbers<[1], [0], [0], [1], [0, 0, 1, 1], [], []>} : vector<128x32xbf16>, vector<32x32xbf16>, vector<128x32xf32> -> vector<128x32xf32>
    %c240 = arith.constant 240 : index
    %c0_47 = arith.constant 0 : index
    %122 = vector.load %arg5[%c240, %c0_47] : memref<592x128xf32, #tpu.memory_space<vmem>>, vector<1x32xf32>
    %123 = vector.broadcast %122 : vector<1x32xf32> to vector<128x32xf32>
    %124 = arith.addf %121, %123 : vector<128x32xf32>
    %125 = vector.broadcast %21 : vector<128x1xf32> to vector<128x32xf32>
    %126 = arith.mulf %124, %125 : vector<128x32xf32>
    %c248 = arith.constant 248 : index
    %c0_48 = arith.constant 0 : index
    %127 = vector.load %arg5[%c248, %c0_48] : memref<592x128xf32, #tpu.memory_space<vmem>>, vector<28x32xf32>
    %cst_49 = arith.constant dense<0.000000e+00> : vector<16x32xf32>
    %128 = tpu.matmul %95, %127, %cst_49 {dimension_numbers = #tpu.dot_dimension_numbers<[1], [0], [0], [1], [0, 0, 1, 1], [], []>} : vector<16x28xf32>, vector<28x32xf32>, vector<16x32xf32> -> vector<16x32xf32>
    %129 = arith.truncf %128 : vector<16x32xf32> to vector<16x32xbf16>
    %cst_50 = arith.constant dense<0.000000e+00> : vector<128x32xf32>
    %130 = tpu.matmul %8, %129, %cst_50 {dimension_numbers = #tpu.dot_dimension_numbers<[1], [0], [0], [1], [0, 0, 1, 1], [], []>} : vector<128x16xbf16>, vector<16x32xbf16>, vector<128x32xf32> -> vector<128x32xf32>
    %131 = arith.mulf %126, %130 : vector<128x32xf32>
    %132 = arith.truncf %131 : vector<128x32xf32> to vector<128x32xbf16>
    %cst_51 = arith.constant dense<0.000000e+00> : vector<16x32xf32>
    %133 = tpu.matmul %11, %132, %cst_51 {dimension_numbers = #tpu.dot_dimension_numbers<[1], [0], [0], [1], [0, 0, 1, 1], [], []>} : vector<16x128xbf16>, vector<128x32xbf16>, vector<16x32xf32> -> vector<16x32xf32>
    %c280 = arith.constant 280 : index
    %c0_52 = arith.constant 0 : index
    %134 = vector.load %arg5[%c280, %c0_52] : memref<592x128xf32, #tpu.memory_space<vmem>>, vector<32x28xf32>
    %cst_53 = arith.constant dense<0.000000e+00> : vector<16x28xf32>
    %135 = tpu.matmul %133, %134, %cst_53 {dimension_numbers = #tpu.dot_dimension_numbers<[1], [0], [0], [1], [0, 0, 1, 1], [], []>} : vector<16x32xf32>, vector<32x28xf32>, vector<16x28xf32> -> vector<16x28xf32>
    %c312 = arith.constant 312 : index
    %c0_54 = arith.constant 0 : index
    %136 = vector.load %arg5[%c312, %c0_54] : memref<592x128xf32, #tpu.memory_space<vmem>>, vector<1x28xf32>
    %137 = vector.broadcast %136 : vector<1x28xf32> to vector<16x28xf32>
    %138 = arith.addf %135, %137 : vector<16x28xf32>
    %cst_55 = arith.constant 0.000000e+00 : f32
    %139 = vector.broadcast %cst_55 : f32 to vector<16x28xf32>
    %140 = arith.maximumf %138, %139 : vector<16x28xf32>
    %141 = vector.broadcast %cst_55 : f32 to vector<16x28xf32>
    %142 = arith.subf %138, %141 : vector<16x28xf32>
    %143 = arith.cmpf one, %142, %142 : vector<16x28xf32>
    %144 = vector.broadcast %cst_55 : f32 to vector<16x28xf32>
    %145 = arith.addf %138, %144 : vector<16x28xf32>
    %146 = math.absf %142 : vector<16x28xf32>
    %cst_56 = arith.constant 0.000000e+00 : f32
    %147 = vector.broadcast %cst_56 : f32 to vector<16x28xf32>
    %148 = arith.subf %147, %146 : vector<16x28xf32>
    %149 = math.exp %148 : vector<16x28xf32>
    %150 = math.log1p %149 : vector<16x28xf32>
    %151 = arith.addf %140, %150 : vector<16x28xf32>
    %152 = arith.select %143, %145, %151 : vector<16x28xi1>, vector<16x28xf32>
    %cst_57 = arith.constant 0.693147182 : f32
    %153 = vector.broadcast %cst_57 : f32 to vector<16x28xf32>
    %154 = arith.subf %152, %153 : vector<16x28xf32>
    %c320 = arith.constant 320 : index
    %c0_58 = arith.constant 0 : index
    %155 = vector.load %arg5[%c320, %c0_58] : memref<592x128xf32, #tpu.memory_space<vmem>>, vector<28x28xf32>
    %cst_59 = arith.constant dense<0.000000e+00> : vector<16x28xf32>
    %156 = tpu.matmul %154, %155, %cst_59 {dimension_numbers = #tpu.dot_dimension_numbers<[1], [0], [0], [1], [0, 0, 1, 1], [], []>} : vector<16x28xf32>, vector<28x28xf32>, vector<16x28xf32> -> vector<16x28xf32>
    %157 = arith.addf %95, %156 : vector<16x28xf32>
    %c352 = arith.constant 352 : index
    %c0_60 = arith.constant 0 : index
    %158 = vector.load %arg5[%c352, %c0_60] : memref<592x128xf32, #tpu.memory_space<vmem>>, vector<1x28xf32>
    %159 = vector.broadcast %158 : vector<1x28xf32> to vector<16x28xf32>
    %160 = arith.addf %157, %159 : vector<16x28xf32>
    %c360 = arith.constant 360 : index
    %c0_61 = arith.constant 0 : index
    %161 = vector.load %arg5[%c360, %c0_61] : memref<592x128xf32, #tpu.memory_space<vmem>>, vector<28x128xf32>
    %cst_62 = arith.constant dense<0.000000e+00> : vector<16x128xf32>
    %162 = tpu.matmul %160, %161, %cst_62 {dimension_numbers = #tpu.dot_dimension_numbers<[1], [0], [0], [1], [0, 0, 1, 1], [], []>} : vector<16x28xf32>, vector<28x128xf32>, vector<16x128xf32> -> vector<16x128xf32>
    %c392 = arith.constant 392 : index
    %c0_63 = arith.constant 0 : index
    %163 = vector.load %arg5[%c392, %c0_63] : memref<592x128xf32, #tpu.memory_space<vmem>>, vector<1x128xf32>
    %164 = vector.broadcast %163 : vector<1x128xf32> to vector<16x128xf32>
    %165 = arith.addf %162, %164 : vector<16x128xf32>
    %166 = vector.extract_strided_slice %165 {offsets = [0, 0], sizes = [16, 64], strides = [1, 1]} : vector<16x128xf32> to vector<16x64xf32>
    %167 = vector.extract_strided_slice %165 {offsets = [0, 64], sizes = [16, 64], strides = [1, 1]} : vector<16x128xf32> to vector<16x64xf32>
    %c400 = arith.constant 400 : index
    %c0_64 = arith.constant 0 : index
    %168 = vector.load %arg5[%c400, %c0_64] : memref<592x128xf32, #tpu.memory_space<vmem>>, vector<17x64xf32>
    %cst_65 = arith.constant dense<0.000000e+00> : vector<2x64xf32>
    %169 = tpu.matmul %6, %168, %cst_65 {dimension_numbers = #tpu.dot_dimension_numbers<[1], [0], [0], [1], [0, 0, 1, 1], [], []>} : vector<2x17xf32>, vector<17x64xf32>, vector<2x64xf32> -> vector<2x64xf32>
    %c424 = arith.constant 424 : index
    %c0_66 = arith.constant 0 : index
    %170 = vector.load %arg5[%c424, %c0_66] : memref<592x128xf32, #tpu.memory_space<vmem>>, vector<1x64xf32>
    %171 = vector.broadcast %170 : vector<1x64xf32> to vector<2x64xf32>
    %172 = arith.addf %169, %171 : vector<2x64xf32>
    %c576 = arith.constant 576 : index
    %c0_67 = arith.constant 0 : index
    %173 = vector.load %arg5[%c576, %c0_67] : memref<592x128xf32, #tpu.memory_space<vmem>>, vector<16x2xf32>
    %cst_68 = arith.constant dense<0.000000e+00> : vector<16x64xf32>
    %174 = tpu.matmul %173, %172, %cst_68 {dimension_numbers = #tpu.dot_dimension_numbers<[1], [0], [0], [1], [0, 0, 1, 1], [], []>} : vector<16x2xf32>, vector<2x64xf32>, vector<16x64xf32> -> vector<16x64xf32>
    %175 = arith.mulf %174, %166 : vector<16x64xf32>
    %c504 = arith.constant 504 : index
    %c0_69 = arith.constant 0 : index
    %176 = vector.load %arg5[%c504, %c0_69] : memref<592x128xf32, #tpu.memory_space<vmem>>, vector<64x64xf32>
    %cst_70 = arith.constant dense<0.000000e+00> : vector<16x64xf32>
    %177 = tpu.matmul %175, %176, %cst_70 {dimension_numbers = #tpu.dot_dimension_numbers<[1], [0], [0], [1], [0, 0, 1, 1], [], []>} : vector<16x64xf32>, vector<64x64xf32>, vector<16x64xf32> -> vector<16x64xf32>
    %cst_71 = arith.constant 2.500000e-01 : f32
    %178 = vector.broadcast %cst_71 : f32 to vector<16x64xf32>
    %179 = arith.mulf %177, %178 : vector<16x64xf32>
    %cst_72 = arith.constant 0.000000e+00 : f32
    %180 = vector.broadcast %cst_72 : f32 to vector<16x1xf32>
    %181 = arith.cmpf ogt, %4, %180 : vector<16x1xf32>
    %cst_73 = arith.constant -1.000000e+10 : f32
    %182 = vector.shape_cast %181 : vector<16x1xi1> to vector<16x1xi1>
    %183 = vector.broadcast %182 : vector<16x1xi1> to vector<16x64xi1>
    %184 = vector.broadcast %cst_73 : f32 to vector<16x64xf32>
    %185 = arith.select %183, %179, %184 : vector<16x64xi1>, vector<16x64xf32>
    %cst_74 = arith.constant dense<0xFF800000> : vector<64xf32>
    %186 = vector.multi_reduction <maximumf>, %185, %cst_74 [0] : vector<16x64xf32> to vector<64xf32>
    %187 = vector.shape_cast %186 : vector<64xf32> to vector<1x64xf32>
    %188 = vector.broadcast %187 : vector<1x64xf32> to vector<16x64xf32>
    %189 = arith.subf %185, %188 : vector<16x64xf32>
    %190 = math.exp %189 : vector<16x64xf32>
    %191 = arith.mulf %190, %167 : vector<16x64xf32>
    %192 = tpu.concatenate %190, %191 in 1 : vector<16x64xf32>, vector<16x64xf32> -> vector<16x128xf32>
    %c568 = arith.constant 568 : index
    %c0_75 = arith.constant 0 : index
    %193 = vector.load %arg5[%c568, %c0_75] : memref<592x128xf32, #tpu.memory_space<vmem>>, vector<2x16xf32>
    %cst_76 = arith.constant dense<0.000000e+00> : vector<2x128xf32>
    %194 = tpu.matmul %193, %192, %cst_76 {dimension_numbers = #tpu.dot_dimension_numbers<[1], [0], [0], [1], [0, 0, 1, 1], [], []>} : vector<2x16xf32>, vector<16x128xf32>, vector<2x128xf32> -> vector<2x128xf32>
    %195 = vector.extract_strided_slice %194 {offsets = [0, 0], sizes = [2, 64], strides = [1, 1]} : vector<2x128xf32> to vector<2x64xf32>
    %cst_77 = arith.constant 9.99999968E-21 : f32
    %196 = vector.broadcast %cst_77 : f32 to vector<2x64xf32>
    %197 = arith.maximumf %195, %196 : vector<2x64xf32>
    %198 = vector.extract_strided_slice %194 {offsets = [0, 64], sizes = [2, 64], strides = [1, 1]} : vector<2x128xf32> to vector<2x64xf32>
    %199 = tpu.reciprocal %197 {approx = true} : vector<2x64xf32> -> vector<2x64xf32>
    %200 = arith.mulf %198, %199 : vector<2x64xf32>
    %c432 = arith.constant 432 : index
    %c0_78 = arith.constant 0 : index
    %201 = vector.load %arg5[%c432, %c0_78] : memref<592x128xf32, #tpu.memory_space<vmem>>, vector<64x128xf32>
    %cst_79 = arith.constant dense<0.000000e+00> : vector<2x128xf32>
    %202 = tpu.matmul %200, %201, %cst_79 {dimension_numbers = #tpu.dot_dimension_numbers<[1], [0], [0], [1], [0, 0, 1, 1], [], []>} : vector<2x64xf32>, vector<64x128xf32>, vector<2x128xf32> -> vector<2x128xf32>
    %c496 = arith.constant 496 : index
    %c0_80 = arith.constant 0 : index
    %203 = vector.load %arg5[%c496, %c0_80] : memref<592x128xf32, #tpu.memory_space<vmem>>, vector<1x128xf32>
    %204 = vector.broadcast %203 : vector<1x128xf32> to vector<2x128xf32>
    %205 = arith.addf %202, %204 : vector<2x128xf32>
    %c0_81 = arith.constant 0 : index
    %c0_82 = arith.constant 0 : index
    %c0_83 = arith.constant 0 : index
    %206 = vector.load %arg6[%c0_81, %c0_82, %c0_83] : memref<1x2x128xf32, #tpu.memory_space<vmem>>, vector<1x2x128xf32>
    %207 = vector.shape_cast %206 : vector<1x2x128xf32> to vector<2x128xf32>
    %208 = vector.shape_cast %205 : vector<2x128xf32> to vector<1x2x128xf32>
    tpu.vector_store %arg6[%c0_81, %c0_82, %c0_83], %208 {strides = array<i32>} : memref<1x2x128xf32, #tpu.memory_space<vmem>>, vector<1x2x128xf32>,
    return
  }
  func.func @transform_0(%arg0: i32) -> (i32, i32, i32) {
    %c0_i32 = arith.constant 0 : i32
    %c0_i32_0 = arith.constant 0 : i32
    %c0_i32_1 = arith.constant 0 : i32
    return %arg0, %c0_i32, %c0_i32_0 : i32, i32, i32
  }
  func.func @transform_1(%arg0: i32) -> (i32, i32, i32) {
    %c0_i32 = arith.constant 0 : i32
    %c0_i32_0 = arith.constant 0 : i32
    %c0_i32_1 = arith.constant 0 : i32
    return %arg0, %c0_i32, %c0_i32_0 : i32, i32, i32
  }
  func.func @transform_2(%arg0: i32) -> (i32, i32, i32) {
    %c0_i32 = arith.constant 0 : i32
    %c0_i32_0 = arith.constant 0 : i32
    %c0_i32_1 = arith.constant 0 : i32
    %c0_i32_2 = arith.constant 0 : i32
    return %c0_i32, %c0_i32_0, %c0_i32_1 : i32, i32, i32
  }
  func.func @transform_3(%arg0: i32) -> (i32, i32) {
    %c0_i32 = arith.constant 0 : i32
    %c0_i32_0 = arith.constant 0 : i32
    %c0_i32_1 = arith.constant 0 : i32
    return %c0_i32, %c0_i32_0 : i32, i32
  }
  func.func @transform_4(%arg0: i32) -> (i32, i32) {
    %c0_i32 = arith.constant 0 : i32
    %c0_i32_0 = arith.constant 0 : i32
    %c0_i32_1 = arith.constant 0 : i32
    return %c0_i32, %c0_i32_0 : i32, i32
  }
  func.func @transform_5(%arg0: i32) -> (i32, i32, i32) {
    %c0_i32 = arith.constant 0 : i32
    %c0_i32_0 = arith.constant 0 : i32
    %c0_i32_1 = arith.constant 0 : i32
    return %arg0, %c0_i32, %c0_i32_0 : i32, i32, i32
  }
}

</mosaic_0001>

<bundles_post_ra>
// kernel: tpu_custom_call.1
= control target key start
LH: loop header
LB: loop body
LE: loop exit
PB: predicated region body
PF: predicated region fallthrough
CT: control target
= control target key end

     0   :  { %10 = vsyncpa [#allocation3], 0  ;;  %s4383_s0 = inlined_call_operand.vmem [shape: f32[2,16,33], index: 0, kind: input, shape index: {}]   ;;  %s4384_s1 = inlined_call_operand.vmem [shape: f32[2,2,17], index: 1, kind: input, shape index: {}]   ;;  %s4385_s2 = inlined_call_operand.vmem [shape: bf16[2,128,16], index: 2, kind: input, shape index: {}]   ;;  %s4386_s3 = inlined_call_operand.vmem [shape: bf16[16,128], index: 3, kind: input, shape index: {}]   ;;  %s4387_s4 = inlined_call_operand.hbm [shape: f32[592,128], index: 4, kind: input, shape index: {}]   ;;  %s4388_s5 = inlined_call_operand.hbm [shape: f32[2,2,128], index: 5, kind: output, shape index: {}]  }
   0x1   :  { %11 = vsyncpa [#allocation4], 0 }
   0x2   :  { %13 = vsyncpa [#allocation4 + $0x1], 0  ;;  %s3395_s18 = smov 0   ;;  %s3397_s19 = smov 0  }
   0x3   :  { %s3399_s20 = smov 0   ;;  %s3401_s21 = smov 0  }
   0x4 LB: > { %s3416_s22 = sadd.s32 4294967295, %s3355_s21   ;;  %s2692_s23 = sadd.s32 4294967294, %s3355_s21   ;;  %s3355_s21 = sphi %s3401_s21, %s4406_s21   ;;  %s3351_s20 = sphi %s3399_s20, %s4405_s20   ;;  %s3347_s19 = sphi %s3397_s19, %s4404_s19   ;;  %s3343_s18 = sphi %s3395_s18, %s4403_s18  }
   0x5   : > { %s3420_s24 = sadd.s32 1, %s3355_s21   ;;  %s141_s25 = sadd.s32 1, %s3351_s20 }
   0x6   : > { %s138_s26 = ssub.s32 %s3355_s21, %s3420_s24  ;;  %p151_p0 = scmp.ne.s32.totalorder %s3351_s20, %s3347_s19 }
   0x7   : > { %p139_p1 = scmp.eq.s32.totalorder %s138_s26, 0  ;;  %p152_p2 = scmp.eq.s32.totalorder %s3416_s22, 1 }
   0x8   : > { %p157_p3 = scmp.ne.s32.totalorder %s3347_s19, %s3343_s18  ;;  %p158_p4 = scmp.eq.s32.totalorder %s2692_s23, 1 }
   0x9   : > { %s3431_s27 = scalar_select %p139_p1, %s3351_s20, %s141_s25  }
   0xa   : > { %p3433_p5 = por %p152_p2, %p151_p0  ;;  %p3437_p6 = por %p158_p4, %p157_p3 }
   0xb   : > { %p2693_p7 = scmp.ge.s32.totalorder %s3355_s21, 1  ;;  %p165_p8 = scmp.lt.s32.totalorder %s3355_s21, 3 }
   0xc   : > { %p2966_p9 = scmp.eq.s32.totalorder %s3416_s22, 0  ;;  %s182_s7 = sshll.u32 %s4387_s4, 4  ;;  %s183_s7 = int_to_ptr.hbm [resolvable:$true] %s182_s7 }
   0xd   : > { %p166_p10 = pnand %p2693_p7, %p165_p8  ;;  %s3357_s8 = smov [#allocation2]  }
   0xe   : > { %s184_s9 = sshll.u32 %s3357_s8, 4  ;;  %s3358_s10 = smov 128   ;;  %s185_s9 = int_to_ptr.vmem [resolvable:$true] %s184_s9 }
   0xf   : > { %p2958_p11 = pneg %p166_p10  ;;  %s3359_s11 = smov 8  }
  0x10   : > { %215 = sbr.rel (%p166_p10) target bundleno = 3239 (0xca7), region = 40 }
  0x11   : > { %p2959_p12 = pnand %p2966_p9, %p2958_p11 }
  0x13   : > { %2961 = dma.hbm_to_vmem [thread:$0]  (!%p2959_p12), %s183_s7, 9472, %s185_s9, [#allocation3], %s3358_s10, %s3358_s10, %s3359_s11  }
  0x15   : > { %3334 = dma.done.wait (%p2966_p9), [#allocation3], 9472  }
  0x16   : > { %3336 = vsyncadd (%p2966_p9), [#allocation3], 4294957824  ;;  %p248_p13 = scmp.lt.s32.totalorder %s3416_s22, 1  ;;  %s3360_s17 = smov 100   ;;  %v2944_v3 = vld [vmem:[%s4385_s2 + $0x40] sm:$0xff]   ;;  %vm320_vm0 = vcmask 130048  }
  0x17   : > { %v2914_v6 = vunpack.c.l.bf16 %v2944_v3  ;;  %v2915_v8 = vunpack.c.h.bf16 %v2944_v3  ;;  %v2945_v9 = vld [vmem:[%s4385_s2 + $0x48] sm:$0xff]   ;;  %v2946_v12 = vld [vmem:[%s4385_s2 + $0x50] sm:$0xff]   ;;  %v2947_v15 = vld [vmem:[%s4385_s2 + $0x58] sm:$0xff]   ;;  %vm450_vm1 = vcmask 31744   ;;  %vm1326_vm4 = vcmask 1043456   ;;  %s3362_s15 = smov 64  }
  0x18   : > { %s3455_s12 = scalar_select %p248_p13, %s3416_s22, 1  ;;  %v2918_v10 = vunpack.c.l.bf16 %v2945_v9  ;;  %v2919_v11 = vunpack.c.h.bf16 %v2945_v9  ;;  %v2922_v13 = vunpack.c.l.bf16 %v2946_v12  ;;  %v2923_v14 = vunpack.c.h.bf16 %v2946_v12  ;;  %v2948_v18 = vld [vmem:[%s4385_s2 + $0x60] sm:$0xff]   ;;  %v2949_v21 = vld [vmem:[%s4385_s2 + $0x68] sm:$0xff]   ;;  %v2950_v24 = vld [vmem:[%s4385_s2 + $0x70] sm:$0xff]  }
  0x19   : > { %v2926_v16 = vunpack.c.l.bf16 %v2947_v15  ;;  %v2927_v17 = vunpack.c.h.bf16 %v2947_v15  ;;  %v2930_v19 = vunpack.c.l.bf16 %v2948_v18  ;;  %v2931_v20 = vunpack.c.h.bf16 %v2948_v18  ;;  %v2951_v27 = vld [vmem:[%s4385_s2 + $0x78] sm:$0xff]   ;;  %s2899_s23 = sshll.u32 %s3416_s22, 1 }
  0x1a   : > { %s2902_s13 = sshll.u32 %s3455_s12, 4  ;;  %v2934_v22 = vunpack.c.l.bf16 %v2949_v21  ;;  %v2935_v23 = vunpack.c.h.bf16 %v2949_v21  ;;  %v2938_v25 = vunpack.c.l.bf16 %v2950_v24  ;;  %v2939_v26 = vunpack.c.h.bf16 %v2950_v24  ;;  %v830_v21 = vld [vmem:[#allocation2 + $0x10] sm:$0xff]  ;;  %s2604_s30 = scalar_lea.hbm %s4388_s5, %s2899_s23 }
  0x1b   : > { %s3461_s16 = scalar_lea.vmem %s4383_s0, %s2902_s13  ;;  %v2942_v28 = vunpack.c.l.bf16 %v2951_v27  ;;  %v2943_v29 = vunpack.c.h.bf16 %v2951_v27  ;;  %vm1321_vm7 = vcmask 228352   ;;  %s2608_s8 = sshll.u32 %s2604_s30, 4  ;;  %s2609_s8 = int_to_ptr.hbm [resolvable:$true] %s2608_s8 }
  0x1c   : > { %v3464_v0 = vld [vmem:[%s3461_s16] sm:$0xff]  ;;  %v3467_v1 = vld [vmem:[%s3461_s16 + $0x8] sm:$0xff]  ;;  %s3303_s10 = sshra.s32 %s2609_s8, 4  ;;  %s3309_s13 = scalar_lea.hbm %s4388_s5, 4  ;;  %s3304_s10 = int_to_ptr.hbm [resolvable:$true] %s3303_s10 }
  0x1d   : > { %v3009_v2 = vpack.i.bf16 %v3464_v0, %v3467_v1  ;;  %p3310_p3 = scmp.lt.s32.totalorder %s3304_s10, %s4388_s5 }
  0x1f   : > { %3010 = vrot.lane.b32.xlu0 %v3009_v2, %s3360_s17 }
  0x91   : > { %v3011_v4 = vpop.permute.xlu0 %3010 }
  0x92   : > { %v3012_v5 = vunpack.i.l.bf16 %v3011_v4  ;;  %v3013_v7 = vunpack.i.h.bf16 %v3011_v4 }
  0x94   : > { %383 = vmatpush.msra.mxu0 %v3012_v5 }
  0x96   : > { %384 = vmatpush.msra.mxu0 %v3013_v7 }
  0x97   : > { %2718 = vmatmul.msk.f32.vlgmr.msra.gmra.mxu0 %vm320_vm0, %v2914_v6 }
  0x9f   : > { %2719 = vmatmul.msk.f32.gmra.mxu0 %vm320_vm0, %v2915_v8 }
  0xa7   : > { %2720 = vmatmul.msk.f32.gmra.mxu0 %vm320_vm0, %v2918_v10 }
  0xaf   : > { %2721 = vmatmul.msk.f32.gmra.mxu0 %vm320_vm0, %v2919_v11 }
  0xb7   : > { %2722 = vmatmul.msk.f32.gmra.mxu0 %vm320_vm0, %v2922_v13 }
  0xbf   : > { %2723 = vmatmul.msk.f32.gmra.mxu0 %vm320_vm0, %v2923_v14 }
  0xc7   : > { %2724 = vmatmul.msk.f32.gmra.mxu0 %vm320_vm0, %v2926_v16 }
  0xcf   : > { %2725 = vmatmul.msk.f32.gmra.mxu0 %vm320_vm0, %v2927_v17 }
  0xd7   : > { %2726 = vmatmul.msk.f32.gmra.mxu0 %vm320_vm0, %v2930_v19 }
  0xdf   : > { %2727 = vmatmul.msk.f32.gmra.mxu0 %vm320_vm0, %v2931_v20  ;;  %v829_v20 = vld [vmem:[#allocation2 + $0x8] sm:$0xff] }
  0xe7   : > { %2728 = vmatmul.msk.f32.gmra.mxu0 %vm320_vm0, %v2934_v22 }
  0xef   : > { %2729 = vmatmul.msk.f32.gmra.mxu0 %vm320_vm0, %v2935_v23  ;;  %v831_v23 = vpack.c.bf16 %v830_v21, %v829_v20 }
  0xf1   : > { %865 = vmatpush.bf16.msra.mxu1 %v831_v23 }
  0xf7   : > { %2730 = vmatmul.msk.f32.gmra.mxu0 %vm320_vm0, %v2938_v25 }
  0xff   : > { %2731 = vmatmul.msk.f32.gmra.mxu0 %vm320_vm0, %v2939_v26 }
 0x107   : > { %2732 = vmatmul.msk.f32.gmra.mxu0 %vm320_vm0, %v2942_v28 }
 0x10f   : > { %2733 = vmatmul.msk.f32.gmra.mxu0 %vm320_vm0, %v2943_v29 }
 0x114   : > { %v386_v30 = vpop.f32.mrf.mxu0 }
 0x115   : > { %v434_v31 = vmul.f32 %v386_v30, %v386_v30 }
 0x117   : > { %v451_v32 = vsel %vm450_vm1, %v434_v31, 0.0 }
 0x118   : > { %452 = vadd.xlane.f32.xlu0 %v451_v32  ;;  %v3539_v32 = vld [vmem:[#allocation2] ss:$0 sm:$0xff] }
 0x11c   : > { %v389_v33 = vpop.f32.mrf.mxu0 }
 0x11d   : > { %v435_v34 = vmul.f32 %v389_v33, %v389_v33 }
 0x11f   : > { %v454_v35 = vsel %vm450_vm1, %v435_v34, 0.0 }
 0x120   : > { %455 = vadd.xlane.f32.xlu1 %v454_v35 }
 0x124   : > { %v392_v36 = vpop.f32.mrf.mxu0 }
 0x125   : > { %v436_v37 = vmul.f32 %v392_v36, %v392_v36 }
 0x127   : > { %v457_v38 = vsel %vm450_vm1, %v436_v37, 0.0 }
 0x128   : > { %458 = vadd.xlane.f32.xlu1 %v457_v38 }
 0x12c   : > { %v395_v39 = vpop.f32.mrf.mxu0 }
 0x12d   : > { %v437_v40 = vmul.f32 %v395_v39, %v395_v39 }
 0x12f   : > { %v460_v41 = vsel %vm450_vm1, %v437_v40, 0.0 }
 0x130   : > { %461 = vadd.xlane.f32.xlu2 %v460_v41 }
 0x134   : > { %v398_v42 = vpop.f32.mrf.mxu0 }
 0x135   : > { %v438_v43 = vmul.f32 %v398_v42, %v398_v42 }
 0x137   : > { %v463_v44 = vsel %vm450_vm1, %v438_v43, 0.0 }
 0x138   : > { %464 = vadd.xlane.f32.xlu2 %v463_v44 }
 0x13c   : > { %v401_v45 = vpop.f32.mrf.mxu0 }
 0x13d   : > { %v439_v46 = vmul.f32 %v401_v45, %v401_v45 }
 0x13f   : > { %v466_v47 = vsel %vm450_vm1, %v439_v46, 0.0  ;;  %v1320_v46 = vld [vmem:[#allocation2 + $0x60] sm:$0xf] }
 0x140   : > { %467 = vadd.xlane.f32.xlu1 %v466_v47  ;;  %2782 = vmatpush.msk.msra.mxu3 %vm1326_vm4, %v1320_v46 }
 0x144   : > { %v404_v48 = vpop.f32.mrf.mxu0 }
 0x145   : > { %v440_v49 = vmul.f32 %v404_v48, %v404_v48 }
 0x147   : > { %v469_v50 = vsel %vm450_vm1, %v440_v49, 0.0 }
 0x148   : > { %470 = vadd.xlane.f32.xlu2 %v469_v50  ;;  %v1319_v50 = vld [vmem:[#allocation2 + $0x58] sm:$0xff] }
 0x149   : > { %1343 = vmatpush.msra.mxu3 %v1319_v50 }
 0x14c   : > { %v407_v51 = vpop.f32.mrf.mxu0 }
 0x14d   : > { %v441_v52 = vmul.f32 %v407_v51, %v407_v51 }
 0x14f   : > { %v472_v53 = vsel %vm450_vm1, %v441_v52, 0.0 }
 0x150   : > { %473 = vadd.xlane.f32.xlu1 %v472_v53 }
 0x154   : > { %v410_v54 = vpop.f32.mrf.mxu0 }
 0x155   : > { %v442_v55 = vmul.f32 %v410_v54, %v410_v54 }
 0x157   : > { %v475_v56 = vsel %vm450_vm1, %v442_v55, 0.0  ;;  %v1318_v55 = vld [vmem:[#allocation2 + $0x50] sm:$0xff] }
 0x158   : > { %476 = vadd.xlane.f32.xlu2 %v475_v56  ;;  %1344 = vmatpush.msra.mxu3 %v1318_v55 }
 0x15c   : > { %v413_v57 = vpop.f32.mrf.mxu0 }
 0x15d   : > { %v443_v58 = vmul.f32 %v413_v57, %v413_v57 }
 0x15f   : > { %v478_v59 = vsel %vm450_vm1, %v443_v58, 0.0 }
 0x160   : > { %479 = vadd.xlane.f32.xlu1 %v478_v59 }
 0x164   : > { %v416_v60 = vpop.f32.mrf.mxu0 }
 0x165   : > { %v444_v61 = vmul.f32 %v416_v60, %v416_v60 }
 0x167   : > { %v481_v62 = vsel %vm450_vm1, %v444_v61, 0.0  ;;  %v1317_v61 = vld [vmem:[#allocation2 + $0x48] sm:$0xff] }
 0x168   : > { %482 = vadd.xlane.f32.xlu2 %v481_v62  ;;  %1345 = vmatpush.msra.mxu3 %v1317_v61 }
 0x169   : > { %2783 = vmatmul.msk.f32.vlgmr.msra.gmra.mxu3 %vm1321_vm7, %v3464_v0 }
 0x16c   : > { %v419_v63 = vpop.f32.mrf.mxu0 }
 0x16d   : > { %v445_v2 = vmul.f32 %v419_v63, %v419_v63 }
 0x16f   : > { %v484_v3 = vsel %vm450_vm1, %v445_v2, 0.0 }
 0x170   : > { %485 = vadd.xlane.f32.xlu1 %v484_v3 }
 0x171   : > { %2784 = vmatmul.msk.f32.gmra.mxu3 %vm1321_vm7, %v3467_v1 }
 0x174   : > { %v422_v4 = vpop.f32.mrf.mxu0 }
 0x175   : > { %v446_v5 = vmul.f32 %v422_v4, %v422_v4 }
 0x177   : > { %v487_v6 = vsel %vm450_vm1, %v446_v5, 0.0 }
 0x178   : > { %488 = vadd.xlane.f32.xlu2 %v487_v6 }
 0x17c   : > { %v425_v7 = vpop.f32.mrf.mxu0 }
 0x17d   : > { %v447_v8 = vmul.f32 %v425_v7, %v425_v7 }
 0x17f   : > { %v490_v9 = vsel %vm450_vm1, %v447_v8, 0.0 }
 0x180   : > { %491 = vadd.xlane.f32.xlu1 %v490_v9 }
 0x184   : > { %v428_v10 = vpop.f32.mrf.mxu0 }
 0x185   : > { %v448_v11 = vmul.f32 %v428_v10, %v428_v10 }
 0x187   : > { %v493_v12 = vsel %vm450_vm1, %v448_v11, 0.0 }
 0x188   : > { %494 = vadd.xlane.f32.xlu2 %v493_v12 }
 0x18b   : > { %v3526_v13 = vpop.xlane.xlu0 %452 }
 0x18c   : > { %3034 = vrsqrt.f32 %v3526_v13  ;;  %v431_v14 = vpop.f32.mrf.mxu0  ;;  %vm506_vm2 = vcmp.eq.f32.partialorder %v3526_v13, inf  ;;  %v509_v33 = vand.u32 2147483648, %v3526_v13  ;;  %vm508_vm3 = vcmp.eq.f32.partialorder %v3526_v13, 0.0 }
 0x18d   : > { %v449_v15 = vmul.f32 %v431_v14, %v431_v14 }
 0x18f   : > { %v496_v16 = vsel %vm450_vm1, %v449_v15, 0.0 }
 0x190   : > { %497 = vadd.xlane.f32.xlu0 %v496_v16 }
 0x192   : > { %v3035_v17 = vpop.eup %3034 }
 0x193   : > { %v500_v18 = vmul.f32 %v3035_v17, %v3526_v13  ;;  %v3531_v19 = vpop.xlane.xlu1 %455 }
 0x194   : > { %3036 = vrsqrt.f32 %v3531_v19  ;;  %vm518_vm5 = vcmp.eq.f32.partialorder %v3531_v19, inf  ;;  %v521_v47 = vand.u32 2147483648, %v3531_v19  ;;  %vm520_vm6 = vcmp.eq.f32.partialorder %v3531_v19, 0.0 }
 0x195   : > { %v501_v22 = vmul.f32 %v3035_v17, %v500_v18 }
 0x197   : > { %v502_v24 = vmul.f32 0.5, %v501_v22 }
 0x199   : > { %v503_v25 = vsub.f32 1.5, %v502_v24 }
 0x19a   : > { %v3037_v26 = vpop.eup %3036 }
 0x19b   : > { %v504_v27 = vmul.f32 %v3035_v17, %v503_v25  ;;  %v512_v28 = vmul.f32 %v3037_v26, %v3531_v19  ;;  %v3535_v29 = vpop.xlane.xlu1 %458 }
 0x19c   : > { %3038 = vrsqrt.f32 %v3535_v29  ;;  %vm530_vm8 = vcmp.eq.f32.partialorder %v3535_v29, inf  ;;  %v533_v4 = vand.u32 2147483648, %v3535_v29  ;;  %vm532_vm9 = vcmp.eq.f32.partialorder %v3535_v29, 0.0 }
 0x19d   : > { %v505_v30 = vmul.f32 %v504_v27, %v3526_v13  ;;  %v513_v31 = vmul.f32 %v3037_v26, %v512_v28 }
 0x19f   : > { %v514_v34 = vmul.f32 0.5, %v513_v31  ;;  %v507_v35 = vsel %vm506_vm2, %v3526_v13, %v505_v30 }
 0x1a0   : > { %v510_v36 = vsel %vm508_vm3, %v509_v33, %v507_v35 }
 0x1a1   : > { %v515_v37 = vsub.f32 1.5, %v514_v34  ;;  %v741_v38 = vsub.f32 %v510_v36, %v3539_v32 }
 0x1a2   : > { %v3039_v39 = vpop.eup %3038 }
 0x1a3   : > { %v516_v40 = vmul.f32 %v3037_v26, %v515_v37  ;;  %v524_v41 = vmul.f32 %v3039_v39, %v3535_v29  ;;  %v3547_v42 = vpop.xlane.xlu2 %461  ;;  %v757_v43 = vmul.f32 %v741_v38, %v741_v38 }
 0x1a4   : > { %3040 = vrsqrt.f32 %v3547_v42  ;;  %vm542_vm10 = vcmp.eq.f32.partialorder %v3547_v42, inf  ;;  %v545_v20 = vand.u32 2147483648, %v3547_v42  ;;  %vm544_vm11 = vcmp.eq.f32.partialorder %v3547_v42, 0.0 }
 0x1a5   : > { %v517_v44 = vmul.f32 %v516_v40, %v3531_v19  ;;  %v525_v45 = vmul.f32 %v3039_v39, %v524_v41  ;;  %v773_v52 = vmul.f32 -4.5, %v757_v43 }
 0x1a7   : > { %v526_v48 = vmul.f32 0.5, %v525_v45  ;;  %v519_v49 = vsel %vm518_vm5, %v3531_v19, %v517_v44  ;;  %v789_v62 = vmul.f32 1.442695, %v773_v52 }
 0x1a8   : > { %v522_v51 = vsel %vm520_vm6, %v521_v47, %v519_v49 }
 0x1a9   : > { %v527_v53 = vsub.f32 1.5, %v526_v48  ;;  %v742_v54 = vsub.f32 %v522_v51, %v3539_v32 }
 0x1aa   : > { %v3041_v56 = vpop.eup %3040 }
 0x1ab   : > { %v528_v57 = vmul.f32 %v3039_v39, %v527_v53  ;;  %v536_v58 = vmul.f32 %v3041_v56, %v3547_v42  ;;  %v3558_v59 = vpop.xlane.xlu2 %464  ;;  %v758_v60 = vmul.f32 %v742_v54, %v742_v54 }
 0x1ac   : > { %3042 = vrsqrt.f32 %v3558_v59  ;;  %vm554_vm12 = vcmp.eq.f32.partialorder %v3558_v59, inf  ;;  %v557_v39 = vand.u32 2147483648, %v3558_v59  ;;  %vm556_vm13 = vcmp.eq.f32.partialorder %v3558_v59, 0.0 }
 0x1ad   : > { %v529_v63 = vmul.f32 %v528_v57, %v3535_v29  ;;  %v537_v2 = vmul.f32 %v3041_v56, %v536_v58  ;;  %v774_v3 = vmul.f32 -4.5, %v758_v60  ;;  %3044 = vpow2.f32 %v789_v62 }
 0x1af   : > { %v538_v5 = vmul.f32 0.5, %v537_v2  ;;  %v791_v6 = vmul.f32 1.442695, %v774_v3  ;;  %v531_v7 = vsel %vm530_vm8, %v3535_v29, %v529_v63 }
 0x1b0   : > { %v534_v8 = vsel %vm532_vm9, %v533_v4, %v531_v7 }
 0x1b1   : > { %v539_v9 = vsub.f32 1.5, %v538_v5  ;;  %3046 = vpow2.f32 %v791_v6  ;;  %v743_v10 = vsub.f32 %v534_v8, %v3539_v32 }
 0x1b2   : > { %v3043_v11 = vpop.eup %3042 }
 0x1b3   : > { %v540_v12 = vmul.f32 %v3041_v56, %v539_v9  ;;  %v548_v0 = vmul.f32 %v3043_v11, %v3558_v59  ;;  %v3570_v14 = vpop.xlane.xlu1 %467  ;;  %v759_v15 = vmul.f32 %v743_v10, %v743_v10  ;;  %v3045_v18 = vpop.eup %3044 }
 0x1b4   : > { %3048 = vrsqrt.f32 %v3570_v14  ;;  %vm566_vm14 = vcmp.eq.f32.partialorder %v3570_v14, inf  ;;  %v569_v55 = vand.u32 2147483648, %v3570_v14  ;;  %vm568_vm15 = vcmp.eq.f32.partialorder %v3570_v14, 0.0 }
 0x1b5   : > { %v541_v16 = vmul.f32 %v540_v12, %v3547_v42  ;;  %v549_v17 = vmul.f32 %v3043_v11, %v548_v0  ;;  %v775_v26 = vmul.f32 -4.5, %v759_v15 }
 0x1b7   : > { %v3047_v21 = vpop.eup %3046  ;;  %v550_v22 = vmul.f32 0.5, %v549_v17  ;;  %v543_v23 = vsel %vm542_vm10, %v3547_v42, %v541_v16  ;;  %v793_v35 = vmul.f32 1.442695, %v775_v26 }
 0x1b8   : > { %v3580_v24 = vpack.c.bf16 %v3047_v21, %v3045_v18  ;;  %v546_v25 = vsel %vm544_vm11, %v545_v20, %v543_v23 }
 0x1b9   : > { %v551_v27 = vsub.f32 1.5, %v550_v22  ;;  %v744_v28 = vsub.f32 %v546_v25, %v3539_v32 }
 0x1ba   : > { %v3049_v30 = vpop.eup %3048  ;;  %2750 = vmatmul.msk.bf16.vlgmr.msra.gmra.mxu1 %vm320_vm0, %v3580_v24 }
 0x1bb   : > { %v552_v1 = vmul.f32 %v3043_v11, %v551_v27  ;;  %v560_v31 = vmul.f32 %v3049_v30, %v3570_v14  ;;  %v3586_v33 = vpop.xlane.xlu2 %470  ;;  %v760_v34 = vmul.f32 %v744_v28, %v744_v28 }
 0x1bc   : > { %3050 = vrsqrt.f32 %v3586_v33  ;;  %vm578_vm1 = vcmp.eq.f32.partialorder %v3586_v33, inf  ;;  %v581_v12 = vand.u32 2147483648, %v3586_v33  ;;  %vm580_vm2 = vcmp.eq.f32.partialorder %v3586_v33, 0.0 }
 0x1bd   : > { %v553_v36 = vmul.f32 %v552_v1, %v3558_v59  ;;  %v561_v37 = vmul.f32 %v3049_v30, %v560_v31  ;;  %v776_v38 = vmul.f32 -4.5, %v760_v34  ;;  %3052 = vpow2.f32 %v793_v35 }
 0x1bf   : > { %v562_v40 = vmul.f32 0.5, %v561_v37  ;;  %v795_v41 = vmul.f32 1.442695, %v776_v38  ;;  %v555_v43 = vsel %vm554_vm12, %v3558_v59, %v553_v36 }
 0x1c0   : > { %v558_v44 = vsel %vm556_vm13, %v557_v39, %v555_v43 }
 0x1c1   : > { %v563_v45 = vsub.f32 1.5, %v562_v40  ;;  %3054 = vpow2.f32 %v795_v41  ;;  %v745_v46 = vsub.f32 %v558_v44, %v3539_v32 }
 0x1c2   : > { %v3051_v47 = vpop.eup %3050 }
 0x1c3   : > { %v564_v48 = vmul.f32 %v3049_v30, %v563_v45  ;;  %v572_v49 = vmul.f32 %v3051_v47, %v3586_v33  ;;  %v3596_v50 = vpop.xlane.xlu1 %473  ;;  %v761_v51 = vmul.f32 %v745_v46, %v745_v46  ;;  %v3053_v54 = vpop.eup %3052 }
 0x1c4   : > { %3056 = vrsqrt.f32 %v3596_v50  ;;  %vm590_vm3 = vcmp.eq.f32.partialorder %v3596_v50, inf  ;;  %v593_v1 = vand.u32 2147483648, %v3596_v50  ;;  %vm592_vm5 = vcmp.eq.f32.partialorder %v3596_v50, 0.0 }
 0x1c5   : > { %v565_v52 = vmul.f32 %v564_v48, %v3570_v14  ;;  %v573_v53 = vmul.f32 %v3051_v47, %v572_v49  ;;  %v777_v62 = vmul.f32 -4.5, %v761_v51 }
 0x1c7   : > { %v3055_v56 = vpop.eup %3054  ;;  %v574_v57 = vmul.f32 0.5, %v573_v53  ;;  %v567_v58 = vsel %vm566_vm14, %v3570_v14, %v565_v52  ;;  %v797_v8 = vmul.f32 1.442695, %v777_v62 }
 0x1c8   : > { %v3604_v60 = vpack.c.bf16 %v3055_v56, %v3053_v54  ;;  %v570_v61 = vsel %vm568_vm15, %v569_v55, %v567_v58 }
 0x1c9   : > { %v575_v63 = vsub.f32 1.5, %v574_v57  ;;  %v746_v2 = vsub.f32 %v570_v61, %v3539_v32 }
 0x1ca   : > { %v3057_v3 = vpop.eup %3056  ;;  %2751 = vmatmul.msk.bf16.gmra.mxu1 %vm320_vm0, %v3604_v60 }
 0x1cb   : > { %v576_v4 = vmul.f32 %v3051_v47, %v575_v63  ;;  %v584_v5 = vmul.f32 %v3057_v3, %v3596_v50  ;;  %v3610_v6 = vpop.xlane.xlu2 %476  ;;  %v762_v7 = vmul.f32 %v746_v2, %v746_v2 }
 0x1cc   : > { %3058 = vrsqrt.f32 %v3610_v6  ;;  %vm602_vm6 = vcmp.eq.f32.partialorder %v3610_v6, inf  ;;  %v605_v52 = vand.u32 2147483648, %v3610_v6  ;;  %vm604_vm8 = vcmp.eq.f32.partialorder %v3610_v6, 0.0 }
 0x1cd   : > { %v577_v9 = vmul.f32 %v576_v4, %v3586_v33  ;;  %v585_v10 = vmul.f32 %v3057_v3, %v584_v5  ;;  %v778_v11 = vmul.f32 -4.5, %v762_v7  ;;  %3060 = vpow2.f32 %v797_v8 }
 0x1cf   : > { %v586_v0 = vmul.f32 0.5, %v585_v10  ;;  %v799_v15 = vmul.f32 1.442695, %v778_v11  ;;  %v579_v16 = vsel %vm578_vm1, %v3586_v33, %v577_v9 }
 0x1d0   : > { %v582_v17 = vsel %vm580_vm2, %v581_v12, %v579_v16 }
 0x1d1   : > { %v587_v18 = vsub.f32 1.5, %v586_v0  ;;  %3062 = vpow2.f32 %v799_v15  ;;  %v747_v20 = vsub.f32 %v582_v17, %v3539_v32 }
 0x1d2   : > { %v3059_v21 = vpop.eup %3058 }
 0x1d3   : > { %v588_v22 = vmul.f32 %v3057_v3, %v587_v18  ;;  %v596_v23 = vmul.f32 %v3059_v21, %v3610_v6  ;;  %v3620_v25 = vpop.xlane.xlu1 %479  ;;  %v763_v26 = vmul.f32 %v747_v20, %v747_v20  ;;  %v3061_v30 = vpop.eup %3060 }
 0x1d4   : > { %3064 = vrsqrt.f32 %v3620_v25  ;;  %vm614_vm9 = vcmp.eq.f32.partialorder %v3620_v25, inf  ;;  %v617_v8 = vand.u32 2147483648, %v3620_v25  ;;  %vm616_vm10 = vcmp.eq.f32.partialorder %v3620_v25, 0.0 }
 0x1d5   : > { %v589_v27 = vmul.f32 %v588_v22, %v3596_v50  ;;  %v597_v28 = vmul.f32 %v3059_v21, %v596_v23  ;;  %v779_v38 = vmul.f32 -4.5, %v763_v26 }
 0x1d7   : > { %v3063_v31 = vpop.eup %3062  ;;  %v598_v34 = vmul.f32 0.5, %v597_v28  ;;  %v591_v35 = vsel %vm590_vm3, %v3596_v50, %v589_v27  ;;  %v801_v47 = vmul.f32 1.442695, %v779_v38 }
 0x1d8   : > { %v3628_v36 = vpack.c.bf16 %v3063_v31, %v3061_v30  ;;  %v594_v37 = vsel %vm592_vm5, %v593_v1, %v591_v35 }
 0x1d9   : > { %v599_v39 = vsub.f32 1.5, %v598_v34  ;;  %v748_v40 = vsub.f32 %v594_v37, %v3539_v32 }
 0x1da   : > { %v3065_v41 = vpop.eup %3064  ;;  %2752 = vmatmul.msk.bf16.gmra.mxu1 %vm320_vm0, %v3628_v36 }
 0x1db   : > { %v600_v43 = vmul.f32 %v3059_v21, %v599_v39  ;;  %v608_v44 = vmul.f32 %v3065_v41, %v3620_v25  ;;  %v3634_v45 = vpop.xlane.xlu2 %482  ;;  %v764_v46 = vmul.f32 %v748_v40, %v748_v40 }
 0x1dc   : > { %3066 = vrsqrt.f32 %v3634_v45  ;;  %vm626_vm11 = vcmp.eq.f32.partialorder %v3634_v45, inf  ;;  %v629_v1 = vand.u32 2147483648, %v3634_v45  ;;  %vm628_vm12 = vcmp.eq.f32.partialorder %v3634_v45, 0.0 }
 0x1dd   : > { %v601_v48 = vmul.f32 %v600_v43, %v3610_v6  ;;  %v609_v49 = vmul.f32 %v3065_v41, %v608_v44  ;;  %v780_v51 = vmul.f32 -4.5, %v764_v46  ;;  %3068 = vpow2.f32 %v801_v47 }
 0x1df   : > { %v610_v53 = vmul.f32 0.5, %v609_v49  ;;  %v803_v54 = vmul.f32 1.442695, %v780_v51  ;;  %v603_v55 = vsel %vm602_vm6, %v3610_v6, %v601_v48 }
 0x1e0   : > { %v606_v56 = vsel %vm604_vm8, %v605_v52, %v603_v55 }
 0x1e1   : > { %v611_v57 = vsub.f32 1.5, %v610_v53  ;;  %3070 = vpow2.f32 %v803_v54  ;;  %v749_v58 = vsub.f32 %v606_v56, %v3539_v32 }
 0x1e2   : > { %v3067_v61 = vpop.eup %3066 }
 0x1e3   : > { %v612_v62 = vmul.f32 %v3065_v41, %v611_v57  ;;  %v620_v63 = vmul.f32 %v3067_v61, %v3634_v45  ;;  %v3644_v2 = vpop.xlane.xlu1 %485  ;;  %v765_v3 = vmul.f32 %v749_v58, %v749_v58  ;;  %v3069_v7 = vpop.eup %3068 }
 0x1e4   : > { %3072 = vrsqrt.f32 %v3644_v2  ;;  %vm638_vm13 = vcmp.eq.f32.partialorder %v3644_v2, inf  ;;  %v641_v51 = vand.u32 2147483648, %v3644_v2  ;;  %vm640_vm14 = vcmp.eq.f32.partialorder %v3644_v2, 0.0 }
 0x1e5   : > { %v613_v4 = vmul.f32 %v612_v62, %v3620_v25  ;;  %v621_v5 = vmul.f32 %v3067_v61, %v620_v63  ;;  %v781_v15 = vmul.f32 -4.5, %v765_v3 }
 0x1e7   : > { %v3071_v9 = vpop.eup %3070  ;;  %v622_v10 = vmul.f32 0.5, %v621_v5  ;;  %v615_v11 = vsel %vm614_vm9, %v3620_v25, %v613_v4  ;;  %v805_v26 = vmul.f32 1.442695, %v781_v15 }
 0x1e8   : > { %v3652_v12 = vpack.c.bf16 %v3071_v9, %v3069_v7  ;;  %v618_v0 = vsel %vm616_vm10, %v617_v8, %v615_v11 }
 0x1e9   : > { %v623_v16 = vsub.f32 1.5, %v622_v10  ;;  %v750_v17 = vsub.f32 %v618_v0, %v3539_v32 }
 0x1ea   : > { %v3073_v18 = vpop.eup %3072  ;;  %2753 = vmatmul.msk.bf16.gmra.mxu1 %vm320_vm0, %v3652_v12 }
 0x1eb   : > { %v624_v20 = vmul.f32 %v3067_v61, %v623_v16  ;;  %v632_v21 = vmul.f32 %v3073_v18, %v3644_v2  ;;  %v3658_v22 = vpop.xlane.xlu2 %488  ;;  %v766_v23 = vmul.f32 %v750_v17, %v750_v17 }
 0x1ec   : > { %3074 = vrsqrt.f32 %v3658_v22  ;;  %vm650_vm15 = vcmp.eq.f32.partialorder %v3658_v22, inf  ;;  %v653_v11 = vand.u32 2147483648, %v3658_v22  ;;  %vm652_vm1 = vcmp.eq.f32.partialorder %v3658_v22, 0.0 }
 0x1ed   : > { %v625_v27 = vmul.f32 %v624_v20, %v3634_v45  ;;  %v633_v28 = vmul.f32 %v3073_v18, %v632_v21  ;;  %v782_v30 = vmul.f32 -4.5, %v766_v23  ;;  %3076 = vpow2.f32 %v805_v26 }
 0x1ef   : > { %v634_v31 = vmul.f32 0.5, %v633_v28  ;;  %v807_v34 = vmul.f32 1.442695, %v782_v30  ;;  %v627_v35 = vsel %vm626_vm11, %v3634_v45, %v625_v27 }
 0x1f0   : > { %v630_v37 = vsel %vm628_vm12, %v629_v1, %v627_v35 }
 0x1f1   : > { %v635_v38 = vsub.f32 1.5, %v634_v31  ;;  %3078 = vpow2.f32 %v807_v34  ;;  %v751_v39 = vsub.f32 %v630_v37, %v3539_v32 }
 0x1f2   : > { %v3075_v40 = vpop.eup %3074 }
 0x1f3   : > { %v636_v41 = vmul.f32 %v3073_v18, %v635_v38  ;;  %v644_v43 = vmul.f32 %v3075_v40, %v3658_v22  ;;  %v3668_v44 = vpop.xlane.xlu1 %491  ;;  %v767_v46 = vmul.f32 %v751_v39, %v751_v39  ;;  %v3077_v49 = vpop.eup %3076 }
 0x1f4   : > { %3080 = vrsqrt.f32 %v3668_v44  ;;  %vm662_vm2 = vcmp.eq.f32.partialorder %v3668_v44, inf  ;;  %v665_v34 = vand.u32 2147483648, %v3668_v44  ;;  %vm664_vm3 = vcmp.eq.f32.partialorder %v3668_v44, 0.0 }
 0x1f5   : > { %v637_v47 = vmul.f32 %v636_v41, %v3644_v2  ;;  %v645_v48 = vmul.f32 %v3075_v40, %v644_v43  ;;  %v783_v57 = vmul.f32 -4.5, %v767_v46 }
 0x1f7   : > { %v3079_v52 = vpop.eup %3078  ;;  %v646_v53 = vmul.f32 0.5, %v645_v48  ;;  %v639_v54 = vsel %vm638_vm13, %v3644_v2, %v637_v47  ;;  %v809_v7 = vmul.f32 1.442695, %v783_v57 }
 0x1f8   : > { %v3676_v55 = vpack.c.bf16 %v3079_v52, %v3077_v49  ;;  %v642_v56 = vsel %vm640_vm14, %v641_v51, %v639_v54  ;;  %vm1227_vm14 = vcmask 261120  }
 0x1f9   : > { %v647_v58 = vsub.f32 1.5, %v646_v53  ;;  %v752_v61 = vsub.f32 %v642_v56, %v3539_v32 }
 0x1fa   : > { %v3081_v62 = vpop.eup %3080  ;;  %2754 = vmatmul.msk.bf16.gmra.mxu1 %vm320_vm0, %v3676_v55 }
 0x1fb   : > { %v648_v63 = vmul.f32 %v3075_v40, %v647_v58  ;;  %v656_v3 = vmul.f32 %v3081_v62, %v3668_v44  ;;  %v3682_v4 = vpop.xlane.xlu2 %494  ;;  %v768_v5 = vmul.f32 %v752_v61, %v752_v61 }
 0x1fc   : > { %3082 = vrsqrt.f32 %v3682_v4  ;;  %vm674_vm5 = vcmp.eq.f32.partialorder %v3682_v4, inf  ;;  %v677_v57 = vand.u32 2147483648, %v3682_v4  ;;  %vm676_vm6 = vcmp.eq.f32.partialorder %v3682_v4, 0.0 }
 0x1fd   : > { %v649_v8 = vmul.f32 %v648_v63, %v3658_v22  ;;  %v657_v9 = vmul.f32 %v3081_v62, %v656_v3  ;;  %v784_v10 = vmul.f32 -4.5, %v768_v5  ;;  %3084 = vpow2.f32 %v809_v7 }
 0x1ff   : > { %v658_v0 = vmul.f32 0.5, %v657_v9  ;;  %v811_v15 = vmul.f32 1.442695, %v784_v10  ;;  %v651_v16 = vsel %vm650_vm15, %v3658_v22, %v649_v8 }
 0x200   : > { %v654_v17 = vsel %vm652_vm1, %v653_v11, %v651_v16 }
 0x201   : > { %v659_v18 = vsub.f32 1.5, %v658_v0  ;;  %3086 = vpow2.f32 %v811_v15  ;;  %v753_v20 = vsub.f32 %v654_v17, %v3539_v32 }
 0x202   : > { %v3083_v21 = vpop.eup %3082 }
 0x203   : > { %v660_v23 = vmul.f32 %v3081_v62, %v659_v18  ;;  %v668_v26 = vmul.f32 %v3083_v21, %v3682_v4  ;;  %v3692_v27 = vpop.xlane.xlu0 %497  ;;  %v769_v28 = vmul.f32 %v753_v20, %v753_v20  ;;  %v3085_v31 = vpop.eup %3084 }
 0x204   : > { %3088 = vrsqrt.f32 %v3692_v27  ;;  %vm686_vm8 = vcmp.eq.f32.partialorder %v3692_v27, inf  ;;  %v689_v11 = vand.u32 2147483648, %v3692_v27  ;;  %vm688_vm9 = vcmp.eq.f32.partialorder %v3692_v27, 0.0 }
 0x205   : > { %v661_v30 = vmul.f32 %v660_v23, %v3668_v44  ;;  %v669_v1 = vmul.f32 %v3083_v21, %v668_v26  ;;  %v785_v41 = vmul.f32 -4.5, %v769_v28 }
 0x207   : > { %v3087_v35 = vpop.eup %3086  ;;  %v670_v37 = vmul.f32 0.5, %v669_v1  ;;  %v663_v38 = vsel %vm662_vm2, %v3668_v44, %v661_v30  ;;  %v813_v52 = vmul.f32 1.442695, %v785_v41  ;;  %v1222_v41 = vld [vmem:[#allocation2 + $0x38] sm:$0xff] }
 0x208   : > { %v3700_v39 = vpack.c.bf16 %v3087_v35, %v3085_v31  ;;  %v666_v40 = vsel %vm664_vm3, %v665_v34, %v663_v38  ;;  %v1347_v34 = vpop.f32.mrf.mxu3  ;;  %v3726_v35 = vld [vmem:[#allocation2 + $0x18] ss:$0 sm:$0xff] }
 0x209   : > { %v671_v43 = vsub.f32 1.5, %v670_v37  ;;  %v754_v46 = vsub.f32 %v666_v40, %v3539_v32  ;;  %3090 = vpow2.f32 %v813_v52  ;;  %v1221_v40 = vld [vmem:[#allocation2 + $0x30] sm:$0xff]  ;;  %v1220_v52 = vld [vmem:[#allocation2 + $0x28] sm:$0xff] }
 0x20a   : > { %v3089_v47 = vpop.eup %3088  ;;  %2755 = vmatmul.msk.bf16.gmra.mxu1 %vm320_vm0, %v3700_v39 }
 0x20b   : > { %v672_v48 = vmul.f32 %v3083_v21, %v671_v43  ;;  %v680_v49 = vmul.f32 %v3089_v47, %v3692_v27  ;;  %v770_v51 = vmul.f32 %v754_v46, %v754_v46  ;;  %v1224_v46 = vpack.c.bf16 %v1222_v41, %v1221_v40 }
 0x20d   : > { %v673_v53 = vmul.f32 %v672_v48, %v3682_v4  ;;  %v681_v54 = vmul.f32 %v3089_v47, %v680_v49  ;;  %v786_v56 = vmul.f32 -4.5, %v770_v51  ;;  %1258 = vmatpush.bf16.msra.mxu2 %v1224_v46  ;;  %v2903_v49 = vld [vmem:[%s4385_s2] sm:$0xff] }
 0x20e   : > { %v1219_v51 = vld [vmem:[#allocation2 + $0x20] sm:$0xff] }
 0x20f   : > { %v682_v58 = vmul.f32 0.5, %v681_v54  ;;  %v815_v61 = vmul.f32 1.442695, %v786_v56  ;;  %v675_v62 = vsel %vm674_vm5, %v3682_v4, %v673_v53  ;;  %v3091_v10 = vpop.eup %3090  ;;  %v1223_v54 = vpack.c.bf16 %v1220_v52, %v1219_v51 }
 0x210   : > { %v678_v63 = vsel %vm676_vm6, %v677_v57, %v675_v62  ;;  %v1350_v38 = vpop.f32.mrf.mxu3 }
 0x211   : > { %v683_v3 = vsub.f32 1.5, %v682_v58  ;;  %3092 = vpow2.f32 %v815_v61  ;;  %v755_v5 = vsub.f32 %v678_v63, %v3539_v32  ;;  %1259 = vmatpush.bf16.msra.mxu2 %v1223_v54 }
 0x213   : > { %v684_v7 = vmul.f32 %v3089_v47, %v683_v3  ;;  %v771_v8 = vmul.f32 %v755_v5, %v755_v5  ;;  %v1353_v47 = vpack.c.bf16 %v1350_v38, %v1347_v34 }
 0x215   : > { %v685_v9 = vmul.f32 %v684_v7, %v3692_v27  ;;  %v787_v18 = vmul.f32 -4.5, %v771_v8  ;;  %1425 = vmatpush.bf16.msrb.mxu3 %v1353_v47 }
 0x217   : > { %v3093_v0 = vpop.eup %3092  ;;  %v687_v15 = vsel %vm686_vm8, %v3692_v27, %v685_v9  ;;  %v817_v23 = vmul.f32 1.442695, %v787_v18 }
 0x218   : > { %v3717_v16 = vpack.c.bf16 %v3093_v0, %v3091_v10  ;;  %v690_v17 = vsel %vm688_vm9, %v689_v11, %v687_v15  ;;  %2817 = vmatmul.msk.bf16.vlgmr.msrb.gmra.mxu3 %vm320_vm0, %v2903_v49  ;;  %v2904_v0 = vld [vmem:[%s4385_s2 + $0x8] sm:$0xff] }
 0x219   : > { %v756_v20 = vsub.f32 %v690_v17, %v3539_v32  ;;  %3094 = vpow2.f32 %v817_v23 }
 0x21a   : > { %2756 = vmatmul.msk.bf16.gmra.mxu1 %vm320_vm0, %v3717_v16 }
 0x21b   : > { %v772_v21 = vmul.f32 %v756_v20, %v756_v20 }
 0x21d   : > { %v788_v26 = vmul.f32 -4.5, %v772_v21 }
 0x21f   : > { %v819_v28 = vmul.f32 1.442695, %v788_v26  ;;  %v3095_v30 = vpop.eup %3094 }
 0x221   : > { %3096 = vpow2.f32 %v819_v28 }
 0x227   : > { %v3097_v1 = vpop.eup %3096 }
 0x228   : > { %v3722_v31 = vpack.c.bf16 %v3097_v1, %v3095_v30  ;;  %2818 = vmatmul.msk.bf16.gmra.mxu3 %vm320_vm0, %v2904_v0  ;;  %v2905_v0 = vld [vmem:[%s4385_s2 + $0x10] sm:$0xff] }
 0x22a   : > { %2757 = vmatmul.msk.bf16.gmra.mxu1 %vm320_vm0, %v3722_v31 }
 0x237   : > { %v867_v32 = vpop.f32.mrf.mxu1 }
 0x238   : > { %v3729_v37 = vadd.f32 %v3726_v35, %v867_v32  ;;  %2819 = vmatmul.msk.bf16.gmra.mxu3 %vm320_vm0, %v2905_v0 }
 0x23a   : > { %v955_v43 = vand.u32 2147483647, %v3729_v37  ;;  %v907_v38 = vmax.f32 %v3729_v37, 0.0  ;;  %vm923_vm11 = vcmp.ne.f32.partialorder %v3729_v37, %v3729_v37 }
 0x23c   : > { %v971_v48 = vsub.f32 0.0, %v955_v43 }
 0x23e   : > { %v987_v53 = vmul.f32 1.442695, %v971_v48 }
 0x23f   : > { %v869_v56 = vpop.f32.mrf.mxu1 }
 0x240   : > { %3098 = vpow2.f32 %v987_v53  ;;  %v870_v57 = vadd.f32 %v3726_v35, %v869_v56 }
 0x242   : > { %v956_v58 = vand.u32 2147483647, %v870_v57  ;;  %vm924_vm13 = vcmp.ne.f32.partialorder %v870_v57, %v870_v57 }
 0x244   : > { %v972_v61 = vsub.f32 0.0, %v956_v58  ;;  %v908_v58 = vmax.f32 %v870_v57, 0.0 }
 0x246   : > { %v3099_v62 = vpop.eup %3098  ;;  %v989_v63 = vmul.f32 1.442695, %v972_v61 }
 0x247   : > { %v1019_v3 = vadd.f32 1.0, %v3099_v62  ;;  %v872_v5 = vpop.f32.mrf.mxu1  ;;  %v1022_v8 = vmul.f32 -0.5, %v3099_v62  ;;  %v1025_v17 = vand.u32 2147483647, %v3099_v62 }
 0x248   : > { %3100 = vpow2.f32 %v989_v63  ;;  %v3738_v7 = vadd.f32 %v3726_v35, %v872_v5 }
 0x249   : > { %3102 = vlog2.f32 %v1019_v3  ;;  %v1023_v11 = vadd.f32 1.0, %v1022_v8  ;;  %vm1026_vm10 = vcmp.lt.f32.partialorder %v1025_v17, 0.0004427343 }
 0x24a   : > { %v957_v9 = vand.u32 2147483647, %v3738_v7  ;;  %vm925_vm1 = vcmp.ne.f32.partialorder %v3738_v7, %v3738_v7 }
 0x24b   : > { %v1024_v1 = vmul.f32 %v3099_v62, %v1023_v11 }
 0x24c   : > { %v973_v10 = vsub.f32 0.0, %v957_v9 }
 0x24e   : > { %v3101_v15 = vpop.eup %3100  ;;  %v991_v18 = vmul.f32 1.442695, %v973_v10 }
 0x24f   : > { %v3103_v20 = vpop.eup %3102  ;;  %v874_v21 = vpop.f32.mrf.mxu1  ;;  %v1028_v23 = vadd.f32 1.0, %v3101_v15  ;;  %v1031_v30 = vmul.f32 -0.5, %v3101_v15  ;;  %v1034_v43 = vand.u32 2147483647, %v3101_v15 }
 0x250   : > { %v1021_v26 = vmul.f32 0.6931472, %v3103_v20  ;;  %3104 = vpow2.f32 %v991_v18  ;;  %v3746_v28 = vadd.f32 %v3726_v35, %v874_v21 }
 0x251   : > { %3106 = vlog2.f32 %v1028_v23  ;;  %v1032_v41 = vadd.f32 1.0, %v1031_v30  ;;  %vm1035_vm12 = vcmp.lt.f32.partialorder %v1034_v43, 0.0004427343 }
 0x252   : > { %v958_v34 = vand.u32 2147483647, %v3746_v28  ;;  %v1027_v32 = vsel %vm1026_vm10, %v1024_v1, %v1021_v26  ;;  %vm926_vm3 = vcmp.ne.f32.partialorder %v3746_v28, %v3746_v28 }
 0x253   : > { %v1163_v47 = vadd.f32 %v1027_v32, %v907_v38  ;;  %v1033_v56 = vmul.f32 %v3101_v15, %v1032_v41 }
 0x254   : > { %v974_v40 = vsub.f32 0.0, %v958_v34 }
 0x255   : > { %v1179_v3 = vsel %vm923_vm11, %v3729_v37, %v1163_v47 }
 0x256   : > { %v3105_v46 = vpop.eup %3104  ;;  %v993_v48 = vmul.f32 1.442695, %v974_v40  ;;  %v2758_v11 = vadd.f32 -0.6931472, %v1179_v3  ;;  %v909_v40 = vmax.f32 %v3738_v7, 0.0 }
 0x257   : > { %v3107_v49 = vpop.eup %3106  ;;  %v1037_v51 = vadd.f32 1.0, %v3105_v46  ;;  %v877_v52 = vpop.f32.mrf.mxu1  ;;  %v1040_v61 = vmul.f32 -0.5, %v3105_v46  ;;  %v1043_v17 = vand.u32 2147483647, %v3105_v46 }
 0x258   : > { %3108 = vpow2.f32 %v993_v48  ;;  %v3753_v53 = vadd.f32 %v3726_v35, %v877_v52  ;;  %v1030_v54 = vmul.f32 0.6931472, %v3107_v49 }
 0x259   : > { %3110 = vlog2.f32 %v1037_v51  ;;  %v1041_v9 = vadd.f32 1.0, %v1040_v61  ;;  %vm1044_vm15 = vcmp.lt.f32.partialorder %v1043_v17, 0.0004427343 }
 0x25a   : > { %v959_v62 = vand.u32 2147483647, %v3753_v53  ;;  %v1036_v63 = vsel %vm1035_vm12, %v1033_v56, %v1030_v54  ;;  %vm927_vm6 = vcmp.ne.f32.partialorder %v3753_v53, %v3753_v53 }
 0x25b   : > { %v1164_v5 = vadd.f32 %v1036_v63, %v908_v58  ;;  %v1042_v34 = vmul.f32 %v3105_v46, %v1041_v9 }
 0x25c   : > { %v975_v8 = vsub.f32 0.0, %v959_v62  ;;  %v910_v62 = vmax.f32 %v3746_v28, 0.0 }
 0x25d   : > { %v1180_v10 = vsel %vm924_vm13, %v870_v57, %v1164_v5 }
 0x25e   : > { %v3109_v15 = vpop.eup %3108  ;;  %v995_v18 = vmul.f32 1.442695, %v975_v8  ;;  %v2759_v20 = vadd.f32 -0.6931472, %v1180_v10 }
 0x25f   : > { %v3111_v21 = vpop.eup %3110  ;;  %v879_v23 = vpop.f32.mrf.mxu1  ;;  %v1046_v26 = vadd.f32 1.0, %v3109_v15  ;;  %v1049_v30 = vmul.f32 -0.5, %v3109_v15  ;;  %v1052_v47 = vand.u32 2147483647, %v3109_v15 }
 0x260   : > { %v1039_v37 = vmul.f32 0.6931472, %v3111_v21  ;;  %3112 = vpow2.f32 %v995_v18  ;;  %v3762_v57 = vadd.f32 %v3726_v35, %v879_v23  ;;  %v1211_v1 = vpack.c.bf16 %v2759_v20, %v2758_v11 }
 0x261   : > { %3114 = vlog2.f32 %v1046_v26  ;;  %v1050_v43 = vadd.f32 1.0, %v1049_v30  ;;  %vm1053_vm2 = vcmp.lt.f32.partialorder %v1052_v47, 0.0004427343 }
 0x262   : > { %v960_v32 = vand.u32 2147483647, %v3762_v57  ;;  %2774 = vmatmul.msk.bf16.vlgmr.msra.gmra.mxu2 %vm1227_vm14, %v1211_v1  ;;  %v1045_v38 = vsel %vm1044_vm15, %v1042_v34, %v1039_v37  ;;  %vm928_vm9 = vcmp.ne.f32.partialorder %v3762_v57, %v3762_v57 }
 0x263   : > { %v1165_v49 = vadd.f32 %v1045_v38, %v909_v40  ;;  %v1051_v61 = vmul.f32 %v3109_v15, %v1050_v43  ;;  %v2906_v15 = vld [vmem:[%s4385_s2 + $0x18] sm:$0xff] }
 0x264   : > { %v976_v41 = vsub.f32 0.0, %v960_v32  ;;  %2820 = vmatmul.msk.bf16.gmra.mxu3 %vm320_vm0, %v2906_v15 }
 0x265   : > { %v1181_v8 = vsel %vm925_vm1, %v3738_v7, %v1165_v49 }
 0x266   : > { %v3113_v48 = vpop.eup %3112  ;;  %v997_v51 = vmul.f32 1.442695, %v976_v41  ;;  %v2760_v17 = vadd.f32 -0.6931472, %v1181_v8  ;;  %v911_v41 = vmax.f32 %v3753_v53, 0.0 }
 0x267   : > { %v3115_v52 = vpop.eup %3114  ;;  %v1055_v54 = vadd.f32 1.0, %v3113_v48  ;;  %v882_v56 = vpop.f32.mrf.mxu1  ;;  %v1058_v63 = vmul.f32 -0.5, %v3113_v48  ;;  %v1061_v20 = vand.u32 2147483647, %v3113_v48 }
 0x268   : > { %3116 = vpow2.f32 %v997_v51  ;;  %v3770_v46 = vadd.f32 %v3726_v35, %v882_v56  ;;  %v1048_v58 = vmul.f32 0.6931472, %v3115_v52 }
 0x269   : > { %3118 = vlog2.f32 %v1055_v54  ;;  %v1059_v11 = vadd.f32 1.0, %v1058_v63  ;;  %vm1062_vm5 = vcmp.lt.f32.partialorder %v1061_v20, 0.0004427343 }
 0x26a   : > { %v961_v3 = vand.u32 2147483647, %v3770_v46  ;;  %v1054_v5 = vsel %vm1053_vm2, %v1051_v61, %v1048_v58  ;;  %vm929_vm11 = vcmp.ne.f32.partialorder %v3770_v46, %v3770_v46 }
 0x26b   : > { %v1166_v9 = vadd.f32 %v1054_v5, %v910_v62  ;;  %v1060_v32 = vmul.f32 %v3113_v48, %v1059_v11 }
 0x26c   : > { %v977_v10 = vsub.f32 0.0, %v961_v3  ;;  %v912_v3 = vmax.f32 %v3762_v57, 0.0 }
 0x26d   : > { %v1182_v0 = vsel %vm926_vm3, %v3746_v28, %v1166_v9 }
 0x26e   : > { %v3117_v18 = vpop.eup %3116  ;;  %v999_v21 = vmul.f32 1.442695, %v977_v10  ;;  %v2761_v23 = vadd.f32 -0.6931472, %v1182_v0 }
 0x26f   : > { %v3119_v26 = vpop.eup %3118  ;;  %v884_v30 = vpop.f32.mrf.mxu1  ;;  %v1064_v7 = vadd.f32 1.0, %v3117_v18  ;;  %v1067_v37 = vmul.f32 -0.5, %v3117_v18  ;;  %v1070_v49 = vand.u32 2147483647, %v3117_v18 }
 0x270   : > { %v1057_v1 = vmul.f32 0.6931472, %v3119_v26  ;;  %3120 = vpow2.f32 %v999_v21  ;;  %v3783_v34 = vadd.f32 %v3726_v35, %v884_v30  ;;  %v1212_v28 = vpack.c.bf16 %v2761_v23, %v2760_v17 }
 0x271   : > { %3122 = vlog2.f32 %v1064_v7  ;;  %v1068_v47 = vadd.f32 1.0, %v1067_v37  ;;  %vm1071_vm8 = vcmp.lt.f32.partialorder %v1070_v49, 0.0004427343 }
 0x272   : > { %v962_v38 = vand.u32 2147483647, %v3783_v34  ;;  %2775 = vmatmul.msk.bf16.gmra.mxu2 %vm1227_vm14, %v1212_v28  ;;  %v1063_v40 = vsel %vm1062_vm5, %v1060_v32, %v1057_v1  ;;  %vm930_vm13 = vcmp.ne.f32.partialorder %v3783_v34, %v3783_v34 }
 0x273   : > { %v1167_v52 = vadd.f32 %v1063_v40, %v911_v41  ;;  %v1069_v63 = vmul.f32 %v3117_v18, %v1068_v47  ;;  %v2907_v18 = vld [vmem:[%s4385_s2 + $0x20] sm:$0xff] }
 0x274   : > { %v978_v43 = vsub.f32 0.0, %v962_v38  ;;  %2821 = vmatmul.msk.bf16.gmra.mxu3 %vm320_vm0, %v2907_v18 }
 0x275   : > { %v1183_v10 = vsel %vm927_vm6, %v3753_v53, %v1167_v52 }
 0x276   : > { %v3121_v51 = vpop.eup %3120  ;;  %v1001_v54 = vmul.f32 1.442695, %v978_v43  ;;  %v2762_v20 = vadd.f32 -0.6931472, %v1183_v10  ;;  %v913_v43 = vmax.f32 %v3770_v46, 0.0 }
 0x277   : > { %v3123_v56 = vpop.eup %3122  ;;  %v1073_v58 = vadd.f32 1.0, %v3121_v51  ;;  %v887_v61 = vpop.f32.mrf.mxu1  ;;  %v1076_v5 = vmul.f32 -0.5, %v3121_v51  ;;  %v1079_v23 = vand.u32 2147483647, %v3121_v51 }
 0x278   : > { %3124 = vpow2.f32 %v1001_v54  ;;  %v3791_v48 = vadd.f32 %v3726_v35, %v887_v61  ;;  %v1066_v62 = vmul.f32 0.6931472, %v3123_v56 }
 0x279   : > { %3126 = vlog2.f32 %v1073_v58  ;;  %v1077_v17 = vadd.f32 1.0, %v1076_v5  ;;  %vm1080_vm10 = vcmp.lt.f32.partialorder %v1079_v23, 0.0004427343 }
 0x27a   : > { %v963_v8 = vand.u32 2147483647, %v3791_v48  ;;  %v1072_v9 = vsel %vm1071_vm8, %v1069_v63, %v1066_v62  ;;  %vm931_vm1 = vcmp.ne.f32.partialorder %v3791_v48, %v3791_v48 }
 0x27b   : > { %v1168_v11 = vadd.f32 %v1072_v9, %v912_v3  ;;  %v1078_v38 = vmul.f32 %v3121_v51, %v1077_v17 }
 0x27c   : > { %v979_v0 = vsub.f32 0.0, %v963_v8  ;;  %v914_v8 = vmax.f32 %v3783_v34, 0.0 }
 0x27d   : > { %v1184_v15 = vsel %vm928_vm9, %v3762_v57, %v1168_v11 }
 0x27e   : > { %v3125_v21 = vpop.eup %3124  ;;  %v1003_v26 = vmul.f32 1.442695, %v979_v0  ;;  %v2763_v30 = vadd.f32 -0.6931472, %v1184_v15 }
 0x27f   : > { %v3127_v7 = vpop.eup %3126  ;;  %v889_v37 = vpop.f32.mrf.mxu1  ;;  %v1082_v53 = vadd.f32 1.0, %v3125_v21  ;;  %v1085_v1 = vmul.f32 -0.5, %v3125_v21  ;;  %v1088_v52 = vand.u32 2147483647, %v3125_v21 }
 0x280   : > { %v1075_v28 = vmul.f32 0.6931472, %v3127_v7  ;;  %3128 = vpow2.f32 %v1003_v26  ;;  %v3804_v32 = vadd.f32 %v3726_v35, %v889_v37  ;;  %v1213_v57 = vpack.c.bf16 %v2763_v30, %v2762_v20 }
 0x281   : > { %3130 = vlog2.f32 %v1082_v53  ;;  %v1086_v49 = vadd.f32 1.0, %v1085_v1  ;;  %vm1089_vm12 = vcmp.lt.f32.partialorder %v1088_v52, 0.0004427343 }
 0x282   : > { %v964_v40 = vand.u32 2147483647, %v3804_v32  ;;  %2776 = vmatmul.msk.bf16.gmra.mxu2 %vm1227_vm14, %v1213_v57  ;;  %v1081_v41 = vsel %vm1080_vm10, %v1078_v38, %v1075_v28  ;;  %vm932_vm3 = vcmp.ne.f32.partialorder %v3804_v32, %v3804_v32 }
 0x283   : > { %v1169_v56 = vadd.f32 %v1081_v41, %v913_v43  ;;  %v1087_v5 = vmul.f32 %v3125_v21, %v1086_v49  ;;  %v2908_v21 = vld [vmem:[%s4385_s2 + $0x28] sm:$0xff] }
 0x284   : > { %v980_v47 = vsub.f32 0.0, %v964_v40  ;;  %2822 = vmatmul.msk.bf16.gmra.mxu3 %vm320_vm0, %v2908_v21 }
 0x285   : > { %v1185_v0 = vsel %vm929_vm11, %v3770_v46, %v1169_v56 }
 0x286   : > { %v3129_v54 = vpop.eup %3128  ;;  %v1005_v58 = vmul.f32 1.442695, %v980_v47  ;;  %v2764_v23 = vadd.f32 -0.6931472, %v1185_v0  ;;  %v915_v47 = vmax.f32 %v3791_v48, 0.0 }
 0x287   : > { %v3131_v61 = vpop.eup %3130  ;;  %v1091_v62 = vadd.f32 1.0, %v3129_v54  ;;  %v892_v63 = vpop.f32.mrf.mxu1  ;;  %v1094_v9 = vmul.f32 -0.5, %v3129_v54  ;;  %v1097_v30 = vand.u32 2147483647, %v3129_v54 }
 0x288   : > { %3132 = vpow2.f32 %v1005_v58  ;;  %v3812_v51 = vadd.f32 %v3726_v35, %v892_v63  ;;  %v1084_v3 = vmul.f32 0.6931472, %v3131_v61 }
 0x289   : > { %3134 = vlog2.f32 %v1091_v62  ;;  %v1095_v20 = vadd.f32 1.0, %v1094_v9  ;;  %vm1098_vm15 = vcmp.lt.f32.partialorder %v1097_v30, 0.0004427343 }
 0x28a   : > { %v965_v10 = vand.u32 2147483647, %v3812_v51  ;;  %v1090_v11 = vsel %vm1089_vm12, %v1087_v5, %v1084_v3  ;;  %vm933_vm8 = vcmp.ne.f32.partialorder %v3812_v51, %v3812_v51 }
 0x28b   : > { %v1170_v17 = vadd.f32 %v1090_v11, %v914_v8  ;;  %v1096_v40 = vmul.f32 %v3129_v54, %v1095_v20 }
 0x28c   : > { %v981_v15 = vsub.f32 0.0, %v965_v10  ;;  %v916_v10 = vmax.f32 %v3804_v32, 0.0 }
 0x28d   : > { %v1186_v18 = vsel %vm930_vm13, %v3783_v34, %v1170_v17 }
 0x28e   : > { %v3133_v26 = vpop.eup %3132  ;;  %v1007_v7 = vmul.f32 1.442695, %v981_v15  ;;  %v2765_v37 = vadd.f32 -0.6931472, %v1186_v18 }
 0x28f   : > { %v3135_v53 = vpop.eup %3134  ;;  %v894_v1 = vpop.f32.mrf.mxu1  ;;  %v1100_v46 = vadd.f32 1.0, %v3133_v26  ;;  %v1103_v28 = vmul.f32 -0.5, %v3133_v26  ;;  %v1106_v56 = vand.u32 2147483647, %v3133_v26 }
 0x290   : > { %v1093_v57 = vmul.f32 0.6931472, %v3135_v53  ;;  %3136 = vpow2.f32 %v1007_v7  ;;  %v3825_v38 = vadd.f32 %v3726_v35, %v894_v1  ;;  %v1214_v34 = vpack.c.bf16 %v2765_v37, %v2764_v23 }
 0x291   : > { %3138 = vlog2.f32 %v1100_v46  ;;  %v1104_v52 = vadd.f32 1.0, %v1103_v28  ;;  %vm1107_vm2 = vcmp.lt.f32.partialorder %v1106_v56, 0.0004427343 }
 0x292   : > { %v966_v41 = vand.u32 2147483647, %v3825_v38  ;;  %2777 = vmatmul.msk.bf16.gmra.mxu2 %vm1227_vm14, %v1214_v34  ;;  %v1099_v43 = vsel %vm1098_vm15, %v1096_v40, %v1093_v57  ;;  %vm934_vm9 = vcmp.ne.f32.partialorder %v3825_v38, %v3825_v38 }
 0x293   : > { %v1171_v61 = vadd.f32 %v1099_v43, %v915_v47  ;;  %v1105_v9 = vmul.f32 %v3133_v26, %v1104_v52  ;;  %v2909_v26 = vld [vmem:[%s4385_s2 + $0x30] sm:$0xff] }
 0x294   : > { %v982_v49 = vsub.f32 0.0, %v966_v41  ;;  %2823 = vmatmul.msk.bf16.gmra.mxu3 %vm320_vm0, %v2909_v26 }
 0x295   : > { %v1187_v15 = vsel %vm931_vm1, %v3791_v48, %v1171_v61 }
 0x296   : > { %v3137_v58 = vpop.eup %3136  ;;  %v1009_v62 = vmul.f32 1.442695, %v982_v49  ;;  %v2766_v21 = vadd.f32 -0.6931472, %v1187_v15  ;;  %v917_v49 = vmax.f32 %v3812_v51, 0.0 }
 0x297   : > { %v3139_v63 = vpop.eup %3138  ;;  %v897_v3 = vpop.f32.mrf.mxu1  ;;  %v1109_v54 = vadd.f32 1.0, %v3137_v58  ;;  %v1112_v11 = vmul.f32 -0.5, %v3137_v58  ;;  %v1115_v1 = vand.u32 2147483647, %v3137_v58 }
 0x298   : > { %3140 = vpow2.f32 %v1009_v62  ;;  %v3833_v5 = vadd.f32 %v3726_v35, %v897_v3  ;;  %v1102_v8 = vmul.f32 0.6931472, %v3139_v63 }
 0x299   : > { %3142 = vlog2.f32 %v1109_v54  ;;  %v1113_v30 = vadd.f32 1.0, %v1112_v11  ;;  %vm1116_vm5 = vcmp.lt.f32.partialorder %v1115_v1, 0.0004427343 }
 0x29a   : > { %v967_v0 = vand.u32 2147483647, %v3833_v5  ;;  %v1108_v17 = vsel %vm1107_vm2, %v1105_v9, %v1102_v8  ;;  %vm935_vm12 = vcmp.ne.f32.partialorder %v3833_v5, %v3833_v5 }
 0x29b   : > { %v1172_v20 = vadd.f32 %v1108_v17, %v916_v10  ;;  %v1114_v41 = vmul.f32 %v3137_v58, %v1113_v30 }
 0x29c   : > { %v983_v18 = vsub.f32 0.0, %v967_v0  ;;  %v918_v0 = vmax.f32 %v3825_v38, 0.0 }
 0x29d   : > { %v1188_v23 = vsel %vm932_vm3, %v3804_v32, %v1172_v20 }
 0x29e   : > { %v3141_v7 = vpop.eup %3140  ;;  %v1011_v37 = vmul.f32 1.442695, %v983_v18  ;;  %v2767_v53 = vadd.f32 -0.6931472, %v1188_v23 }
 0x29f   : > { %v3143_v46 = vpop.eup %3142  ;;  %v1118_v28 = vadd.f32 1.0, %v3141_v7  ;;  %v1121_v48 = vmul.f32 -0.5, %v3141_v7  ;;  %v899_v57 = vpop.f32.mrf.mxu1  ;;  %v1124_v61 = vand.u32 2147483647, %v3141_v7 }
 0x2a0   : > { %3144 = vpow2.f32 %v1011_v37  ;;  %v3846_v34 = vadd.f32 %v3726_v35, %v899_v57  ;;  %v1215_v32 = vpack.c.bf16 %v2767_v53, %v2766_v21  ;;  %v1111_v40 = vmul.f32 0.6931472, %v3143_v46  ;;  %v2910_v21 = vld [vmem:[%s4385_s2 + $0x38] sm:$0xff] }
 0x2a1   : > { %3146 = vlog2.f32 %v1118_v28  ;;  %v1122_v52 = vadd.f32 1.0, %v1121_v48  ;;  %vm1125_vm6 = vcmp.lt.f32.partialorder %v1124_v61, 0.0004427343  ;;  %v919_v61 = vmax.f32 %v3833_v5, 0.0 }
 0x2a2   : > { %v968_v43 = vand.u32 2147483647, %v3846_v34  ;;  %2778 = vmatmul.msk.bf16.gmra.mxu2 %vm1227_vm14, %v1215_v32  ;;  %v1117_v47 = vsel %vm1116_vm5, %v1114_v41, %v1111_v40  ;;  %vm936_vm13 = vcmp.ne.f32.partialorder %v3846_v34, %v3846_v34  ;;  %vm705_vm5 = vcmp.lt.f32.partialorder %v3682_v4, 25.0 }
 0x2a3   : > { %v1173_v3 = vadd.f32 %v1117_v47, %v917_v49  ;;  %v1123_v11 = vmul.f32 %v3141_v7, %v1122_v52 }
 0x2a4   : > { %v984_v56 = vsub.f32 0.0, %v968_v43  ;;  %2824 = vmatmul.msk.bf16.gmra.mxu3 %vm320_vm0, %v2910_v21 }
 0x2a5   : > { %v1189_v18 = vsel %vm933_vm8, %v3812_v51, %v1173_v3  ;;  %vm706_vm8 = vcmp.lt.f32.partialorder %v3692_v27, 25.0 }
 0x2a6   : > { %v3145_v62 = vpop.eup %3144  ;;  %v1013_v63 = vmul.f32 1.442695, %v984_v56  ;;  %v2768_v7 = vadd.f32 -0.6931472, %v1189_v18 }
 0x2a7   : > { %v3147_v54 = vpop.eup %3146  ;;  %v1127_v8 = vadd.f32 1.0, %v3145_v62  ;;  %v902_v9 = vpop.f32.mrf.mxu1  ;;  %v1130_v15 = vmul.f32 -0.5, %v3145_v62  ;;  %v1133_v48 = vand.u32 2147483647, %v3145_v62 }
 0x2a8   : > { %v1120_v10 = vmul.f32 0.6931472, %v3147_v54  ;;  %3148 = vpow2.f32 %v1013_v63  ;;  %v3852_v58 = vadd.f32 %v3726_v35, %v902_v9 }
 0x2a9   : > { %3150 = vlog2.f32 %v1127_v8  ;;  %v1131_v53 = vadd.f32 1.0, %v1130_v15  ;;  %vm1134_vm10 = vcmp.lt.f32.partialorder %v1133_v48, 0.0004427343 }
 0x2aa   : > { %v1126_v17 = vsel %vm1125_vm6, %v1123_v11, %v1120_v10  ;;  %v969_v20 = vand.u32 2147483647, %v3852_v58  ;;  %vm937_vm2 = vcmp.ne.f32.partialorder %v3852_v58, %v3852_v58  ;;  %vm704_vm6 = vcmp.lt.f32.partialorder %v3668_v44, 25.0 }
 0x2ab   : > { %v1174_v23 = vadd.f32 %v1126_v17, %v918_v0  ;;  %v1132_v47 = vmul.f32 %v3145_v62, %v1131_v53  ;;  %v920_v62 = vmax.f32 %v3846_v34, 0.0 }
 0x2ac   : > { %v985_v30 = vsub.f32 0.0, %v969_v20 }
 0x2ad   : > { %v1190_v26 = vsel %vm934_vm9, %v3825_v38, %v1174_v23  ;;  %vm703_vm9 = vcmp.lt.f32.partialorder %v3658_v22, 25.0 }
 0x2ae   : > { %v3149_v37 = vpop.eup %3148  ;;  %v1015_v1 = vmul.f32 1.442695, %v985_v30  ;;  %v2769_v46 = vadd.f32 -0.6931472, %v1190_v26 }
 0x2af   : > { %v3151_v28 = vpop.eup %3150  ;;  %v1136_v57 = vadd.f32 1.0, %v3149_v37  ;;  %v1139_v51 = vmul.f32 -0.5, %v3149_v37  ;;  %v904_v32 = vpop.f32.mrf.mxu1  ;;  %v1142_v63 = vand.u32 2147483647, %v3149_v37 }
 0x2b0   : > { %v1129_v40 = vmul.f32 0.6931472, %v3151_v28  ;;  %3152 = vpow2.f32 %v1015_v1  ;;  %v905_v41 = vadd.f32 %v3726_v35, %v904_v32  ;;  %v1216_v43 = vpack.c.bf16 %v2769_v46, %v2768_v7 }
 0x2b1   : > { %3154 = vlog2.f32 %v1136_v57  ;;  %v1140_v52 = vadd.f32 1.0, %v1139_v51  ;;  %vm1143_vm11 = vcmp.lt.f32.partialorder %v1142_v63, 0.0004427343  ;;  %v921_v51 = vmax.f32 %v3852_v58, 0.0 }
 0x2b2   : > { %v970_v38 = vand.u32 2147483647, %v905_v41  ;;  %2779 = vmatmul.msk.bf16.gmra.mxu2 %vm1227_vm14, %v1216_v43  ;;  %v1135_v49 = vsel %vm1134_vm10, %v1132_v47, %v1129_v40  ;;  %vm938_vm3 = vcmp.ne.f32.partialorder %v905_v41, %v905_v41  ;;  %vm702_vm10 = vcmp.lt.f32.partialorder %v3644_v2, 25.0 }
 0x2b3   : > { %v1175_v9 = vadd.f32 %v1135_v49, %v919_v61  ;;  %v1141_v35 = vmul.f32 %v3149_v37, %v1140_v52  ;;  %v3881_v61 = vpop.f32.mrf.mxu3 }
 0x2b4   : > { %v986_v56 = vsub.f32 0.0, %v970_v38  ;;  %v922_v38 = vmax.f32 %v905_v41, 0.0 }
 0x2b5   : > { %v1191_v20 = vsel %vm935_vm12, %v3833_v5, %v1175_v9  ;;  %vm700_vm12 = vcmp.lt.f32.partialorder %v3620_v25, 25.0 }
 0x2b6   : > { %v3153_v3 = vpop.eup %3152  ;;  %v1017_v54 = vmul.f32 1.442695, %v986_v56  ;;  %v2770_v30 = vadd.f32 -0.6931472, %v1191_v20 }
 0x2b7   : > { %v3155_v8 = vpop.eup %3154  ;;  %v1145_v10 = vadd.f32 1.0, %v3153_v3  ;;  %v1148_v17 = vmul.f32 -0.5, %v3153_v3  ;;  %v1151_v37 = vand.u32 2147483647, %v3153_v3 }
 0x2b8   : > { %v1138_v11 = vmul.f32 0.6931472, %v3155_v8  ;;  %3156 = vpow2.f32 %v1017_v54 }
 0x2b9   : > { %3158 = vlog2.f32 %v1145_v10  ;;  %v1149_v21 = vadd.f32 1.0, %v1148_v17  ;;  %vm1152_vm15 = vcmp.lt.f32.partialorder %v1151_v37, 0.0004427343 }
 0x2ba   : > { %v1144_v0 = vsel %vm1143_vm11, %v1141_v35, %v1138_v11  ;;  %vm701_vm11 = vcmp.lt.f32.partialorder %v3634_v45, 25.0 }
 0x2bb   : > { %v1176_v15 = vadd.f32 %v1144_v0, %v920_v62  ;;  %v1150_v48 = vmul.f32 %v3153_v3, %v1149_v21  ;;  %v3884_v9 = vpop.f32.mrf.mxu3 }
 0x2bd   : > { %v1192_v18 = vsel %vm936_vm13, %v3846_v34, %v1176_v15  ;;  %vm699_vm13 = vcmp.lt.f32.partialorder %v3610_v6, 25.0 }
 0x2be   : > { %v3157_v23 = vpop.eup %3156  ;;  %v2771_v26 = vadd.f32 -0.6931472, %v1192_v18 }
 0x2bf   : > { %v3159_v7 = vpop.eup %3158  ;;  %v1154_v53 = vadd.f32 1.0, %v3157_v23  ;;  %v1157_v46 = vmul.f32 -0.5, %v3157_v23  ;;  %v1160_v34 = vand.u32 2147483647, %v3157_v23 }
 0x2c0   : > { %v1147_v1 = vmul.f32 0.6931472, %v3159_v7  ;;  %v1217_v28 = vpack.c.bf16 %v2771_v26, %v2770_v30 }
 0x2c1   : > { %3160 = vlog2.f32 %v1154_v53  ;;  %v1158_v57 = vadd.f32 1.0, %v1157_v46  ;;  %vm1161_vm1 = vcmp.lt.f32.partialorder %v1160_v34, 0.0004427343 }
 0x2c2   : > { %2780 = vmatmul.msk.bf16.gmra.mxu2 %vm1227_vm14, %v1217_v28  ;;  %v1153_v5 = vsel %vm1152_vm15, %v1150_v48, %v1147_v1  ;;  %vm698_vm15 = vcmp.lt.f32.partialorder %v3596_v50, 25.0 }
 0x2c3   : > { %v1177_v40 = vadd.f32 %v1153_v5, %v921_v51  ;;  %v1159_v47 = vmul.f32 %v3157_v23, %v1158_v57  ;;  %v3886_v10 = vpop.f32.mrf.mxu3 }
 0x2c5   : > { %v1193_v56 = vsel %vm937_vm2, %v3852_v58, %v1177_v40  ;;  %vm696_vm2 = vcmp.lt.f32.partialorder %v3570_v14, 25.0 }
 0x2c6   : > { %v2772_v3 = vadd.f32 -0.6931472, %v1193_v56 }
 0x2c7   : > { %v3161_v32 = vpop.eup %3160 }
 0x2c8   : > { %v1156_v43 = vmul.f32 0.6931472, %v3161_v32 }
 0x2ca   : > { %v1162_v49 = vsel %vm1161_vm1, %v1159_v47, %v1156_v43  ;;  %v3914_v43 = vld [vmem:[#allocation2 + $0x40] ss:$0 sm:$0xff]  ;;  %vm697_vm1 = vcmp.lt.f32.partialorder %v3586_v33, 25.0 }
 0x2cb   : > { %v1178_v52 = vadd.f32 %v1162_v49, %v922_v38  ;;  %v3890_v35 = vpop.f32.mrf.mxu3  ;;  %v3361_v49 = vmov 0.0  }
 0x2cc   : > { %v3932_v44 = vsel %vm706_vm8, 1.0, %v3361_v49  ;;  %v3946_v2 = vsel %vm702_vm10, 1.0, %v3361_v49  ;;  %v3977_v33 = vsel %vm697_vm1, 1.0, %v3361_v49  ;;  %vm692_vm8 = vcmp.lt.f32.partialorder %v3531_v19, 25.0 }
 0x2cd   : > { %v1194_v63 = vsel %vm938_vm3, %v905_v41, %v1178_v52  ;;  %v3922_v52 = vsel %vm705_vm5, 1.0, %v3361_v49  ;;  %vm695_vm3 = vcmp.lt.f32.partialorder %v3558_v59, 25.0  ;;  %vm694_vm5 = vcmp.lt.f32.partialorder %v3547_v42, 25.0 }
 0x2ce   : > { %v2773_v54 = vadd.f32 -0.6931472, %v1194_v63  ;;  %4393 = vst [vmem:[#allocation8_spill] sm:$0xff] %v3922_v52 }
 0x2d0   : > { %v1218_v8 = vpack.c.bf16 %v2773_v54, %v2772_v3  ;;  %v3929_v54 = vsel %vm704_vm6, 1.0, %v3361_v49  ;;  %vm693_vm6 = vcmp.lt.f32.partialorder %v3535_v29, 25.0 }
 0x2d1   : > { %4394 = vst [vmem:[#allocation9_spill] sm:$0xff] %v3929_v54 }
 0x2d2   : > { %2781 = vmatmul.msk.bf16.gmra.mxu2 %vm1227_vm14, %v1218_v8 }
 0x2d3   : > { %v3894_v58 = vpop.f32.mrf.mxu3 }
 0x2db   : > { %v3900_v17 = vpop.f32.mrf.mxu3 }
 0x2e5   : > { %v3888_v11 = vpop.f32.mrf.mxu2 }
 0x2e7   : > { %v3904_v20 = vpop.f32.mrf.mxu3 }
 0x2ed   : > { %v3892_v62 = vpop.f32.mrf.mxu2 }
 0x2ef   : > { %v3908_v23 = vpop.f32.mrf.mxu3 }
 0x2f5   : > { %v3896_v0 = vpop.f32.mrf.mxu2 }
 0x2f7   : > { %v3910_v30 = vpop.f32.mrf.mxu3 }
 0x2fd   : > { %v3898_v41 = vpop.f32.mrf.mxu2 }
 0x2ff   : > { %v3912_v37 = vpop.f32.mrf.mxu3 }
 0x305   : > { %v3902_v15 = vpop.f32.mrf.mxu2 }
 0x307   : > { %v1452_v1 = vpop.f32.mrf.mxu3 }
 0x30d   : > { %v3906_v18 = vpop.f32.mrf.mxu2 }
 0x30f   : > { %v1454_v28 = vpop.f32.mrf.mxu3 }
 0x315   : > { %v1276_v21 = vpop.f32.mrf.mxu2 }
 0x316   : > { %v1277_v6 = vadd.f32 %v3914_v43, %v1276_v21  ;;  %v1272_v21 = vadd.f32 %v3914_v43, %v3902_v15  ;;  %v3993_v15 = vsel %vm695_vm3, 1.0, %v3361_v49 }
 0x317   : > { %v1457_v5 = vpop.f32.mrf.mxu3 }
 0x318   : > { %v1307_v14 = vmul.f32 %v3977_v33, %v1277_v6  ;;  %v1305_v42 = vmul.f32 %v3993_v15, %v1272_v21  ;;  %v1995_v6 = vld [vmem:[#allocation2 + $0xe8] sm:$0xff] }
 0x31d   : > { %v1278_v26 = vpop.f32.mrf.mxu2 }
 0x31f   : > { %v1459_v51 = vpop.f32.mrf.mxu3 }
 0x325   : > { %v1281_v7 = vpop.f32.mrf.mxu2 }
 0x327   : > { %v1462_v40 = vpop.f32.mrf.mxu3 }
 0x32d   : > { %v1283_v53 = vpop.f32.mrf.mxu2 }
 0x335   : > { %v1286_v46 = vpop.f32.mrf.mxu2 }
 0x33d   : > { %v1288_v48 = vpop.f32.mrf.mxu2 }
 0x33e   : > { %v1289_v27 = vadd.f32 %v3914_v43, %v1288_v48  ;;  %v1284_v48 = vadd.f32 %v3914_v43, %v1283_v53  ;;  %v1279_v53 = vadd.f32 %v3914_v43, %v1278_v26  ;;  %v1274_v26 = vadd.f32 %v3914_v43, %v3906_v18 }
 0x33f   : > { %v3986_v18 = vsel %vm696_vm2, 1.0, %v3361_v49 }
 0x345   : > { %v1291_v57 = vpop.f32.mrf.mxu2 }
 0x346   : > { %v1292_v63 = vadd.f32 %v3914_v43, %v1291_v57  ;;  %v3940_v57 = vsel %vm703_vm9, 1.0, %v3361_v49  ;;  %vm691_vm9 = vcmp.lt.f32.partialorder %v3526_v13, 25.0 }
 0x34d   : > { %v1293_v34 = vpop.f32.mrf.mxu2 }
 0x34e   : > { %v1294_v38 = vadd.f32 %v3914_v43, %v1293_v34  ;;  %v1464_v34 = vpop.f32.mrf.mxu3 }
 0x350   : > { %v1314_v8 = vmul.f32 %v3929_v54, %v1294_v38  ;;  %v1312_v38 = vmul.f32 %v3946_v2, %v1289_v27  ;;  %v3951_v54 = vsel %vm701_vm11, 1.0, %v3361_v49  ;;  %v3963_v27 = vsel %vm699_vm13, 1.0, %v3361_v49 }
 0x355   : > { %v1296_v32 = vpop.f32.mrf.mxu2 }
 0x356   : > { %v1297_v47 = vadd.f32 %v3914_v43, %v1296_v32  ;;  %v1287_v32 = vadd.f32 %v3914_v43, %v1286_v46  ;;  %v1282_v46 = vadd.f32 %v3914_v43, %v1281_v7 }
 0x358   : > { %v1315_v3 = vmul.f32 %v3922_v52, %v1297_v47  ;;  %v1313_v47 = vmul.f32 %v3940_v57, %v1292_v63  ;;  %v3958_v63 = vsel %vm700_vm12, 1.0, %v3361_v49  ;;  %v1309_v7 = vmul.f32 %v3963_v27, %v1282_v46 }
 0x359   : > { %v4022_v46 = vsel %vm691_vm9, 1.0, %v3361_v49 }
 0x35a   : > { %v1479_v25 = vmul.f32 %v1457_v5, %v1313_v47  ;;  %v3970_v5 = vsel %vm698_vm15, 1.0, %v3361_v49  ;;  %v1473_v47 = vmul.f32 %v3904_v20, %v1307_v14  ;;  %v1262_v20 = vadd.f32 %v3914_v43, %v3888_v11 }
 0x35c   : > { %v1301_v13 = vmul.f32 %v4022_v46, %v1262_v20 }
 0x35d   : > { %v1298_v56 = vpop.f32.mrf.mxu2 }
 0x35e   : > { %v1299_v4 = vadd.f32 %v3914_v43, %v1298_v56  ;;  %v1481_v56 = vmul.f32 %v1462_v40, %v1315_v3  ;;  %v1311_v40 = vmul.f32 %v3951_v54, %v1287_v32  ;;  %v1478_v3 = vmul.f32 %v1454_v28, %v1312_v38 }
 0x35f   : > { %v1308_v28 = vmul.f32 %v3970_v5, %v1279_v53  ;;  %v1471_v38 = vmul.f32 %v3894_v58, %v1305_v42  ;;  %v1626_v58 = vld [vmem:[#allocation2 + $0xb8] sm:$0xff]  ;;  %v1467_v53 = vmul.f32 %v3881_v61, %v1301_v13  ;;  %v1514_v61 = vld [vmem:[#allocation2 + $0x80] sm:$0xff] }
 0x360   : > { %v1316_v22 = vmul.f32 %v3932_v44, %v1299_v4  ;;  %v1480_v4 = vmul.f32 %v1459_v51, %v1314_v8  ;;  %v1310_v51 = vmul.f32 %v3958_v63, %v1284_v48  ;;  %v1477_v50 = vmul.f32 %v1452_v1, %v1311_v40  ;;  %1535 = vmatpush.msrb.mxu1 %v1514_v61 }
 0x361   : > { %v1475_v1 = vmul.f32 %v3910_v30, %v1309_v7  ;;  %v1474_v59 = vmul.f32 %v3908_v23, %v1308_v28  ;;  %v1267_v30 = vadd.f32 %v3914_v43, %v3896_v0  ;;  %v1264_v23 = vadd.f32 %v3914_v43, %v3892_v62  ;;  %v1993_v28 = vld [vmem:[#allocation2 + $0xd8] sm:$0xff] }
 0x362   : > { %v1482_v52 = vmul.f32 %v1464_v34, %v1316_v22  ;;  %v1488_v8 = vpack.c.bf16 %v1478_v3, %v1477_v50  ;;  %v1476_v22 = vmul.f32 %v3912_v37, %v1310_v51  ;;  %v1269_v37 = vadd.f32 %v3914_v43, %v3898_v41  ;;  %v1994_v3 = vld [vmem:[#allocation2 + $0xe0] sm:$0xff] }
 0x363   : > { %v1306_v34 = vmul.f32 %v3986_v18, %v1274_v26  ;;  %v4002_v41 = vsel %vm694_vm5, 1.0, %v3361_v49  ;;  %v1486_v48 = vpack.c.bf16 %v1474_v59, %v1473_v47  ;;  %v4009_v0 = vsel %vm693_vm6, 1.0, %v3361_v49  ;;  %v1992_v26 = vld [vmem:[#allocation2 + $0xd0] sm:$0xff] }
 0x364   : > { %v1490_v45 = vpack.c.bf16 %v1482_v52, %v1481_v56  ;;  %v1489_v52 = vpack.c.bf16 %v1480_v4, %v1479_v25  ;;  %v1487_v32 = vpack.c.bf16 %v1476_v22, %v1475_v1  ;;  %v1304_v56 = vmul.f32 %v4002_v41, %v1269_v37  ;;  %v1627_v25 = vld [vmem:[#allocation2 + $0xc0] sm:$0xff] }
 0x365   : > { %v1472_v29 = vmul.f32 %v3900_v17, %v1306_v34  ;;  %v1303_v19 = vmul.f32 %v4009_v0, %v1267_v30  ;;  %v4017_v62 = vsel %vm692_vm8, 1.0, %v3361_v49  ;;  %v1628_v51 = vpack.c.bf16 %v1627_v25, %v1626_v58  ;;  %v1511_v49 = vld [vmem:[#allocation2 + $0x68] sm:$0xff] }
 0x366   : > { %1497 = vmatpush.bf16.msrb.mxu0 %v1490_v45  ;;  %v1302_v45 = vmul.f32 %v4017_v62, %v1264_v23  ;;  %v1470_v17 = vmul.f32 %v3890_v35, %v1304_v56  ;;  %v2911_v35 = vld [vmem:[%s4386_s3] sm:$0xff] }
 0x367   : > { %v1485_v4 = vpack.c.bf16 %v1472_v29, %v1471_v38  ;;  %v1469_v11 = vmul.f32 %v3886_v10, %v1303_v19  ;;  %v1512_v10 = vld [vmem:[#allocation2 + $0x70] sm:$0xff] }
 0x368   : > { %v1468_v40 = vmul.f32 %v3884_v9, %v1302_v45  ;;  %v1513_v9 = vld [vmem:[#allocation2 + $0x78] sm:$0xff] }
 0x369   : > { %v1484_v43 = vpack.c.bf16 %v1470_v17, %v1469_v11  ;;  %1536 = vmatpush.msrb.mxu1 %v1513_v9 }
 0x36a   : > { %1498 = vmatpush.bf16.msrb.mxu0 %v1489_v52  ;;  %v1483_v52 = vpack.c.bf16 %v1468_v40, %v1467_v53 }
 0x36b   : > { %1537 = vmatpush.msrb.mxu1 %v1512_v10 }
 0x36d   : > { %1538 = vmatpush.msrb.mxu1 %v1511_v49 }
 0x36e   : > { %1499 = vmatpush.bf16.msrb.mxu0 %v1488_v8  ;;  %v1996_v8 = vpack.c.bf16 %v1993_v28, %v1992_v26 }
 0x372   : > { %1500 = vmatpush.bf16.msrb.mxu0 %v1487_v32 }
 0x376   : > { %1501 = vmatpush.bf16.msrb.mxu0 %v1486_v48 }
 0x37a   : > { %1502 = vmatpush.bf16.msrb.mxu0 %v1485_v4 }
 0x37e   : > { %1503 = vmatpush.bf16.msrb.mxu0 %v1484_v43 }
 0x382   : > { %1504 = vmatpush.bf16.msrb.mxu0 %v1483_v52 }
 0x385   : > { %1505 = vmatmul.bf16.vlgmr.msrb.gmra.mxu0 %v2911_v35 }
 0x386   : > { %1638 = vmatpush.bf16.msra.mxu0 %v1628_v51 }
 0x395   : > { %2836 = vmatmul.msk.bf16.vlgmr.msra.gmra.mxu0 %vm320_vm0, %v3580_v24 }
 0x3a5   : > { %2837 = vmatmul.msk.bf16.gmra.mxu0 %vm320_vm0, %v3604_v60 }
 0x3b5   : > { %2838 = vmatmul.msk.bf16.gmra.mxu0 %vm320_vm0, %v3628_v36  ;;  %v4049_v36 = vld [vmem:[#allocation2 + $0xc8] ss:$0 sm:$0xff] }
 0x3c5   : > { %2839 = vmatmul.msk.bf16.gmra.mxu0 %vm320_vm0, %v3652_v12 }
 0x3d5   : > { %2840 = vmatmul.msk.bf16.gmra.mxu0 %vm320_vm0, %v3676_v55 }
 0x3e5   : > { %2841 = vmatmul.msk.bf16.gmra.mxu0 %vm320_vm0, %v3700_v39 }
 0x3f5   : > { %2842 = vmatmul.msk.bf16.gmra.mxu0 %vm320_vm0, %v3717_v16  ;;  %v1997_v16 = vpack.c.bf16 %v1995_v6, %v1994_v3 }
 0x3f7   : > { %2030 = vmatpush.bf16.msra.mxu1 %v1997_v16 }
 0x3fb   : > { %2031 = vmatpush.bf16.msra.mxu1 %v1996_v8 }
 0x402   : > { %v1506_v24 = vpop.f32.mrf.mxu0 }
 0x403   : > { %2829 = vmatmul.msk.f32.vlgmr.msrb.gmra.mxu1 %vm1227_vm14, %v1506_v24 }
 0x405   : > { %2843 = vmatmul.msk.bf16.gmra.mxu0 %vm320_vm0, %v3722_v31 }
 0x40a   : > { %v1508_v60 = vpop.f32.mrf.mxu0 }
 0x40b   : > { %2830 = vmatmul.msk.f32.gmra.mxu1 %vm1227_vm14, %v1508_v60 }
 0x412   : > { %v1640_v12 = vpop.f32.mrf.mxu0 }
 0x413   : > { %v4052_v55 = vadd.f32 %v4049_v36, %v1640_v12 }
 0x415   : > { %v1728_v39 = vand.u32 2147483647, %v4052_v55  ;;  %v1680_v40 = vmax.f32 %v4052_v55, 0.0  ;;  %vm1696_vm11 = vcmp.ne.f32.partialorder %v4052_v55, %v4052_v55 }
 0x417   : > { %v1744_v7 = vsub.f32 0.0, %v1728_v39 }
 0x419   : > { %v1760_v50 = vmul.f32 1.442695, %v1744_v7 }
 0x41a   : > { %v1642_v31 = vpop.f32.mrf.mxu0 }
 0x41b   : > { %3162 = vpow2.f32 %v1760_v50  ;;  %v1643_v22 = vadd.f32 %v4049_v36, %v1642_v31 }
 0x41d   : > { %v1729_v21 = vand.u32 2147483647, %v1643_v22  ;;  %v1681_v12 = vmax.f32 %v1643_v22, 0.0  ;;  %vm1697_vm13 = vcmp.ne.f32.partialorder %v1643_v22, %v1643_v22 }
 0x41f   : > { %v1745_v14 = vsub.f32 0.0, %v1729_v21 }
 0x421   : > { %v3163_v1 = vpop.eup %3162  ;;  %v1762_v37 = vmul.f32 1.442695, %v1745_v14 }
 0x422   : > { %v1792_v34 = vadd.f32 1.0, %v3163_v1  ;;  %v1645_v32 = vpop.f32.mrf.mxu0  ;;  %v1795_v30 = vmul.f32 -0.5, %v3163_v1  ;;  %v1798_v48 = vand.u32 2147483647, %v3163_v1 }
 0x423   : > { %3164 = vpow2.f32 %v1762_v37  ;;  %v4057_v59 = vadd.f32 %v4049_v36, %v1645_v32 }
 0x424   : > { %3166 = vlog2.f32 %v1792_v34  ;;  %v1796_v23 = vadd.f32 1.0, %v1795_v30  ;;  %vm1799_vm10 = vcmp.lt.f32.partialorder %v1798_v48, 0.0004427343 }
 0x425   : > { %v1730_v42 = vand.u32 2147483647, %v4057_v59  ;;  %v1682_v48 = vmax.f32 %v4057_v59, 0.0  ;;  %vm1698_vm1 = vcmp.ne.f32.partialorder %v4057_v59, %v4057_v59 }
 0x426   : > { %v1797_v13 = vmul.f32 %v3163_v1, %v1796_v23 }
 0x427   : > { %v1746_v47 = vsub.f32 0.0, %v1730_v42 }
 0x429   : > { %v3165_v56 = vpop.eup %3164  ;;  %v1764_v29 = vmul.f32 1.442695, %v1746_v47 }
 0x42a   : > { %v3167_v20 = vpop.eup %3166  ;;  %v1801_v19 = vadd.f32 1.0, %v3165_v56  ;;  %v1647_v38 = vpop.f32.mrf.mxu0  ;;  %v1804_v4 = vmul.f32 -0.5, %v3165_v56  ;;  %v1807_v53 = vand.u32 2147483647, %v3165_v56 }
 0x42b   : > { %v1794_v45 = vmul.f32 0.6931472, %v3167_v20  ;;  %3168 = vpow2.f32 %v1764_v29  ;;  %v4061_v17 = vadd.f32 %v4049_v36, %v1647_v38 }
 0x42c   : > { %3170 = vlog2.f32 %v1801_v19  ;;  %v1805_v58 = vadd.f32 1.0, %v1804_v4  ;;  %vm1808_vm12 = vcmp.lt.f32.partialorder %v1807_v53, 0.0004427343 }
 0x42d   : > { %v1731_v11 = vand.u32 2147483647, %v4061_v17  ;;  %v1800_v43 = vsel %vm1799_vm10, %v1797_v13, %v1794_v45  ;;  %v1683_v53 = vmax.f32 %v4061_v17, 0.0  ;;  %vm1699_vm3 = vcmp.ne.f32.partialorder %v4061_v17, %v4061_v17 }
 0x42e   : > { %v1936_v52 = vadd.f32 %v1800_v43, %v1680_v40  ;;  %v1806_v24 = vmul.f32 %v3165_v56, %v1805_v58 }
 0x42f   : > { %v1747_v25 = vsub.f32 0.0, %v1731_v11 }
 0x430   : > { %v1952_v3 = vsel %vm1696_vm11, %v4052_v55, %v1936_v52 }
 0x431   : > { %v3169_v51 = vpop.eup %3168  ;;  %v1766_v35 = vmul.f32 1.442695, %v1747_v25  ;;  %v2844_v26 = vadd.f32 -0.6931472, %v1952_v3 }
 0x432   : > { %v3171_v61 = vpop.eup %3170  ;;  %v1810_v9 = vadd.f32 1.0, %v3169_v51  ;;  %v1650_v10 = vpop.f32.mrf.mxu0  ;;  %v1813_v39 = vmul.f32 -0.5, %v3169_v51  ;;  %v1816_v14 = vand.u32 2147483647, %v3169_v51 }
 0x433   : > { %v1803_v49 = vmul.f32 0.6931472, %v3171_v61  ;;  %3172 = vpow2.f32 %v1766_v35  ;;  %v4068_v60 = vadd.f32 %v4049_v36, %v1650_v10 }
 0x434   : > { %3174 = vlog2.f32 %v1810_v9  ;;  %v1814_v31 = vadd.f32 1.0, %v1813_v39  ;;  %vm1817_vm15 = vcmp.lt.f32.partialorder %v1816_v14, 0.0004427343 }
 0x435   : > { %v1809_v6 = vsel %vm1808_vm12, %v1806_v24, %v1803_v49  ;;  %v1732_v16 = vand.u32 2147483647, %v4068_v60  ;;  %vm1700_vm6 = vcmp.ne.f32.partialorder %v4068_v60, %v4068_v60 }
 0x436   : > { %v1937_v7 = vadd.f32 %v1809_v6, %v1681_v12  ;;  %v1815_v23 = vmul.f32 %v3169_v51, %v1814_v31 }
 0x437   : > { %v1748_v50 = vsub.f32 0.0, %v1732_v16 }
 0x438   : > { %v1953_v28 = vsel %vm1697_vm13, %v1643_v22, %v1937_v7 }
 0x439   : > { %v3173_v8 = vpop.eup %3172  ;;  %v2845_v21 = vadd.f32 -0.6931472, %v1953_v28  ;;  %v1768_v1 = vmul.f32 1.442695, %v1748_v50 }
 0x43a   : > { %v3175_v37 = vpop.eup %3174  ;;  %v1819_v34 = vadd.f32 1.0, %v3173_v8  ;;  %v1822_v32 = vmul.f32 -0.5, %v3173_v8  ;;  %v1652_v30 = vpop.f32.mrf.mxu0  ;;  %v1825_v19 = vand.u32 2147483647, %v3173_v8 }
 0x43b   : > { %v1984_v42 = vpack.c.bf16 %v2845_v21, %v2844_v26  ;;  %v1812_v47 = vmul.f32 0.6931472, %v3175_v37  ;;  %3176 = vpow2.f32 %v1768_v1  ;;  %v4073_v55 = vadd.f32 %v4049_v36, %v1652_v30 }
 0x43c   : > { %3178 = vlog2.f32 %v1819_v34  ;;  %v1823_v29 = vadd.f32 1.0, %v1822_v32  ;;  %vm1826_vm2 = vcmp.lt.f32.partialorder %v1825_v19, 0.0004427343  ;;  %v1684_v1 = vmax.f32 %v4068_v60, 0.0 }
 0x43d   : > { %v1733_v22 = vand.u32 2147483647, %v4073_v55  ;;  %2860 = vmatmul.msk.bf16.vlgmr.msra.gmra.mxu1 %vm1227_vm14, %v1984_v42  ;;  %v1818_v56 = vsel %vm1817_vm15, %v1815_v23, %v1812_v47  ;;  %v1685_v19 = vmax.f32 %v4073_v55, 0.0  ;;  %vm1701_vm9 = vcmp.ne.f32.partialorder %v4073_v55, %v4073_v55 }
 0x43e   : > { %v1938_v45 = vadd.f32 %v1818_v56, %v1682_v48  ;;  %v1824_v58 = vmul.f32 %v3173_v8, %v1823_v29 }
 0x43f   : > { %v1749_v20 = vsub.f32 0.0, %v1733_v22 }
 0x440   : > { %v1954_v61 = vsel %vm1698_vm1, %v4057_v59, %v1938_v45 }
 0x441   : > { %v3177_v38 = vpop.eup %3176  ;;  %v1770_v4 = vmul.f32 1.442695, %v1749_v20  ;;  %v2846_v12 = vadd.f32 -0.6931472, %v1954_v61 }
 0x442   : > { %v3179_v13 = vpop.eup %3178  ;;  %v1828_v11 = vadd.f32 1.0, %v3177_v38  ;;  %v1655_v43 = vpop.f32.mrf.mxu0  ;;  %v1831_v51 = vmul.f32 -0.5, %v3177_v38  ;;  %v1834_v3 = vand.u32 2147483647, %v3177_v38 }
 0x443   : > { %v1821_v40 = vmul.f32 0.6931472, %v3179_v13  ;;  %3180 = vpow2.f32 %v1770_v4  ;;  %v4081_v25 = vadd.f32 %v4049_v36, %v1655_v43 }
 0x444   : > { %3182 = vlog2.f32 %v1828_v11  ;;  %v1832_v49 = vadd.f32 1.0, %v1831_v51  ;;  %vm1835_vm5 = vcmp.lt.f32.partialorder %v1834_v3, 0.0004427343 }
 0x445   : > { %v1827_v52 = vsel %vm1826_vm2, %v1824_v58, %v1821_v40  ;;  %v1734_v35 = vand.u32 2147483647, %v4081_v25  ;;  %vm1702_vm11 = vcmp.ne.f32.partialorder %v4081_v25, %v4081_v25 }
 0x446   : > { %v1939_v9 = vadd.f32 %v1827_v52, %v1683_v53  ;;  %v1833_v21 = vmul.f32 %v3177_v38, %v1832_v49 }
 0x447   : > { %v1750_v10 = vsub.f32 0.0, %v1734_v35 }
 0x448   : > { %v1955_v24 = vsel %vm1699_vm3, %v4061_v17, %v1939_v9 }
 0x449   : > { %v3181_v39 = vpop.eup %3180  ;;  %v1772_v6 = vmul.f32 1.442695, %v1750_v10  ;;  %v2847_v16 = vadd.f32 -0.6931472, %v1955_v24 }
 0x44a   : > { %v3183_v7 = vpop.eup %3182  ;;  %v1837_v50 = vadd.f32 1.0, %v3181_v39  ;;  %v1840_v26 = vmul.f32 -0.5, %v3181_v39  ;;  %v1657_v28 = vpop.f32.mrf.mxu0  ;;  %v1843_v32 = vand.u32 2147483647, %v3181_v39 }
 0x44b   : > { %v1830_v31 = vmul.f32 0.6931472, %v3183_v7  ;;  %3184 = vpow2.f32 %v1772_v6  ;;  %v4090_v59 = vadd.f32 %v4049_v36, %v1657_v28  ;;  %v1985_v8 = vpack.c.bf16 %v2847_v16, %v2846_v12 }
 0x44c   : > { %3186 = vlog2.f32 %v1837_v50  ;;  %v1841_v37 = vadd.f32 1.0, %v1840_v26  ;;  %vm1844_vm8 = vcmp.lt.f32.partialorder %v1843_v32, 0.0004427343  ;;  %v1686_v16 = vmax.f32 %v4081_v25, 0.0 }
 0x44d   : > { %v1735_v17 = vand.u32 2147483647, %v4090_v59  ;;  %2861 = vmatmul.msk.bf16.gmra.mxu1 %vm1227_vm14, %v1985_v8  ;;  %v1836_v14 = vsel %vm1835_vm5, %v1833_v21, %v1830_v31  ;;  %v1687_v32 = vmax.f32 %v4090_v59, 0.0  ;;  %vm1703_vm13 = vcmp.ne.f32.partialorder %v4090_v59, %v4090_v59 }
 0x44e   : > { %v1940_v42 = vadd.f32 %v1836_v14, %v1684_v1  ;;  %v1842_v29 = vmul.f32 %v3181_v39, %v1841_v37 }
 0x44f   : > { %v1751_v34 = vsub.f32 0.0, %v1735_v17 }
 0x450   : > { %v1956_v13 = vsel %vm1700_vm6, %v4068_v60, %v1940_v42 }
 0x451   : > { %v3185_v30 = vpop.eup %3184  ;;  %v1774_v47 = vmul.f32 1.442695, %v1751_v34  ;;  %v2848_v53 = vadd.f32 -0.6931472, %v1956_v13 }
 0x452   : > { %v3187_v23 = vpop.eup %3186  ;;  %v1846_v22 = vadd.f32 1.0, %v3185_v30  ;;  %v1660_v56 = vpop.f32.mrf.mxu0  ;;  %v1849_v38 = vmul.f32 -0.5, %v3185_v30  ;;  %v1852_v52 = vand.u32 2147483647, %v3185_v30 }
 0x453   : > { %v1839_v48 = vmul.f32 0.6931472, %v3187_v23  ;;  %3188 = vpow2.f32 %v1774_v47  ;;  %v4098_v20 = vadd.f32 %v4049_v36, %v1660_v56 }
 0x454   : > { %3190 = vlog2.f32 %v1846_v22  ;;  %v1850_v40 = vadd.f32 1.0, %v1849_v38  ;;  %vm1853_vm10 = vcmp.lt.f32.partialorder %v1852_v52, 0.0004427343 }
 0x455   : > { %v1845_v45 = vsel %vm1844_vm8, %v1842_v29, %v1839_v48  ;;  %v1736_v4 = vand.u32 2147483647, %v4098_v20  ;;  %vm1704_vm2 = vcmp.ne.f32.partialorder %v4098_v20, %v4098_v20 }
 0x456   : > { %v1941_v11 = vadd.f32 %v1845_v45, %v1685_v19  ;;  %v1851_v3 = vmul.f32 %v3185_v30, %v1850_v40 }
 0x457   : > { %v1752_v43 = vsub.f32 0.0, %v1736_v4 }
 0x458   : > { %v1957_v58 = vsel %vm1701_vm9, %v4073_v55, %v1941_v11 }
 0x459   : > { %v3189_v51 = vpop.eup %3188  ;;  %v1776_v35 = vmul.f32 1.442695, %v1752_v43  ;;  %v2849_v61 = vadd.f32 -0.6931472, %v1957_v58 }
 0x45a   : > { %v3191_v9 = vpop.eup %3190  ;;  %v1855_v10 = vadd.f32 1.0, %v3189_v51  ;;  %v1858_v49 = vmul.f32 -0.5, %v3189_v51  ;;  %v1662_v24 = vpop.f32.mrf.mxu0  ;;  %v1861_v26 = vand.u32 2147483647, %v3189_v51 }
 0x45b   : > { %v1848_v12 = vmul.f32 0.6931472, %v3191_v9  ;;  %3192 = vpow2.f32 %v1776_v35  ;;  %v4107_v60 = vadd.f32 %v4049_v36, %v1662_v24  ;;  %v1986_v39 = vpack.c.bf16 %v2849_v61, %v2848_v53 }
 0x45c   : > { %3194 = vlog2.f32 %v1855_v10  ;;  %v1859_v7 = vadd.f32 1.0, %v1858_v49  ;;  %vm1862_vm12 = vcmp.lt.f32.partialorder %v1861_v26, 0.0004427343  ;;  %v1688_v10 = vmax.f32 %v4098_v20, 0.0 }
 0x45d   : > { %v1737_v55 = vand.u32 2147483647, %v4107_v60  ;;  %2862 = vmatmul.msk.bf16.gmra.mxu1 %vm1227_vm14, %v1986_v39  ;;  %v1854_v6 = vsel %vm1853_vm10, %v1851_v3, %v1848_v12  ;;  %v1689_v26 = vmax.f32 %v4107_v60, 0.0  ;;  %vm1705_vm3 = vcmp.ne.f32.partialorder %v4107_v60, %v4107_v60 }
 0x45e   : > { %v1942_v31 = vadd.f32 %v1854_v6, %v1686_v16  ;;  %v1860_v37 = vmul.f32 %v3189_v51, %v1859_v7 }
 0x45f   : > { %v1753_v50 = vsub.f32 0.0, %v1737_v55 }
 0x460   : > { %v1958_v30 = vsel %vm1702_vm11, %v4081_v25, %v1942_v31 }
 0x461   : > { %v3193_v28 = vpop.eup %3192  ;;  %v1778_v8 = vmul.f32 1.442695, %v1753_v50  ;;  %v2850_v48 = vadd.f32 -0.6931472, %v1958_v30 }
 0x462   : > { %v3195_v21 = vpop.eup %3194  ;;  %v1864_v17 = vadd.f32 1.0, %v3193_v28  ;;  %v1665_v14 = vpop.f32.mrf.mxu0  ;;  %v1867_v47 = vmul.f32 -0.5, %v3193_v28  ;;  %v1870_v11 = vand.u32 2147483647, %v3193_v28 }
 0x463   : > { %v1857_v1 = vmul.f32 0.6931472, %v3195_v21  ;;  %3196 = vpow2.f32 %v1778_v8  ;;  %v4113_v34 = vadd.f32 %v4049_v36, %v1665_v14 }
 0x464   : > { %3198 = vlog2.f32 %v1864_v17  ;;  %v1868_v45 = vadd.f32 1.0, %v1867_v47  ;;  %vm1871_vm15 = vcmp.lt.f32.partialorder %v1870_v11, 0.0004427343 }
 0x465   : > { %v1863_v42 = vsel %vm1862_vm12, %v1860_v37, %v1857_v1  ;;  %v1738_v23 = vand.u32 2147483647, %v4113_v34  ;;  %vm1706_vm9 = vcmp.ne.f32.partialorder %v4113_v34, %v4113_v34 }
 0x466   : > { %v1943_v22 = vadd.f32 %v1863_v42, %v1687_v32  ;;  %v1869_v52 = vmul.f32 %v3193_v28, %v1868_v45  ;;  %v1587_v45 = vld [vmem:[#allocation2 + $0xa8] sm:$0xf] }
 0x467   : > { %v1754_v56 = vsub.f32 0.0, %v1738_v23  ;;  %2833 = vmatpush.msk.msrb.mxu2 %vm1326_vm4, %v1587_v45 }
 0x468   : > { %v1959_v29 = vsel %vm1703_vm13, %v4090_v59, %v1943_v22 }
 0x469   : > { %v3197_v19 = vpop.eup %3196  ;;  %v2851_v38 = vadd.f32 -0.6931472, %v1959_v29  ;;  %v1780_v4 = vmul.f32 1.442695, %v1754_v56 }
 0x46a   : > { %v3199_v13 = vpop.eup %3198  ;;  %v1873_v43 = vadd.f32 1.0, %v3197_v19  ;;  %v1876_v25 = vmul.f32 -0.5, %v3197_v19  ;;  %v1667_v40 = vpop.f32.mrf.mxu0  ;;  %v1879_v49 = vand.u32 2147483647, %v3197_v19 }
 0x46b   : > { %v1866_v58 = vmul.f32 0.6931472, %v3199_v13  ;;  %3200 = vpow2.f32 %v1780_v4  ;;  %v4124_v53 = vadd.f32 %v4049_v36, %v1667_v40  ;;  %v1987_v51 = vpack.c.bf16 %v2851_v38, %v2850_v48 }
 0x46c   : > { %3202 = vlog2.f32 %v1873_v43  ;;  %v1877_v61 = vadd.f32 1.0, %v1876_v25  ;;  %vm1880_vm1 = vcmp.lt.f32.partialorder %v1879_v49, 0.0004427343  ;;  %v1586_v43 = vld [vmem:[#allocation2 + $0xa0] sm:$0xff] }
 0x46d   : > { %v1739_v35 = vand.u32 2147483647, %v4124_v53  ;;  %2863 = vmatmul.msk.bf16.gmra.mxu1 %vm1227_vm14, %v1987_v51  ;;  %v1872_v59 = vsel %vm1871_vm15, %v1869_v52, %v1866_v58  ;;  %1610 = vmatpush.msrb.mxu2 %v1586_v43  ;;  %vm1707_vm8 = vcmp.ne.f32.partialorder %v4124_v53, %v4124_v53 }
 0x46e   : > { %v1944_v3 = vadd.f32 %v1872_v59, %v1688_v10  ;;  %v1878_v7 = vmul.f32 %v3197_v19, %v1877_v61  ;;  %v3026_v19 = vld [vmem:[#allocation2 + $0x88] ss:$0 sm:$0xff]  ;;  %v1585_v61 = vld [vmem:[#allocation2 + $0x98] sm:$0xff] }
 0x46f   : > { %v1755_v9 = vsub.f32 0.0, %v1739_v35  ;;  %1611 = vmatpush.msrb.mxu2 %v1585_v61 }
 0x470   : > { %v1960_v8 = vsel %vm1704_vm2, %v4098_v20, %v1944_v3 }
 0x471   : > { %v3201_v24 = vpop.eup %3200  ;;  %v1782_v12 = vmul.f32 1.442695, %v1755_v9  ;;  %v2852_v32 = vadd.f32 -0.6931472, %v1960_v8 }
 0x472   : > { %v3203_v39 = vpop.eup %3202  ;;  %v1882_v55 = vadd.f32 1.0, %v3201_v24  ;;  %v1670_v6 = vpop.f32.mrf.mxu0  ;;  %v1885_v1 = vmul.f32 -0.5, %v3201_v24  ;;  %v1888_v38 = vand.u32 2147483647, %v3201_v24 }
 0x473   : > { %v1875_v16 = vmul.f32 0.6931472, %v3203_v39  ;;  %3204 = vpow2.f32 %v1782_v12  ;;  %v4130_v50 = vadd.f32 %v4049_v36, %v1670_v6  ;;  %v1691_v6 = vmax.f32 %v4124_v53, 0.0 }
 0x474   : > { %3206 = vlog2.f32 %v1882_v55  ;;  %v1886_v29 = vadd.f32 1.0, %v1885_v1  ;;  %vm4146_vm5 = vcmp.lt.f32.partialorder %v1888_v38, 0.0004427343  ;;  %v1584_v55 = vld [vmem:[#allocation2 + $0x90] sm:$0xff] }
 0x475   : > { %v1881_v28 = vsel %vm1880_vm1, %v1878_v7, %v1875_v16  ;;  %v1740_v31 = vand.u32 2147483647, %v4130_v50  ;;  %1612 = vmatpush.msrb.mxu2 %v1584_v55  ;;  %vm1708_vm12 = vcmp.ne.f32.partialorder %v4130_v50, %v4130_v50 }
 0x476   : > { %v1945_v21 = vadd.f32 %v1881_v28, %v1689_v26  ;;  %v1887_v25 = vmul.f32 %v3201_v24, %v1886_v29  ;;  %v1690_v24 = vmax.f32 %v4113_v34, 0.0 }
 0x477   : > { %v1756_v17 = vsub.f32 0.0, %v1740_v31 }
 0x478   : > { %v1961_v14 = vsel %vm1705_vm3, %v4107_v60, %v1945_v21 }
 0x479   : > { %v3205_v37 = vpop.eup %3204  ;;  %v2853_v30 = vadd.f32 -0.6931472, %v1961_v14  ;;  %v1784_v42 = vmul.f32 1.442695, %v1756_v17 }
 0x47a   : > { %v1891_v47 = vadd.f32 1.0, %v3205_v37  ;;  %v1672_v23 = vpop.f32.mrf.mxu0  ;;  %v3207_v22 = vpop.eup %3206  ;;  %v1894_v56 = vmul.f32 -0.5, %v3205_v37  ;;  %v1897_v40 = vand.u32 2147483647, %v3205_v37 }
 0x47b   : > { %3208 = vpow2.f32 %v1784_v42  ;;  %v4141_v48 = vadd.f32 %v4049_v36, %v1672_v23  ;;  %v1988_v20 = vpack.c.bf16 %v2853_v30, %v2852_v32  ;;  %v1884_v4 = vmul.f32 0.6931472, %v3207_v22 }
 0x47c   : > { %3210 = vlog2.f32 %v1891_v47  ;;  %v1895_v13 = vadd.f32 1.0, %v1894_v56  ;;  %vm1898_vm6 = vcmp.lt.f32.partialorder %v1897_v40, 0.0004427343 }
 0x47d   : > { %v1741_v60 = vand.u32 2147483647, %v4141_v48  ;;  %2864 = vmatmul.msk.bf16.gmra.mxu1 %vm1227_vm14, %v1988_v20  ;;  %v1890_v10 = vsel %vm4146_vm5, %v1887_v25, %v1884_v4  ;;  %vm1709_vm13 = vcmp.ne.f32.partialorder %v4141_v48, %v4141_v48  ;;  %v3255_v25 = vld [vmem:[%s4385_s2 + $0x28] sm:$0xff] }
 0x47e   : > { %v1896_v3 = vmul.f32 %v3205_v37, %v1895_v13  ;;  %v1946_v7 = vadd.f32 %v1890_v10, %v1690_v24  ;;  %v1692_v10 = vmax.f32 %v4130_v50, 0.0 }
 0x47f   : > { %v1757_v11 = vsub.f32 0.0, %v1741_v60 }
 0x480   : > { %v1540_v58 = vpop.f32.mrf.mxu1  ;;  %v1962_v30 = vsel %vm1706_vm9, %v4113_v34, %v1946_v7 }
 0x481   : > { %v3209_v51 = vpop.eup %3208  ;;  %v1786_v35 = vmul.f32 1.442695, %v1757_v11  ;;  %v4150_v59 = vadd.f32 %v3026_v19, %v1540_v58  ;;  %v2854_v34 = vadd.f32 -0.6931472, %v1962_v30 }
 0x482   : > { %v3211_v9 = vpop.eup %3210  ;;  %v1900_v49 = vadd.f32 1.0, %v3209_v51  ;;  %v1675_v12 = vpop.f32.mrf.mxu0  ;;  %v1903_v8 = vmul.f32 -0.5, %v3209_v51  ;;  %v1906_v56 = vand.u32 2147483647, %v3209_v51 }
 0x483   : > { %v1893_v39 = vmul.f32 0.6931472, %v3211_v9  ;;  %3212 = vpow2.f32 %v1786_v35  ;;  %v1552_v16 = vand.u32 2147483647, %v4150_v59  ;;  %v4158_v28 = vadd.f32 %v4049_v36, %v1675_v12 }
 0x484   : > { %3214 = vlog2.f32 %v1900_v49  ;;  %v1904_v22 = vadd.f32 1.0, %v1903_v8  ;;  %vm4174_vm10 = vcmp.lt.f32.partialorder %v1906_v56, 0.0004427343  ;;  %vm1548_vm1 = vcmp.ne.f32.partialorder %v4150_v59, %v4150_v59 }
 0x485   : > { %v1899_v26 = vsel %vm1898_vm6, %v1896_v3, %v1893_v39  ;;  %v1554_v21 = vsub.f32 0.0, %v1552_v16  ;;  %v1742_v17 = vand.u32 2147483647, %v4158_v28  ;;  %v1693_v16 = vmax.f32 %v4141_v48, 0.0 }
 0x486   : > { %v1947_v31 = vadd.f32 %v1899_v26, %v1691_v6  ;;  %vm1710_vm6 = vcmp.ne.f32.partialorder %v4158_v28, %v4158_v28 }
 0x487   : > { %v1556_v1 = vmul.f32 1.442695, %v1554_v21  ;;  %v1758_v42 = vsub.f32 0.0, %v1742_v17 }
 0x488   : > { %v1963_v14 = vsel %vm1707_vm8, %v4124_v53, %v1947_v31  ;;  %v1543_v37 = vpop.f32.mrf.mxu1 }
 0x489   : > { %v3213_v32 = vpop.eup %3212  ;;  %v4167_v47 = vadd.f32 %v3026_v19, %v1543_v37  ;;  %3216 = vpow2.f32 %v1556_v1  ;;  %v2855_v38 = vadd.f32 -0.6931472, %v1963_v14  ;;  %v1788_v45 = vmul.f32 1.442695, %v1758_v42 }
 0x48a   : > { %v3215_v23 = vpop.eup %3214  ;;  %v1909_v20 = vadd.f32 1.0, %v3213_v32  ;;  %v1677_v29 = vpop.f32.mrf.mxu0  ;;  %v1912_v60 = vmul.f32 -0.5, %v3213_v32  ;;  %v1905_v19 = vmul.f32 %v3209_v51, %v1904_v22  ;;  %v1915_v35 = vand.u32 2147483647, %v3213_v32 }
 0x48b   : > { %v4170_v4 = vadd.f32 %v4049_v36, %v1677_v29  ;;  %v1902_v53 = vmul.f32 0.6931472, %v3215_v23  ;;  %v1553_v13 = vand.u32 2147483647, %v4167_v47  ;;  %v1989_v58 = vpack.c.bf16 %v2855_v38, %v2854_v34 }
 0x48c   : > { %3218 = vlog2.f32 %v1909_v20  ;;  %v1913_v40 = vadd.f32 1.0, %v1912_v60  ;;  %vm1916_vm11 = vcmp.lt.f32.partialorder %v1915_v35, 0.0004427343  ;;  %v1546_v42 = vmax.f32 %v4150_v59, 0.0 }
 0x48d   : > { %3220 = vpow2.f32 %v1788_v45  ;;  %v1555_v11 = vsub.f32 0.0, %v1553_v13  ;;  %v1743_v43 = vand.u32 2147483647, %v4170_v4  ;;  %v1908_v36 = vsel %vm4174_vm10, %v1905_v19, %v1902_v53  ;;  %2865 = vmatmul.msk.bf16.gmra.mxu1 %vm1227_vm14, %v1989_v58 }
 0x48e   : > { %v1948_v3 = vadd.f32 %v1908_v36, %v1692_v10  ;;  %v1914_v6 = vmul.f32 %v3213_v32, %v1913_v40  ;;  %vm1549_vm8 = vcmp.ne.f32.partialorder %v4167_v47, %v4167_v47  ;;  %vm1711_vm9 = vcmp.ne.f32.partialorder %v4170_v4, %v4170_v4 }
 0x48f   : > { %v3217_v52 = vpop.eup %3216  ;;  %v1558_v61 = vmul.f32 1.442695, %v1555_v11  ;;  %v1759_v9 = vsub.f32 0.0, %v1743_v43 }
 0x490   : > { %v1560_v49 = vadd.f32 1.0, %v3217_v52  ;;  %v1563_v12 = vmul.f32 -0.5, %v3217_v52  ;;  %v1566_v21 = vand.u32 2147483647, %v3217_v52  ;;  %v1964_v17 = vsel %vm1708_vm12, %v4130_v50, %v1948_v3 }
 0x491   : > { %3222 = vpow2.f32 %v1558_v61  ;;  %v1790_v24 = vmul.f32 1.442695, %v1759_v9  ;;  %v2856_v56 = vadd.f32 -0.6931472, %v1964_v17  ;;  %vm2375_vm12 = vcmask 1040384  }
 0x492   : > { %v3219_v51 = vpop.eup %3218  ;;  %3224 = vlog2.f32 %v1560_v49  ;;  %v1564_v8 = vadd.f32 1.0, %v1563_v12  ;;  %vm1567_vm15 = vcmp.lt.f32.partialorder %v1566_v21, 0.0004427343  ;;  %v1694_v49 = vmax.f32 %v4158_v28, 0.0 }
 0x493   : > { %v3221_v39 = vpop.eup %3220  ;;  %v1911_v55 = vmul.f32 0.6931472, %v3219_v51  ;;  %3226 = vpow2.f32 %v1790_v24  ;;  %v1547_v12 = vmax.f32 %v4167_v47, 0.0 }
 0x494   : > { %v1918_v7 = vadd.f32 1.0, %v3221_v39  ;;  %v1921_v14 = vmul.f32 -0.5, %v3221_v39  ;;  %v1565_v29 = vmul.f32 %v3217_v52, %v1564_v8  ;;  %v1924_v60 = vand.u32 2147483647, %v3221_v39 }
 0x495   : > { %v1917_v26 = vsel %vm1916_vm11, %v1914_v6, %v1911_v55  ;;  %v1695_v6 = vmax.f32 %v4170_v4, 0.0 }
 0x496   : > { %v1949_v31 = vadd.f32 %v1917_v26, %v1693_v16  ;;  %3228 = vlog2.f32 %v1918_v7  ;;  %v1922_v38 = vadd.f32 1.0, %v1921_v14  ;;  %vm4192_vm2 = vcmp.lt.f32.partialorder %v1924_v60, 0.0004427343 }
 0x497   : > { %v3223_v1 = vpop.eup %3222 }
 0x498   : > { %v1965_v37 = vsel %vm1709_vm13, %v4141_v48, %v1949_v31  ;;  %v3225_v32 = vpop.eup %3224  ;;  %v1569_v23 = vadd.f32 1.0, %v3223_v1  ;;  %v1572_v45 = vmul.f32 -0.5, %v3223_v1  ;;  %v1923_v43 = vmul.f32 %v3221_v39, %v1922_v38  ;;  %v4225_v38 = vld [vmem:[%s3461_s16 + $0x8] sm:$0xff] }
 0x499   : > { %v2857_v30 = vadd.f32 -0.6931472, %v1965_v37  ;;  %v3227_v22 = vpop.eup %3226  ;;  %v1562_v20 = vmul.f32 0.6931472, %v3225_v32  ;;  %v1575_v35 = vand.u32 2147483647, %v3223_v1 }
 0x49a   : > { %v1927_v50 = vadd.f32 1.0, %v3227_v22  ;;  %v1930_v34 = vmul.f32 -0.5, %v3227_v22  ;;  %3230 = vlog2.f32 %v1569_v23  ;;  %v1573_v58 = vadd.f32 1.0, %v1572_v45  ;;  %v2089_v23 = vld [vmem:[#allocation2 + $0xf8] sm:$0xff] }
 0x49b   : > { %v1568_v13 = vsel %vm1567_vm15, %v1565_v29, %v1562_v20  ;;  %v1990_v11 = vpack.c.bf16 %v2857_v30, %v2856_v56  ;;  %v1933_v9 = vand.u32 2147483647, %v3227_v22  ;;  %vm1576_vm3 = vcmp.lt.f32.partialorder %v1575_v35, 0.0004427343  ;;  %v2092_v30 = vld [vmem:[#allocation2 + $0x110] sm:$0xf] }
 0x49c   : > { %v3229_v53 = vpop.eup %3228  ;;  %v1578_v19 = vadd.f32 %v1568_v13, %v1546_v42  ;;  %3232 = vlog2.f32 %v1927_v50  ;;  %v1931_v52 = vadd.f32 1.0, %v1930_v34  ;;  %2868 = vmatpush.msk.msra.mxu2 %vm1326_vm4, %v2092_v30  ;;  %v2090_v42 = vld [vmem:[#allocation2 + $0x100] sm:$0xff]  ;;  %vm2371_vm13 = vcmask 138240  }
 0x49d   : > { %v1920_v48 = vmul.f32 0.6931472, %v3229_v53  ;;  %2866 = vmatmul.msk.bf16.gmra.mxu1 %vm1227_vm14, %v1990_v11  ;;  %vm1934_vm5 = vcmp.lt.f32.partialorder %v1933_v9, 0.0004427343  ;;  %v3250_v34 = vld [vmem:[%s4385_s2] sm:$0xff]  ;;  %v3253_v11 = vld [vmem:[%s4385_s2 + $0x18] sm:$0xff] }
 0x49e   : > { %v1580_v40 = vsel %vm1548_vm1, %v4150_v59, %v1578_v19  ;;  %v1574_v59 = vmul.f32 %v3223_v1, %v1573_v58  ;;  %v1932_v55 = vmul.f32 %v3227_v22, %v1931_v52  ;;  %v4217_v22 = vld [vmem:[%s3461_s16] sm:$0xff]  ;;  %v3251_v19 = vld [vmem:[%s4385_s2 + $0x8] sm:$0xff]  ;;  %v3256_v58 = vld [vmem:[%s4385_s2 + $0x30] sm:$0xff]  ;;  %s2701_s16 = sshll.u32 %s3455_s12, 1  ;;  %vm2408_vm15 = vcmask 1041408   ;;  %s245_s12 = sand.u32 1, %s3347_s19  }
 0x49f   : > { %v2831_v36 = vadd.f32 -0.6931472, %v1580_v40  ;;  %v1926_v61 = vsel %vm4192_vm2, %v1923_v43, %v1920_v48  ;;  %v3252_v48 = vld [vmem:[%s4385_s2 + $0x10] sm:$0xff]  ;;  %v3254_v43 = vld [vmem:[%s4385_s2 + $0x20] sm:$0xff]  ;;  %s256_s14 = scalar_lea.vmem %s4384_s1, %s2701_s16  ;;  %vm2477_vm1 = vcmp.gt.f32.partialorder %v4217_v22, 0.0  ;;  %vm2478_vm2 = vcmp.gt.f32.partialorder %v4225_v38, 0.0 }
 0x4a0   : > { %v3231_v10 = vpop.eup %3230  ;;  %v1950_v39 = vadd.f32 %v1926_v61, %v1694_v49  ;;  %v4264_v61 = vld [vmem:[#allocation2 + $0xf0] ss:$0 sm:$0xff]  ;;  %s2698_s17 = sshll.u32 %s245_s12, 1  ;;  %s2594_s9 = scalar_lea.sflag [#allocation4], %s245_s12 }
 0x4a1   : > { %2834 = vmatmul.msk.f32.vlgmr.msrb.gmra.mxu2 %vm1321_vm7, %v2831_v36  ;;  %v1571_v24 = vmul.f32 0.6931472, %v3231_v10  ;;  %v3257_v36 = vld [vmem:[%s4385_s2 + $0x38] sm:$0xff]  ;;  %s247_s6 = scalar_lea.vmem [#allocation5], %s2698_s17  ;;  %s3305_s16 = scalar_lea.hbm %s3304_s10, 2 }
 0x4a2   : > { %v3233_v51 = vpop.eup %3232  ;;  %v1966_v8 = vsel %vm1710_vm6, %v4158_v28, %v1950_v39  ;;  %v2091_v28 = vld [vmem:[#allocation2 + $0x108] sm:$0xff]  ;;  %s2606_s7 = sshll.u32 %s247_s6, 4  ;;  %p3306_p0 = scmp.ne.s32.totalorder %s3304_s10, %s3305_s16  ;;  %s2607_s7 = int_to_ptr.vmem [resolvable:$true] %s2606_s7 }
 0x4a3   : > { %v1929_v3 = vmul.f32 0.6931472, %v3233_v51  ;;  %v1577_v16 = vsel %vm1576_vm3, %v1574_v59, %v1571_v24  ;;  %v2858_v37 = vadd.f32 -0.6931472, %v1966_v8  ;;  %2115 = vmatpush.msra.mxu2 %v2091_v28  ;;  %vm2445_vm3 = vcmask 523264   ;;  %p3311_p4 = scmp.lt.s32.totalorder %s3309_s13, %s3305_s16 }
 0x4a4   : > { %v1579_v26 = vadd.f32 %v1577_v16, %v1547_v12  ;;  %p3307_p1 = pnand %p3306_p0, %p3433_p5 }
 0x4a5   : > { %v1935_v7 = vsel %vm1934_vm5, %v1932_v55, %v1929_v3  ;;  %2116 = vmatpush.msra.mxu2 %v2090_v42  ;;  %p3312_p7 = por %p3311_p4, %p3310_p3 }
 0x4a6   : > { %v1951_v31 = vadd.f32 %v1935_v7, %v1695_v6  ;;  %v1581_v21 = vsel %vm1549_vm8, %v4167_v47, %v1579_v26  ;;  %v3028_v47 = vld [vmem:[#allocation2 + $0xb0] ss:$0 sm:$0xff]  ;;  %p3308_p2 = pneg %p3307_p1 }
 0x4a7   : > { %v2832_v14 = vadd.f32 -0.6931472, %v1581_v21  ;;  %2117 = vmatpush.msra.mxu2 %v2089_v23 }
 0x4a8   : > { %v1967_v17 = vsel %vm1711_vm9, %v4170_v4, %v1951_v31  ;;  %p3313_p8 = pnand %p3312_p7, %p3308_p2 }
 0x4a9   : > { %v2859_v1 = vadd.f32 -0.6931472, %v1967_v17  ;;  %2835 = vmatmul.msk.f32.gmra.mxu2 %vm1321_vm7, %v2832_v14 }
 0x4ab   : > { %v1991_v32 = vpack.c.bf16 %v2859_v1, %v2858_v37 }
 0x4ad   : > { %2867 = vmatmul.msk.bf16.gmra.mxu1 %vm1227_vm14, %v1991_v32 }
 0x4ba   : > { %v2033_v40 = vpop.f32.mrf.mxu1 }
 0x4bb   : > { %v2034_v10 = vadd.f32 %v4264_v61, %v2033_v40 }
 0x4bd   : > { %v2073_v49 = vmul.f32 %v4022_v46, %v2034_v10 }
 0x4c2   : > { %v2035_v52 = vpop.f32.mrf.mxu1 }
 0x4c3   : > { %v2036_v59 = vadd.f32 %v4264_v61, %v2035_v52 }
 0x4c5   : > { %v2074_v39 = vmul.f32 %v4017_v62, %v2036_v59 }
 0x4ca   : > { %v2038_v35 = vpop.f32.mrf.mxu1 }
 0x4cb   : > { %v2039_v6 = vadd.f32 %v4264_v61, %v2038_v35 }
 0x4cd   : > { %v2075_v26 = vmul.f32 %v4009_v0, %v2039_v6 }
 0x4d2   : > { %v2040_v9 = vpop.f32.mrf.mxu1 }
 0x4d3   : > { %v2041_v8 = vadd.f32 %v4264_v61, %v2040_v9 }
 0x4d5   : > { %v2076_v17 = vmul.f32 %v4002_v41, %v2041_v8 }
 0x4da   : > { %v2043_v24 = vpop.f32.mrf.mxu1 }
 0x4db   : > { %v2044_v1 = vadd.f32 %v4264_v61, %v2043_v24 }
 0x4dd   : > { %v2077_v32 = vmul.f32 %v3993_v15, %v2044_v1 }
 0x4e2   : > { %v2045_v7 = vpop.f32.mrf.mxu1 }
 0x4e3   : > { %v2046_v42 = vadd.f32 %v4264_v61, %v2045_v7  ;;  %v4401_v7 = vld [vmem:[#allocation8_spill] sm:$0xff] }
 0x4e5   : > { %v2078_v23 = vmul.f32 %v3986_v18, %v2046_v42 }
 0x4ea   : > { %v2048_v21 = vpop.f32.mrf.mxu1 }
 0x4f2   : > { %v2050_v30 = vpop.f32.mrf.mxu1 }
 0x4f3   : > { %v2051_v15 = vadd.f32 %v4264_v61, %v2050_v30 }
 0x524   : > { %v1614_v4 = vpop.f32.mrf.mxu2 }
 0x525   : > { %v1620_v56 = vadd.f32 %v4217_v22, %v1614_v4  ;;  %v2053_v4 = vpop.f32.mrf.mxu1 }
 0x526   : > { %v2054_v18 = vadd.f32 %v4264_v61, %v2053_v4 }
 0x527   : > { %v4220_v20 = vadd.f32 %v3028_v47, %v1620_v56  ;;  %v2049_v56 = vadd.f32 %v4264_v61, %v2048_v21 }
 0x529   : > { %2869 = vmatmul.msk.f32.vlgmr.msra.gmra.mxu2 %vm1321_vm7, %v4220_v20 }
 0x52c   : > { %v1617_v29 = vpop.f32.mrf.mxu2 }
 0x52d   : > { %v1621_v60 = vadd.f32 %v4225_v38, %v1617_v29 }
 0x52f   : > { %v4228_v50 = vadd.f32 %v3028_v47, %v1621_v60  ;;  %v2079_v60 = vmul.f32 %v3977_v33, %v2049_v56 }
 0x531   : > { %2870 = vmatmul.msk.f32.gmra.mxu2 %vm1321_vm7, %v4228_v50 }
 0x5ac   : > { %v2119_v45 = vpop.f32.mrf.mxu2 }
 0x5b4   : > { %v2122_v53 = vpop.f32.mrf.mxu2 }
 0x5b5   : > { %v2125_v13 = vpack.c.bf16 %v2122_v53, %v2119_v45 }
 0x5b7   : > { %2133 = vmatpush.bf16.msra.mxu3 %v2125_v13  ;;  %v2055_v13 = vpop.f32.mrf.mxu1 }
 0x5ba   : > { %2871 = vmatmul.msk.bf16.vlgmr.msra.gmra.mxu3 %vm320_vm0, %v3250_v34  ;;  %v2080_v34 = vmul.f32 %v3970_v5, %v2051_v15 }
 0x5ca   : > { %2872 = vmatmul.msk.bf16.gmra.mxu3 %vm320_vm0, %v3251_v19 }
 0x5da   : > { %2873 = vmatmul.msk.bf16.gmra.mxu3 %vm320_vm0, %v3252_v48 }
 0x5ea   : > { %2874 = vmatmul.msk.bf16.gmra.mxu3 %vm320_vm0, %v3253_v11 }
 0x5fa   : > { %2875 = vmatmul.msk.bf16.gmra.mxu3 %vm320_vm0, %v3254_v43  ;;  %v2058_v43 = vpop.f32.mrf.mxu1 }
 0x5fb   : > { %v2059_v30 = vadd.f32 %v4264_v61, %v2058_v43 }
 0x602   : > { %v2060_v52 = vpop.f32.mrf.mxu1 }
 0x603   : > { %v2061_v21 = vadd.f32 %v4264_v61, %v2060_v52 }
 0x60a   : > { %2876 = vmatmul.msk.bf16.gmra.mxu3 %vm320_vm0, %v3255_v25  ;;  %v2081_v25 = vmul.f32 %v3963_v27, %v2054_v18  ;;  %v2063_v35 = vpop.f32.mrf.mxu1 }
 0x60b   : > { %v2064_v27 = vadd.f32 %v4264_v61, %v2063_v35 }
 0x612   : > { %v2065_v10 = vpop.f32.mrf.mxu1 }
 0x613   : > { %v2066_v6 = vadd.f32 %v4264_v61, %v2065_v10 }
 0x61a   : > { %2877 = vmatmul.msk.bf16.gmra.mxu3 %vm320_vm0, %v3256_v58 }
 0x62a   : > { %2878 = vmatmul.msk.bf16.gmra.mxu3 %vm320_vm0, %v3257_v36 }
 0x63d   : > { %v2135_v51 = vpop.f32.mrf.mxu3 }
 0x63e   : > { %v4268_v12 = vmul.f32 %v2135_v51, %v2073_v49  ;;  %v2068_v51 = vpop.f32.mrf.mxu1 }
 0x645   : > { %v2137_v3 = vpop.f32.mrf.mxu3 }
 0x646   : > { %v4272_v55 = vmul.f32 %v2137_v3, %v2074_v39  ;;  %v2070_v5 = vpop.f32.mrf.mxu1  ;;  %v2069_v39 = vadd.f32 %v4264_v61, %v2068_v51 }
 0x647   : > { %v2071_v3 = vadd.f32 %v4264_v61, %v2070_v5 }
 0x648   : > { %v2191_v16 = vpack.c.bf16 %v4272_v55, %v4268_v12  ;;  %v2289_v12 = vld [vmem:[#allocation2 + $0x158] sm:$0xf] }
 0x649   : > { %v3029_v55 = vld [vmem:[#allocation2 + $0x138] ss:$0 sm:$0xff] }
 0x64d   : > { %v2140_v46 = vpop.f32.mrf.mxu3 }
 0x64e   : > { %v4278_v31 = vmul.f32 %v2140_v46, %v2075_v26  ;;  %v2087_v26 = vmul.f32 %v4401_v7, %v2069_v39  ;;  %v2088_v46 = vmul.f32 %v3932_v44, %v2071_v3  ;;  %v2083_v44 = vmul.f32 %v3951_v54, %v2059_v30  ;;  %v2215_v54 = vld [vmem:[#allocation2 + $0x128] sm:$0xff] }
 0x655   : > { %v2142_v62 = vpop.f32.mrf.mxu3 }
 0x656   : > { %v4282_v14 = vmul.f32 %v2142_v62, %v2076_v17  ;;  %v4402_v17 = vld [vmem:[#allocation9_spill] sm:$0xff] }
 0x657   : > { %v2086_v62 = vmul.f32 %v4402_v17, %v2066_v6 }
 0x658   : > { %v2192_v37 = vpack.c.bf16 %v4282_v14, %v4278_v31  ;;  %v2287_v14 = vld [vmem:[#allocation2 + $0x148] sm:$0xff] }
 0x65d   : > { %v2145_v0 = vpop.f32.mrf.mxu3 }
 0x65e   : > { %v4288_v28 = vmul.f32 %v2145_v0, %v2077_v32  ;;  %v2085_v0 = vmul.f32 %v3940_v57, %v2064_v27 }
 0x665   : > { %v2147_v47 = vpop.f32.mrf.mxu3 }
 0x666   : > { %v2180_v41 = vmul.f32 %v2147_v47, %v2078_v23  ;;  %v2056_v23 = vadd.f32 %v4264_v61, %v2055_v13  ;;  %v2084_v47 = vmul.f32 %v3946_v2, %v2061_v21  ;;  %v2216_v2 = vld [vmem:[#allocation2 + $0x130] sm:$0xff]  ;;  %v2214_v61 = vld [vmem:[#allocation2 + $0x120] sm:$0xff] }
 0x668   : > { %v2193_v29 = vpack.c.bf16 %v2180_v41, %v4288_v28 }
 0x66d   : > { %v2150_v45 = vpop.f32.mrf.mxu3 }
 0x66e   : > { %v2181_v53 = vmul.f32 %v2150_v45, %v2079_v60  ;;  %v2082_v60 = vmul.f32 %v3958_v63, %v2056_v23  ;;  %v3258_v63 = vld [vmem:[%s4386_s3] sm:$0xff]  ;;  %v2330_v23 = vld [vmem:[#allocation2 + $0x178] sm:$0xff] }
 0x675   : > { %v2152_v19 = vpop.f32.mrf.mxu3 }
 0x676   : > { %v2182_v48 = vmul.f32 %v2152_v19, %v2080_v34  ;;  %v2286_v19 = vld [vmem:[#allocation2 + $0x140] sm:$0xff] }
 0x678   : > { %v2194_v11 = vpack.c.bf16 %v2182_v48, %v2181_v53 }
 0x67d   : > { %v2155_v40 = vpop.f32.mrf.mxu3 }
 0x67e   : > { %v2183_v58 = vmul.f32 %v2155_v40, %v2081_v25  ;;  %v2331_v40 = vld [vmem:[#allocation2 + $0x180] sm:$0xf] }
 0x685   : > { %v2157_v36 = vpop.f32.mrf.mxu3 }
 0x686   : > { %v2184_v53 = vmul.f32 %v2157_v36, %v2082_v60  ;;  %v3030_v60 = vld [vmem:[#allocation2 + $0x160] ss:$0 sm:$0xff] }
 0x688   : > { %v2195_v57 = vpack.c.bf16 %v2184_v53, %v2183_v58 }
 0x68d   : > { %v2160_v33 = vpop.f32.mrf.mxu3 }
 0x68e   : > { %v2185_v45 = vmul.f32 %v2160_v33, %v2083_v44  ;;  %v2368_v44 = vld [vmem:[#allocation2 + $0x1a0] sm:$0x1] }
 0x695   : > { %v2162_v9 = vpop.f32.mrf.mxu3 }
 0x696   : > { %v2186_v4 = vmul.f32 %v2162_v9, %v2084_v47  ;;  %v2329_v47 = vld [vmem:[#allocation2 + $0x170] sm:$0xff] }
 0x698   : > { %v2196_v15 = vpack.c.bf16 %v2186_v4, %v2185_v45  ;;  %v2367_v4 = vld [vmem:[#allocation2 + $0x198] sm:$0xff] }
 0x69d   : > { %v2165_v49 = vpop.f32.mrf.mxu3 }
 0x69e   : > { %v2187_v41 = vmul.f32 %v2165_v49, %v2085_v0 }
 0x6a5   : > { %v2167_v24 = vpop.f32.mrf.mxu3 }
 0x6a6   : > { %v2188_v28 = vmul.f32 %v2167_v24, %v2086_v62 }
 0x6a8   : > { %v2197_v56 = vpack.c.bf16 %v2188_v28, %v2187_v41  ;;  %v2328_v41 = vld [vmem:[#allocation2 + $0x168] sm:$0xff] }
 0x6ad   : > { %v2170_v59 = vpop.f32.mrf.mxu3 }
 0x6ae   : > { %v2189_v1 = vmul.f32 %v2170_v59, %v2087_v26 }
 0x6b5   : > { %v2172_v8 = vpop.f32.mrf.mxu3 }
 0x6b6   : > { %v2190_v32 = vmul.f32 %v2172_v8, %v2088_v46 }
 0x6b8   : > { %v2198_v42 = vpack.c.bf16 %v2190_v32, %v2189_v1 }
 0x6ba   : > { %2199 = vmatpush.bf16.msrb.mxu2 %v2198_v42 }
 0x6be   : > { %2200 = vmatpush.bf16.msrb.mxu2 %v2197_v56  ;;  %v2366_v56 = vld [vmem:[#allocation2 + $0x190] sm:$0xff] }
 0x6c2   : > { %2201 = vmatpush.bf16.msrb.mxu2 %v2196_v15 }
 0x6c6   : > { %2202 = vmatpush.bf16.msrb.mxu2 %v2195_v57 }
 0x6ca   : > { %2203 = vmatpush.bf16.msrb.mxu2 %v2194_v11 }
 0x6ce   : > { %2204 = vmatpush.bf16.msrb.mxu2 %v2193_v29  ;;  %v2213_v29 = vld [vmem:[#allocation2 + $0x118] sm:$0xff] }
 0x6d2   : > { %2205 = vmatpush.bf16.msrb.mxu2 %v2192_v37 }
 0x6d6   : > { %2206 = vmatpush.bf16.msrb.mxu2 %v2191_v16  ;;  %v2288_v16 = vld [vmem:[#allocation2 + $0x150] sm:$0xff] }
 0x6d9   : > { %2207 = vmatmul.bf16.vlgmr.msrb.gmra.mxu2 %v3258_v63  ;;  %v260_v63 = vld [vmem:[%s256_s14] sm:$0x3] }
 0x6da   : > { %2237 = vmatpush.msra.mxu2 %v2216_v2 }
 0x6dc   : > { %2238 = vmatpush.msra.mxu2 %v2215_v54 }
 0x6de   : > { %2239 = vmatpush.msra.mxu2 %v2214_v61 }
 0x6e0   : > { %2240 = vmatpush.msra.mxu2 %v2213_v29  ;;  %v3031_v29 = vld [vmem:[#allocation2 + $0x188] ss:$0 sm:$0xff] }
 0x6e2   : > { %2883 = vmatpush.msk.msrb.mxu2 %vm1326_vm4, %v2289_v12 }
 0x6e4   : > { %2312 = vmatpush.msrb.mxu2 %v2288_v16  ;;  %v2399_v16 = vld [vmem:[#allocation2 + $0x240] sm:$0xff] }
 0x6e6   : > { %2313 = vmatpush.msrb.mxu2 %v2287_v14  ;;  %v2400_v14 = vld [vmem:[#allocation2 + $0x248] sm:$0xff] }
 0x6e8   : > { %2314 = vmatpush.msrb.mxu2 %v2286_v19  ;;  %v2442_v19 = vld [vmem:[#allocation2 + $0x220] sm:$0xff] }
 0x75c   : > { %v2208_v13 = vpop.f32.mrf.mxu2 }
 0x75d   : > { %2879 = vmatmul.msk.f32.vlgmr.msra.gmra.mxu2 %vm1227_vm14, %v2208_v13 }
 0x75e   : > { %2886 = vmatpush.msk.msra.mxu2 %vm1326_vm4, %v2331_v40  ;;  %v3363_v40 = vmov 32  }
 0x75f   : > { %3014 = vset.pattern.permute.xlu1 %v3363_v40  ;;  %3015 = vset.pattern.permute.xlu2 %v3363_v40 }
 0x760   : > { %2356 = vmatpush.msra.mxu2 %v2330_v23  ;;  %3021 = vset.pattern.permute.xlu0 %v3363_v40 }
 0x762   : > { %2357 = vmatpush.msra.mxu2 %v2329_v47 }
 0x764   : > { %v2210_v31 = vpop.f32.mrf.mxu2  ;;  %2358 = vmatpush.msra.mxu2 %v2328_v41 }
 0x765   : > { %2880 = vmatmul.msk.f32.gmra.mxu2 %vm1227_vm14, %v2210_v31  ;;  %v3032_v31 = vld [vmem:[#allocation2 + $0x1a8] ss:$0 sm:$0xff] }
 0x7e0   : > { %v2242_v37 = vpop.f32.mrf.mxu2 }
 0x7e1   : > { %v2243_v34 = vadd.f32 %v3029_v55, %v2242_v37  ;;  %v2444_v37 = vld [vmem:[#allocation2 + $0x230] sm:$0xff] }
 0x7e3   : > { %v2254_v48 = vand.u32 2147483647, %v2243_v34  ;;  %v2248_v6 = vmax.f32 %v2243_v34, 0.0  ;;  %vm2250_vm4 = vcmp.ne.f32.partialorder %v2243_v34, %v2243_v34 }
 0x7e5   : > { %v2256_v18 = vsub.f32 0.0, %v2254_v48  ;;  %v2441_v48 = vld [vmem:[#allocation2 + $0x218] sm:$0xff] }
 0x7e7   : > { %v2258_v11 = vmul.f32 1.442695, %v2256_v18  ;;  %v2440_v18 = vld [vmem:[#allocation2 + $0x210] sm:$0xff] }
 0x7e8   : > { %v2245_v43 = vpop.f32.mrf.mxu2 }
 0x7e9   : > { %3234 = vpow2.f32 %v2258_v11  ;;  %v2246_v25 = vadd.f32 %v3029_v55, %v2245_v43  ;;  %v2439_v11 = vld [vmem:[#allocation2 + $0x208] sm:$0xff]  ;;  %v2438_v43 = vld [vmem:[#allocation2 + $0x200] sm:$0xff] }
 0x7eb   : > { %v2255_v58 = vand.u32 2147483647, %v2246_v25  ;;  %v2249_v32 = vmax.f32 %v2246_v25, 0.0  ;;  %vm2251_vm11 = vcmp.ne.f32.partialorder %v2246_v25, %v2246_v25 }
 0x7ed   : > { %v2257_v52 = vsub.f32 0.0, %v2255_v58  ;;  %v3364_v58 = vmov 0  }
 0x7ef   : > { %v3235_v36 = vpop.eup %3234  ;;  %v2260_v33 = vmul.f32 1.442695, %v2257_v52  ;;  %v2479_v52 = vsel %vm2477_vm1, 1, %v3364_v58 }
 0x7f0   : > { %v2262_v35 = vadd.f32 1.0, %v3235_v36  ;;  %v2265_v9 = vmul.f32 -0.5, %v3235_v36  ;;  %v2268_v49 = vand.u32 2147483647, %v3235_v36  ;;  %2482 = vperm.xlu1 %3014, %v2479_v52  }
 0x7f1   : > { %3236 = vpow2.f32 %v2260_v33 }
 0x7f2   : > { %3238 = vlog2.f32 %v2262_v35  ;;  %v2266_v10 = vadd.f32 1.0, %v2265_v9  ;;  %vm2269_vm14 = vcmp.lt.f32.partialorder %v2268_v49, 0.0004427343 }
 0x7f4   : > { %v2267_v39 = vmul.f32 %v3235_v36, %v2266_v10  ;;  %v2480_v36 = vsel %vm2478_vm2, 1, %v3364_v58 }
 0x7f5   : > { %2485 = vperm.xlu2 %3015, %v2480_v36  }
 0x7f7   : > { %v3237_v51 = vpop.eup %3236 }
 0x7f8   : > { %v3239_v24 = vpop.eup %3238  ;;  %v2271_v5 = vadd.f32 1.0, %v3237_v51  ;;  %v2274_v3 = vmul.f32 -0.5, %v3237_v51  ;;  %v2277_v8 = vand.u32 2147483647, %v3237_v51 }
 0x7f9   : > { %v2264_v59 = vmul.f32 0.6931472, %v3239_v24 }
 0x7fa   : > { %3240 = vlog2.f32 %v2271_v5  ;;  %v2275_v26 = vadd.f32 1.0, %v2274_v3  ;;  %vm2278_vm10 = vcmp.lt.f32.partialorder %v2277_v8, 0.0004427343 }
 0x7fb   : > { %v2270_v27 = vsel %vm2269_vm14, %v2267_v39, %v2264_v59 }
 0x7fc   : > { %v2280_v7 = vadd.f32 %v2270_v27, %v2248_v6  ;;  %v2276_v1 = vmul.f32 %v3237_v51, %v2275_v26 }
 0x7fe   : > { %v2282_v46 = vsel %vm2250_vm4, %v2243_v34, %v2280_v7  ;;  %v2443_v34 = vld [vmem:[#allocation2 + $0x228] sm:$0xff] }
 0x7ff   : > { %v2881_v21 = vadd.f32 -0.6931472, %v2282_v46 }
 0x800   : > { %v3241_v17 = vpop.eup %3240 }
 0x801   : > { %v2273_v62 = vmul.f32 0.6931472, %v3241_v17  ;;  %2884 = vmatmul.msk.f32.vlgmr.msrb.gmra.mxu2 %vm1321_vm7, %v2881_v21 }
 0x802   : > { %2889 = vmatpush.msk.msrb.mxu2 %vm2375_vm12, %v2368_v44 }
 0x803   : > { %v2279_v30 = vsel %vm2278_vm10, %v2276_v1, %v2273_v62 }
 0x804   : > { %v2281_v0 = vadd.f32 %v2279_v30, %v2249_v32  ;;  %2393 = vmatpush.msrb.mxu2 %v2367_v4 }
 0x806   : > { %v2283_v28 = vsel %vm2251_vm11, %v2246_v25, %v2281_v0  ;;  %2394 = vmatpush.msrb.mxu2 %v2366_v56  ;;  %v2437_v25 = vld [vmem:[#allocation2 + $0x1f8] sm:$0xff] }
 0x807   : > { %v2882_v42 = vadd.f32 -0.6931472, %v2283_v28 }
 0x809   : > { %2885 = vmatmul.msk.f32.gmra.mxu2 %vm1321_vm7, %v2882_v42 }
 0x84f   : > { %v2486_v51 = vpop.permute.xlu2 %2485 }
 0x850   : > { %vm2488_vm6 = vcmp.eq.s32.totalorder %v2486_v51, 1 }
 0x862   : > { %v2483_v38 = vpop.permute.xlu1 %2482 }
 0x863   : > { %vm2487_vm5 = vcmp.eq.s32.totalorder %v2483_v38, 1 }
 0x884   : > { %v2316_v45 = vpop.f32.mrf.mxu2 }
 0x885   : > { %v2322_v53 = vadd.f32 %v2316_v45, %v4220_v20 }
 0x887   : > { %v2326_v15 = vadd.f32 %v3030_v60, %v2322_v53  ;;  %v2526_v53 = vld [vmem:[#allocation2 + $0x238] sm:$0x3] }
 0x889   : > { %2887 = vmatmul.msk.f32.vlgmr.msra.gmra.mxu2 %vm1321_vm7, %v2326_v15 }
 0x88c   : > { %v2319_v57 = vpop.f32.mrf.mxu2 }
 0x88d   : > { %v2323_v2 = vadd.f32 %v2319_v57, %v4228_v50 }
 0x88f   : > { %v2327_v54 = vadd.f32 %v3030_v60, %v2323_v2 }
 0x891   : > { %2888 = vmatmul.msk.f32.gmra.mxu2 %vm1321_vm7, %v2327_v54  ;;  %vm2401_vm7 = vcmask 15360  }
 0x899   : > { %2890 = vmatmul.msk.f32.vlgmr.msrb.gmra.mxu2 %vm2371_vm13, %v260_v63  ;;  %v2564_v63 = vld [vmem:[#allocation2 + $0x1e8] sm:$0xff] }
 0x89a   : > { %2580 = vmatpush.msrb.mxu1 %v2564_v63 }
 0x90c   : > { %v2360_v61 = vpop.f32.mrf.mxu2 }
 0x90d   : > { %v2361_v12 = vadd.f32 %v3031_v29, %v2360_v61  ;;  %v2563_v61 = vld [vmem:[#allocation2 + $0x1e0] sm:$0xff] }
 0x90e   : > { %2581 = vmatpush.msrb.mxu1 %v2563_v61 }
 0x914   : > { %v2363_v20 = vpop.f32.mrf.mxu2 }
 0x915   : > { %v2364_v13 = vadd.f32 %v3031_v29, %v2363_v20  ;;  %v2562_v29 = vld [vmem:[#allocation2 + $0x1d8] sm:$0xff]  ;;  %v2561_v20 = vld [vmem:[#allocation2 + $0x1d0] sm:$0xff] }
 0x916   : > { %2582 = vmatpush.msrb.mxu1 %v2562_v29 }
 0x917   : > { %2510 = vrot.lane.b32.xlu0 %v2364_v13, %s3362_s15 }
 0x918   : > { %2583 = vmatpush.msrb.mxu1 %v2561_v20 }
 0x91c   : > { %v2396_v50 = vpop.f32.mrf.mxu2 }
 0x91d   : > { %v2397_v55 = vadd.f32 %v3032_v31, %v2396_v50  ;;  %v2559_v31 = vld [vmem:[#allocation2 + $0x1c0] sm:$0xff]  ;;  %v2558_v50 = vld [vmem:[#allocation2 + $0x1b8] sm:$0xff] }
 0x91f   : > { %2891 = vmatpush.msk.msra.mxu2 %vm2408_vm15, %v2397_v55  ;;  %2508 = vrot.lane.b32.xlu0 %v2361_v12, %s3362_s15 }
 0x920   : > { %2892 = vmatmul.msk.f32.vlgmr.msra.gmra.mxu2 %vm2401_vm7, %v2399_v16 }
 0x921   : > { %2460 = vmatpush.msrb.mxu2 %v2444_v37  ;;  %v3033_v37 = vld [vmem:[#allocation2 + $0x1f0] ss:$0 sm:$0xff] }
 0x923   : > { %2461 = vmatpush.msrb.mxu2 %v2443_v34 }
 0x925   : > { %2462 = vmatpush.msrb.mxu2 %v2442_v19 }
 0x927   : > { %2463 = vmatpush.msrb.mxu2 %v2441_v48 }
 0x928   : > { %2893 = vmatmul.msk.f32.gmra.mxu2 %vm2401_vm7, %v2400_v14 }
 0x929   : > { %2464 = vmatpush.msrb.mxu2 %v2440_v18 }
 0x92b   : > { %2465 = vmatpush.msrb.mxu2 %v2439_v11 }
 0x92d   : > { %2466 = vmatpush.msrb.mxu2 %v2438_v43 }
 0x92f   : > { %2467 = vmatpush.msrb.mxu2 %v2437_v25 }
 0x989   : > { %v2511_v62 = vpop.permute.xlu0 %2510 }
 0x991   : > { %v2509_v42 = vpop.permute.xlu0 %2508 }
 0x9a3   : > { %v2429_v33 = vpop.f32.mrf.mxu2 }
 0x9a4   : > { %v2435_v35 = vmul.f32 %v2429_v33, %v2361_v12  ;;  %v2557_v12 = vld [vmem:[#allocation2 + $0x1b0] sm:$0xff] }
 0x9a6   : > { %2894 = vmatmul.msk.f32.vlgmr.msrb.gmra.mxu2 %vm2445_vm3, %v2435_v35 }
 0x9ab   : > { %v2432_v9 = vpop.f32.mrf.mxu2 }
 0x9ac   : > { %v2436_v10 = vmul.f32 %v2432_v9, %v2364_v13  ;;  %v2560_v13 = vld [vmem:[#allocation2 + $0x1c8] sm:$0xff] }
 0x9ad   : > { %2584 = vmatpush.msrb.mxu1 %v2560_v13 }
 0x9ae   : > { %2895 = vmatmul.msk.f32.gmra.mxu2 %vm2445_vm3, %v2436_v10 }
 0x9af   : > { %2585 = vmatpush.msrb.mxu1 %v2559_v31 }
 0x9b1   : > { %2586 = vmatpush.msrb.mxu1 %v2558_v50 }
 0x9b3   : > { %2587 = vmatpush.msrb.mxu1 %v2557_v12 }
 0xa29   : > { %v2469_v22 = vpop.f32.mrf.mxu2 }
 0xa2a   : > { %v2475_v49 = vmul.f32 0.25, %v2469_v22 }
 0xa2c   : > { %v2489_v5 = vsel %vm2487_vm5, %v2475_v49, -1e+10 }
 0xa2d   : > { %v2491_v3 = vsel %vm2445_vm3, %v2489_v5, -inf }
 0xa31   : > { %v2472_v24 = vpop.f32.mrf.mxu2 }
 0xa32   : > { %v2476_v59 = vmul.f32 0.25, %v2472_v24 }
 0xa34   : > { %v2490_v39 = vsel %vm2488_vm6, %v2476_v59, -1e+10 }
 0xa35   : > { %v2492_v6 = vsel %vm2445_vm3, %v2490_v39, -inf }
 0xa36   : > { %v2493_v27 = vmax.f32 %v2491_v3, %v2492_v6 }
 0xa38   : > { %v2494_v7 = vrot.slane %v2493_v27, 4 }
 0xa3a   : > { %v2495_v26 = vmax.f32 %v2493_v27, %v2494_v7 }
 0xa3c   : > { %v2496_v46 = vrot.slane %v2495_v26, 2 }
 0xa3e   : > { %v2497_v8 = vmax.f32 %v2495_v26, %v2496_v46 }
 0xa40   : > { %v2498_v21 = vrot.slane %v2497_v8, 1 }
 0xa42   : > { %v2499_v17 = vmax.f32 %v2497_v8, %v2498_v21 }
 0xa44   : > { %v2500_v1 = vsub.f32 %v2489_v5, %v2499_v17  ;;  %v2501_v32 = vsub.f32 %v2490_v39, %v2499_v17 }
 0xa46   : > { %v2502_v30 = vmul.f32 1.442695, %v2500_v1  ;;  %v2504_v0 = vmul.f32 1.442695, %v2501_v32 }
 0xa48   : > { %3242 = vpow2.f32 %v2502_v30 }
 0xa49   : > { %3244 = vpow2.f32 %v2504_v0 }
 0xa4e   : > { %v3243_v28 = vpop.eup %3242 }
 0xa4f   : > { %v3245_v23 = vpop.eup %3244  ;;  %v2514_v47 = vmul.f32 %v3243_v28, %v2509_v42 }
 0xa50   : > { %v2515_v41 = vmul.f32 %v3245_v23, %v2511_v62 }
 0xa52   : > { %v3016_v44 = vpack.i.bf16 %v2514_v47, %v2515_v41 }
 0xa54   : > { %3017 = vrot.lane.b32.xlu2 %v3016_v44, %s3362_s15 }
 0xaae   : > { %v3018_v4 = vpop.permute.xlu2 %3017 }
 0xaaf   : > { %v3020_v56 = vunpack.i.h.bf16 %v3018_v4  ;;  %v3019_v60 = vunpack.i.l.bf16 %v3018_v4 }
 0xab1   : > { %v2525_v45 = vsel %vm2445_vm3, %v3245_v23, %v3019_v60  ;;  %v2524_v15 = vsel %vm2445_vm3, %v3243_v28, %v3020_v56 }
 0xab2   : > { %2544 = vmatpush.msrb.mxu0 %v2525_v45 }
 0xab4   : > { %2545 = vmatpush.msrb.mxu0 %v2524_v15 }
 0xab5   : > { %2896 = vmatmul.msk.f32.vlgmr.msrb.gmra.mxu0 %vm320_vm0, %v2526_v53 }
 0xb32   : > { %v2547_v57 = vpop.f32.mrf.mxu0 }
 0xb33   : > { %v2550_v2 = vmax.f32 %v2547_v57, 1e-20 }
 0xb35   : > { %3246 = vrcp.f32 %v2550_v2 }
 0xb3b   : > { %v3247_v54 = vpop.eup %3246 }
 0xb3c   : > { %2553 = vrot.lane.b32.xlu1 %v3247_v54, %s3362_s15 }
 0xbae   : > { %v2554_v55 = vpop.permute.xlu1 %2553 }
 0xbaf   : > { %v2556_v16 = vmul.f32 %v2554_v55, %v2547_v57 }
 0xbb1   : > { %2568 = vrot.lane.b32.xlu0 %v2556_v16, %s3362_s15 }
 0xc23   : > { %v2569_v14 = vpop.permute.xlu0 %2568 }
 0xc24   : > { %2897 = vmatmul.msk.f32.vlgmr.msrb.gmra.mxu1 %vm2445_vm3, %v2569_v14 }
 0xca1   : > { %v2589_v34 = vpop.f32.mrf.mxu1 }
 0xca2   : > { %v2590_v19 = vadd.f32 %v3033_v37, %v2589_v34 }
 0xca4   : > { %2592 = vst [vmem:[%s247_s6] sm:$0x3] %v2590_v19 }
 0xca5   : > { %3316 = shalt.err (!%p3313_p8)
}
 0xca6   : > { %2956 = dma.vmem_to_hbm [thread:$0]  (%p3433_p5), %s2607_s7, 32, %s2609_s8, %s2594_s9  }
 0xca7 PF: > { %p2968_p9 = scmp.ge.s32.totalorder %s3355_s21, 2  ;;  %s2620_s12 = sand.u32 1, %s3343_s18  }
 0xca8   : > { %s2621_s17 = scalar_lea.sflag [#allocation4], %s2620_s12 }
 0xca9   : > { %p2963_p10 = pnand %p2968_p9, %p3437_p6 }
 0xcab   : > { %p2964_p11 = pneg %p2963_p10 }
 0xcad   : > { %3338 = dma.done.wait (%p2964_p11), %s2621_s17, 32  }
 0xcae   : > { %3340 = vsyncadd (%p2964_p11), %s2621_s17, 4294967264  ;;  %p16_p12 = scmp.ge.s32.totalorder %s3420_s24, 4   ;;  %s4403_s18 = smov %s3347_s19 }
 0xcaf   : > { %s4404_s19 = smov %s3351_s20  ;;  %s4405_s20 = smov %s3431_s27 }
 0xcb0   : > { %s4406_s21 = smov %s3420_s24  ;;  %18 = sbr.rel (!%p16_p12) target bundleno = 4 (0x4), region = 84 }
 0xcb5   :  { %2627 = vsyncpa [#allocation3], 1 }
 0xcb6   :  { %2629 = vsyncpa [#allocation3 + $0x1], 1 }
 0xcb7   :  { %2630 = vsyncpa [#allocation4], 1 }
 0xcb8   :  { %2632 = vsyncpa [#allocation4 + $0x1], 1 }

</bundles_post_ra>
